<compile_context>
chip_gen: v7x
topology: tpu7x:2x2x1
jax: 0.10.0
libtpu: 0.0.40
codegen_flags: <defaults>
</compile_context>

<pallas_src>
import functools

import jax
import jax.numpy as jnp
import numpy as np
from jax import lax
from jax.experimental import pallas as pl
from jax.experimental.pallas import tpu as pltpu

BN_EPS = 1e-5

C_B1, C_B2, C_B3, C_B4 = 48, 48, 48, 32
C_OUT = C_B1 + C_B2 + C_B3 + C_B4          # 176
C_MID = 32                                  # intermediate 1x1 channels
CAT1 = C_B1 + C_MID + C_MID + C_B4          # 144 rows of the fused 1x1 matmul


# ------------------------------ fused kernel --------------------------------

def _fused_kernel(x_ref, wcat_ref, scat_ref, w23_ref, s23_ref,
                  w3b_ref, s3b_ref, sp_ref, o_ref, *, H, W):
    # x_ref    : (Cin, M)    one batch element, channel-major, M = H*W
    # wcat_ref : (144, Cin)  [branch1 | branch2 head | branch3 head | pool] rows
    # scat_ref : (144, 1)    matching shifts (pool rows are zero)
    # w23_ref  : (96, 576)   block-diag merged branch2 / branch3a 3x3 weights
    # s23_ref  : (96, 1)
    # w3b_ref  : (48, 432)   branch3b 3x3 weights (im2col layout)
    # s3b_ref  : (48, 1)
    # sp_ref   : (32, 1)     pool-branch shift (added after the avgpool)
    # o_ref    : (176, M)    concatenated branch outputs, channel-major
    M = H * W

    # ---- border masks (built once; no integer div/mod on the VPU) ----------
    lane_i = lax.broadcasted_iota(jnp.int32, (1, M), 1)
    lane_f = lane_i.astype(jnp.float32)
    row_f = jnp.floor((lane_f + 0.5) * (1.0 / float(W)))     # y index, exact
    col_f = lane_f - row_f * float(W)                         # x index, exact

    masks = {}
    for dy in (-1, 0, 1):
        for dx in (-1, 0, 1):
            if dy == 0 and dx == 0:
                continue
            conds = []
            if dy == -1:
                conds.append(lane_i >= W)                     # y - 1 >= 0
            if dy == 1:
                conds.append(lane_i < (H - 1) * W)            # y + 1 <= H-1
            if dx == -1:
                conds.append(col_f >= 0.5)                    # x - 1 >= 0
            if dx == 1:
                conds.append(col_f <= W - 1.5)                # x + 1 <= W-1
            c = conds[0]
            for extra in conds[1:]:
                c = jnp.logical_and(c, extra)
            masks[(dy, dx)] = jnp.where(c, 1.0, 0.0).astype(jnp.float32)

    def taps(val):
        """9 masked, spatially-shifted copies of a channel-major (C, M) slab.

        Rolls ride the XLU; the (1, M) masks zero exactly the positions that a
        zero-padded 3x3 conv / avgpool would read from the padding (they also
        kill the roll wrap-around), so no padded scratch planes are needed.
        """
        out = []
        for dy in (-1, 0, 1):
            for dx in (-1, 0, 1):
                s = dy * W + dx                               # flat-index offset
                v = val if s == 0 else pltpu.roll(val, (-s) % M, axis=1)
                if (dy, dx) in masks:
                    v = v * masks[(dy, dx)]
                out.append(v)
        return out

    # ---- fused 1x1 stage: all four branch heads in one MXU matmul ----------
    y = jnp.dot(wcat_ref[...], x_ref[...], preferred_element_type=jnp.float32)
    y = y + scat_ref[...]                                     # (144, M)

    # branch 1: 1x1 -> BN (folded) -> relu -> dropout(identity); store now so
    # y's live range stays short.
    o_ref[pl.ds(0, C_B1), :] = jnp.maximum(y[0:C_B1, :], 0.0)

    # Stack the remaining heads so a single roll/mask per tap feeds branch 2,
    # branch 3a and the pool branch:
    #   rows  0:64  relu'd 1x1 heads for branch2 / branch3 (3x3 conv inputs)
    #   rows 64:96  pool-branch 1x1 output (no relu: relu comes after pooling)
    stack = jnp.concatenate(
        [jnp.maximum(y[C_B1:C_B1 + 2 * C_MID, :], 0.0),
         y[C_B1 + 2 * C_MID:CAT1, :]], axis=0)                # (96, M)

    chunks = taps(stack)                                      # 9 x (96, M)

    # merged branch-2 / branch-3a 3x3 conv: one im2col matmul, K = 576
    patch23 = jnp.concatenate([c[0:2 * C_MID, :] for c in chunks], axis=0)
    bu = jnp.dot(w23_ref[...], patch23,
                 preferred_element_type=jnp.float32) + s23_ref[...]   # (96, M)

    # branch 2: 1x1 -> relu -> 3x3 -> BN (folded) -> relu
    o_ref[pl.ds(C_B1, C_B2), :] = jnp.maximum(bu[0:C_B2, :], 0.0)

    # branch 3: second 3x3 conv on the 48-channel intermediate, K = 432
    u = jnp.maximum(bu[C_B2:2 * C_B2, :], 0.0)                # (48, M)
    patch3b = jnp.concatenate(taps(u), axis=0)                # (432, M)
    b3 = jnp.dot(w3b_ref[...], patch3b,
                 preferred_element_type=jnp.float32) + s3b_ref[...]
    o_ref[pl.ds(C_B1 + C_B2, C_B3), :] = jnp.maximum(b3, 0.0)

    # branch 4: avgpool(3x3, pad=1, count_include_pad) of the (bias-free) 1x1
    # head, then folded shift + relu (the 1x1 was commuted before the pool).
    pooled = chunks[0][2 * C_MID:, :]
    for c in chunks[1:]:
        pooled = pooled + c[2 * C_MID:, :]
    b4 = pooled * (1.0 / 9.0) + sp_ref[...]
    o_ref[pl.ds(C_B1 + C_B2 + C_B3, C_B4), :] = jnp.maximum(b4, 0.0)


# --------------------------- parameter folding -------------------------------

def _fold_3x3(w, b, scale, shift):
    """(9, cin, cout) conv taps + bias + BN  ->  ((cout, 9, cin), (cout, 1))."""
    cout = w.shape[2]
    wf = jnp.transpose(w, (2, 0, 1)) * scale.reshape(cout, 1, 1)
    sf = (b * scale + shift).reshape(cout, 1)
    return wf, sf


def _fold_params(p):
    """Fold conv bias + eval-mode BatchNorm; build channel-major fused weights."""
    f = {}
    w1 = (p['w_1x1'] * p['bn1_scale']).T                           # (48, Cin)
    b1 = (p['b_1x1'] * p['bn1_scale'] + p['bn1_shift']).reshape(C_B1, 1)
    w2h = p['w_3x3_1'].T                                           # (32, Cin)
    b2h = p['b_3x3_1'].reshape(C_MID, 1)
    w3h = p['w_dbl_1'].T                                           # (32, Cin)
    b3h = p['b_dbl_1'].reshape(C_MID, 1)
    wp = (p['w_pool'] * p['bn4_scale']).T                          # (32, Cin)
    f['s_pool'] = (p['b_pool'] * p['bn4_scale'] + p['bn4_shift']).reshape(C_B4, 1)

    # merged 1x1 weight rows: [branch1 | branch2 head | branch3 head | pool]
    f['w_cat'] = jnp.concatenate([w1, w2h, w3h, wp], axis=0)       # (144, Cin)
    f['s_cat'] = jnp.concatenate(
        [b1, b2h, b3h, jnp.zeros((C_B4, 1), jnp.float32)], axis=0)  # (144, 1)

    w2f, s2 = _fold_3x3(p['w_3x3_2'], p['b_3x3_2'], p['bn2_scale'], p['bn2_shift'])
    w3af, s3a = _fold_3x3(p['w_dbl_2'], p['b_dbl_2'], p['bn3a_scale'], p['bn3a_shift'])
    w3bf, s3b = _fold_3x3(p['w_dbl_3'], p['b_dbl_3'], p['bn3b_scale'], p['bn3b_shift'])

    # block-diagonal merged weight for branch2 + branch3a (96, 9*64)
    z = jnp.zeros_like(w2f)                                        # (48, 9, 32)
    top = jnp.concatenate([w2f, z], axis=2)                        # (48, 9, 64)
    bot = jnp.concatenate([z, w3af], axis=2)                       # (48, 9, 64)
    f['w_23'] = jnp.concatenate([top, bot], axis=0).reshape(
        2 * C_B2, 9 * 2 * C_MID)                                   # (96, 576)
    f['s_23'] = jnp.concatenate([s2, s3a], axis=0)                 # (96, 1)

    f['w_3b'] = w3bf.reshape(C_B3, 9 * C_B3)                       # (48, 432)
    f['s_3b'] = s3b                                                # (48, 1)
    return f


# ------------------------------ full forward --------------------------------

def tiny_modified_inception(x_nchw, p):
    N, Cin, H, W = x_nchw.shape
    M = H * W
    f = _fold_params(p)
    x = x_nchw.reshape(N, Cin, M).astype(jnp.float32)    # free reshape, stays NCHW

    kernel = functools.partial(_fused_kernel, H=H, W=W)
    out = pl.pallas_call(
        kernel,
        out_shape=jax.ShapeDtypeStruct((N, C_OUT, M), jnp.float32),
        grid=(N,),
        in_specs=[
            pl.BlockSpec((None, Cin, M), lambda n: (n, 0, 0)),          # x
            pl.BlockSpec((CAT1, Cin), lambda n: (0, 0)),                # w_cat
            pl.BlockSpec((CAT1, 1), lambda n: (0, 0)),                  # s_cat
            pl.BlockSpec((2 * C_B2, 9 * 2 * C_MID), lambda n: (0, 0)),  # w_23
            pl.BlockSpec((2 * C_B2, 1), lambda n: (0, 0)),              # s_23
            pl.BlockSpec((C_B3, 9 * C_B3), lambda n: (0, 0)),           # w_3b
            pl.BlockSpec((C_B3, 1), lambda n: (0, 0)),                  # s_3b
            pl.BlockSpec((C_B4, 1), lambda n: (0, 0)),                  # s_pool
        ],
        out_specs=pl.BlockSpec((None, C_OUT, M), lambda n: (n, 0, 0)),
        compiler_params=pltpu.CompilerParams(
            dimension_semantics=("parallel",)),          # 2 TCs on v7x
    )(x, f['w_cat'], f['s_cat'], f['w_23'], f['s_23'],
      f['w_3b'], f['s_3b'], f['s_pool'])

    return out.reshape(N, C_OUT, H, W)                   # already NCHW


# ---------------------------- parameter setup --------------------------------

def _conv_params(key, cin, cout, taps):
    k1, k2 = jax.random.split(key)
    bound = 1.0 / np.sqrt(cin * taps)
    if taps == 1:
        w = jax.random.uniform(k1, (cin, cout), jnp.float32, -bound, bound)
    else:
        w = jax.random.uniform(k1, (taps, cin, cout), jnp.float32, -bound, bound)
    b = jax.random.uniform(k2, (1, cout), jnp.float32, -bound, bound)
    return w, b


def _bn_params(key, c):
    k1, k2, k3, k4 = jax.random.split(key, 4)
    gamma = jax.random.uniform(k1, (c,), jnp.float32, 0.5, 1.5)
    beta = 0.1 * jax.random.normal(k2, (c,), jnp.float32)
    mean = 0.1 * jax.random.normal(k3, (c,), jnp.float32)
    var = jax.random.uniform(k4, (c,), jnp.float32, 0.5, 1.5)
    scale = gamma / jnp.sqrt(var + BN_EPS)
    shift = beta - mean * scale
    return scale.reshape(1, c), shift.reshape(1, c)


def init_params(key, in_channels):
    keys = jax.random.split(key, 12)
    p = {}
    p['w_1x1'], p['b_1x1'] = _conv_params(keys[0], in_channels, 48, 1)
    p['w_3x3_1'], p['b_3x3_1'] = _conv_params(keys[1], in_channels, 32, 1)
    p['w_3x3_2'], p['b_3x3_2'] = _conv_params(keys[2], 32, 48, 9)
    p['w_dbl_1'], p['b_dbl_1'] = _conv_params(keys[3], in_channels, 32, 1)
    p['w_dbl_2'], p['b_dbl_2'] = _conv_params(keys[4], 32, 48, 9)
    p['w_dbl_3'], p['b_dbl_3'] = _conv_params(keys[5], 48, 48, 9)
    p['w_pool'], p['b_pool'] = _conv_params(keys[6], in_channels, 32, 1)
    p['bn1_scale'], p['bn1_shift'] = _bn_params(keys[7], 48)
    p['bn2_scale'], p['bn2_shift'] = _bn_params(keys[8], 48)
    p['bn3a_scale'], p['bn3a_shift'] = _bn_params(keys[9], 48)
    p['bn3b_scale'], p['bn3b_shift'] = _bn_params(keys[10], 48)
    p['bn4_scale'], p['bn4_shift'] = _bn_params(keys[11], 32)
    return p


# --------------------------- pure-JAX reference ------------------------------

def _ref_forward(x_nchw, p):
    x = jnp.transpose(x_nchw, (0, 2, 3, 1)).astype(jnp.float32)
    H, W = x.shape[1], x.shape[2]

    def c1(x, w, b):
        y = jnp.einsum('nhwc,co->nhwo', x, w, precision=lax.Precision.HIGHEST)
        return y + b.reshape(1, 1, 1, -1)

    def c3(x, w, b):
        xp = jnp.pad(x, ((0, 0), (1, 1), (1, 1), (0, 0)))
        y = 0.0
        for ky in range(3):
            for kx in range(3):
                y = y + jnp.einsum('nhwc,co->nhwo',
                                   xp[:, ky:ky + H, kx:kx + W, :],
                                   w[ky * 3 + kx],
                                   precision=lax.Precision.HIGHEST)
        return y + b.reshape(1, 1, 1, -1)

    def bn(x, s, t):
        return x * s.reshape(1, 1, 1, -1) + t.reshape(1, 1, 1, -1)

    relu = lambda v: jnp.maximum(v, 0.0)

    b1 = relu(bn(c1(x, p['w_1x1'], p['b_1x1']), p['bn1_scale'], p['bn1_shift']))
    t = relu(c1(x, p['w_3x3_1'], p['b_3x3_1']))
    b2 = relu(bn(c3(t, p['w_3x3_2'], p['b_3x3_2']), p['bn2_scale'], p['bn2_shift']))
    t = relu(c1(x, p['w_dbl_1'], p['b_dbl_1']))
    t = relu(bn(c3(t, p['w_dbl_2'], p['b_dbl_2']), p['bn3a_scale'], p['bn3a_shift']))
    b3 = relu(bn(c3(t, p['w_dbl_3'], p['b_dbl_3']), p['bn3b_scale'], p['bn3b_shift']))
    xp = jnp.pad(x, ((0, 0), (1, 1), (1, 1), (0, 0)))
    pool = sum(xp[:, ky:ky + H, kx:kx + W, :]
               for ky in range(3) for kx in range(3)) / 9.0
    b4 = relu(bn(c1(pool, p['w_pool'], p['b_pool']), p['bn4_scale'], p['bn4_shift']))
    out = jnp.concatenate([b1, b2, b3, b4], axis=-1)
    return jnp.transpose(out, (0, 3, 1, 2))


# ----------------------------------- main ------------------------------------

if __name__ == "__main__":
    key = jax.random.PRNGKey(0)
    k_x, k_p = jax.random.split(key)

    N, C_in, H, W = 2, 4, 16, 16
    x = jax.random.normal(k_x, (N, C_in, H, W), jnp.float32)
    params = init_params(k_p, C_in)

    out = jax.jit(tiny_modified_inception)(x, params)
    out = jax.block_until_ready(out)
    assert out.shape == (N, C_OUT, H, W), out.shape

    ref = jax.block_until_ready(_ref_forward(x, params))
    np.testing.assert_allclose(np.asarray(out), np.asarray(ref),
                               rtol=1e-3, atol=1e-3)

    print("KERNEL_OK")
</pallas_src>

<mosaic_0001>
module attributes {stable_mosaic.version = 11 : i64} {
  func.func @_fused_kernel(%arg0: i32, %arg1: memref<1x4x256xf32, #tpu.memory_space<vmem>>, %arg2: memref<144x4xf32, #tpu.memory_space<vmem>>, %arg3: memref<144x1xf32, #tpu.memory_space<vmem>>, %arg4: memref<96x576xf32, #tpu.memory_space<vmem>>, %arg5: memref<96x1xf32, #tpu.memory_space<vmem>>, %arg6: memref<48x432xf32, #tpu.memory_space<vmem>>, %arg7: memref<48x1xf32, #tpu.memory_space<vmem>>, %arg8: memref<32x1xf32, #tpu.memory_space<vmem>>, %arg9: memref<1x176x256xf32, #tpu.memory_space<vmem>>) attributes {dimension_semantics = [#tpu.dimension_semantics<parallel>], iteration_bounds = array<i64: 2>, scalar_prefetch = 0 : i64, scratch_operands = 0 : i64, tpu.core_type = #tpu.core_type<tc>, window_params = [{transform_indices = @transform_0, window_bounds = array<i64: 1, 4, 256>}, {pipeline_mode = #tpu.pipeline_mode<synchronous>, transform_indices = @transform_1, window_bounds = array<i64: 144, 4>}, {pipeline_mode = #tpu.pipeline_mode<synchronous>, transform_indices = @transform_2, window_bounds = array<i64: 144, 1>}, {pipeline_mode = #tpu.pipeline_mode<synchronous>, transform_indices = @transform_3, window_bounds = array<i64: 96, 576>}, {pipeline_mode = #tpu.pipeline_mode<synchronous>, transform_indices = @transform_4, window_bounds = array<i64: 96, 1>}, {pipeline_mode = #tpu.pipeline_mode<synchronous>, transform_indices = @transform_5, window_bounds = array<i64: 48, 432>}, {pipeline_mode = #tpu.pipeline_mode<synchronous>, transform_indices = @transform_6, window_bounds = array<i64: 48, 1>}, {pipeline_mode = #tpu.pipeline_mode<synchronous>, transform_indices = @transform_7, window_bounds = array<i64: 32, 1>}, {transform_indices = @transform_8, window_bounds = array<i64: 1, 176, 256>}]} {
    %0 = tpu.iota {dimensions = array<i32: 1>} : vector<1x256xi32>
    %1 = arith.sitofp %0 : vector<1x256xi32> to vector<1x256xf32>
    %cst = arith.constant 5.000000e-01 : f32
    %2 = vector.broadcast %cst : f32 to vector<1x256xf32>
    %3 = arith.addf %1, %2 : vector<1x256xf32>
    %cst_0 = arith.constant 6.250000e-02 : f32
    %4 = vector.broadcast %cst_0 : f32 to vector<1x256xf32>
    %5 = arith.mulf %3, %4 : vector<1x256xf32>
    %6 = math.floor %5 : vector<1x256xf32>
    %cst_1 = arith.constant 1.600000e+01 : f32
    %7 = vector.broadcast %cst_1 : f32 to vector<1x256xf32>
    %8 = arith.mulf %6, %7 : vector<1x256xf32>
    %9 = arith.subf %1, %8 : vector<1x256xf32>
    %c16_i32 = arith.constant 16 : i32
    %10 = vector.broadcast %c16_i32 : i32 to vector<1x256xi32>
    %11 = arith.cmpi sge, %0, %10 : vector<1x256xi32>
    %cst_2 = arith.constant 5.000000e-01 : f32
    %12 = vector.broadcast %cst_2 : f32 to vector<1x256xf32>
    %13 = arith.cmpf oge, %9, %12 : vector<1x256xf32>
    %14 = arith.andi %11, %13 : vector<1x256xi1>
    %cst_3 = arith.constant 1.000000e+00 : f32
    %cst_4 = arith.constant 0.000000e+00 : f32
    %15 = vector.broadcast %cst_3 : f32 to vector<1x256xf32>
    %16 = vector.broadcast %cst_4 : f32 to vector<1x256xf32>
    %17 = arith.select %14, %15, %16 : vector<1x256xi1>, vector<1x256xf32>
    %c16_i32_5 = arith.constant 16 : i32
    %18 = vector.broadcast %c16_i32_5 : i32 to vector<1x256xi32>
    %19 = arith.cmpi sge, %0, %18 : vector<1x256xi32>
    %cst_6 = arith.constant 1.000000e+00 : f32
    %cst_7 = arith.constant 0.000000e+00 : f32
    %20 = vector.broadcast %cst_6 : f32 to vector<1x256xf32>
    %21 = vector.broadcast %cst_7 : f32 to vector<1x256xf32>
    %22 = arith.select %19, %20, %21 : vector<1x256xi1>, vector<1x256xf32>
    %c16_i32_8 = arith.constant 16 : i32
    %23 = vector.broadcast %c16_i32_8 : i32 to vector<1x256xi32>
    %24 = arith.cmpi sge, %0, %23 : vector<1x256xi32>
    %cst_9 = arith.constant 1.450000e+01 : f32
    %25 = vector.broadcast %cst_9 : f32 to vector<1x256xf32>
    %26 = arith.cmpf ole, %9, %25 : vector<1x256xf32>
    %27 = arith.andi %24, %26 : vector<1x256xi1>
    %cst_10 = arith.constant 1.000000e+00 : f32
    %cst_11 = arith.constant 0.000000e+00 : f32
    %28 = vector.broadcast %cst_10 : f32 to vector<1x256xf32>
    %29 = vector.broadcast %cst_11 : f32 to vector<1x256xf32>
    %30 = arith.select %27, %28, %29 : vector<1x256xi1>, vector<1x256xf32>
    %cst_12 = arith.constant 5.000000e-01 : f32
    %31 = vector.broadcast %cst_12 : f32 to vector<1x256xf32>
    %32 = arith.cmpf oge, %9, %31 : vector<1x256xf32>
    %cst_13 = arith.constant 1.000000e+00 : f32
    %cst_14 = arith.constant 0.000000e+00 : f32
    %33 = vector.broadcast %cst_13 : f32 to vector<1x256xf32>
    %34 = vector.broadcast %cst_14 : f32 to vector<1x256xf32>
    %35 = arith.select %32, %33, %34 : vector<1x256xi1>, vector<1x256xf32>
    %cst_15 = arith.constant 1.450000e+01 : f32
    %36 = vector.broadcast %cst_15 : f32 to vector<1x256xf32>
    %37 = arith.cmpf ole, %9, %36 : vector<1x256xf32>
    %cst_16 = arith.constant 1.000000e+00 : f32
    %cst_17 = arith.constant 0.000000e+00 : f32
    %38 = vector.broadcast %cst_16 : f32 to vector<1x256xf32>
    %39 = vector.broadcast %cst_17 : f32 to vector<1x256xf32>
    %40 = arith.select %37, %38, %39 : vector<1x256xi1>, vector<1x256xf32>
    %c240_i32 = arith.constant 240 : i32
    %41 = vector.broadcast %c240_i32 : i32 to vector<1x256xi32>
    %42 = arith.cmpi slt, %0, %41 : vector<1x256xi32>
    %cst_18 = arith.constant 5.000000e-01 : f32
    %43 = vector.broadcast %cst_18 : f32 to vector<1x256xf32>
    %44 = arith.cmpf oge, %9, %43 : vector<1x256xf32>
    %45 = arith.andi %42, %44 : vector<1x256xi1>
    %cst_19 = arith.constant 1.000000e+00 : f32
    %cst_20 = arith.constant 0.000000e+00 : f32
    %46 = vector.broadcast %cst_19 : f32 to vector<1x256xf32>
    %47 = vector.broadcast %cst_20 : f32 to vector<1x256xf32>
    %48 = arith.select %45, %46, %47 : vector<1x256xi1>, vector<1x256xf32>
    %c240_i32_21 = arith.constant 240 : i32
    %49 = vector.broadcast %c240_i32_21 : i32 to vector<1x256xi32>
    %50 = arith.cmpi slt, %0, %49 : vector<1x256xi32>
    %cst_22 = arith.constant 1.000000e+00 : f32
    %cst_23 = arith.constant 0.000000e+00 : f32
    %51 = vector.broadcast %cst_22 : f32 to vector<1x256xf32>
    %52 = vector.broadcast %cst_23 : f32 to vector<1x256xf32>
    %53 = arith.select %50, %51, %52 : vector<1x256xi1>, vector<1x256xf32>
    %c240_i32_24 = arith.constant 240 : i32
    %54 = vector.broadcast %c240_i32_24 : i32 to vector<1x256xi32>
    %55 = arith.cmpi slt, %0, %54 : vector<1x256xi32>
    %cst_25 = arith.constant 1.450000e+01 : f32
    %56 = vector.broadcast %cst_25 : f32 to vector<1x256xf32>
    %57 = arith.cmpf ole, %9, %56 : vector<1x256xf32>
    %58 = arith.andi %55, %57 : vector<1x256xi1>
    %cst_26 = arith.constant 1.000000e+00 : f32
    %cst_27 = arith.constant 0.000000e+00 : f32
    %59 = vector.broadcast %cst_26 : f32 to vector<1x256xf32>
    %60 = vector.broadcast %cst_27 : f32 to vector<1x256xf32>
    %61 = arith.select %58, %59, %60 : vector<1x256xi1>, vector<1x256xf32>
    %c0 = arith.constant 0 : index
    %c0_28 = arith.constant 0 : index
    %62 = vector.load %arg2[%c0, %c0_28] : memref<144x4xf32, #tpu.memory_space<vmem>>, vector<144x4xf32>
    %c0_29 = arith.constant 0 : index
    %c0_30 = arith.constant 0 : index
    %c0_31 = arith.constant 0 : index
    %63 = vector.load %arg1[%c0_29, %c0_30, %c0_31] : memref<1x4x256xf32, #tpu.memory_space<vmem>>, vector<1x4x256xf32>
    %64 = vector.shape_cast %63 : vector<1x4x256xf32> to vector<4x256xf32>
    %cst_32 = arith.constant dense<0.000000e+00> : vector<144x256xf32>
    %65 = tpu.matmul %62, %64, %cst_32 {dimension_numbers = #tpu.dot_dimension_numbers<[1], [0], [0], [1], [0, 0, 1, 1], [], []>} : vector<144x4xf32>, vector<4x256xf32>, vector<144x256xf32> -> vector<144x256xf32>
    %c0_33 = arith.constant 0 : index
    %c0_34 = arith.constant 0 : index
    %66 = vector.load %arg3[%c0_33, %c0_34] : memref<144x1xf32, #tpu.memory_space<vmem>>, vector<144x1xf32>
    %67 = vector.broadcast %66 : vector<144x1xf32> to vector<144x256xf32>
    %68 = arith.addf %65, %67 : vector<144x256xf32>
    %69 = vector.extract_strided_slice %68 {offsets = [0, 0], sizes = [48, 256], strides = [1, 1]} : vector<144x256xf32> to vector<48x256xf32>
    %cst_35 = arith.constant 0.000000e+00 : f32
    %70 = vector.broadcast %cst_35 : f32 to vector<48x256xf32>
    %71 = arith.maximumf %69, %70 : vector<48x256xf32>
    %c0_36 = arith.constant 0 : index
    %c0_37 = arith.constant 0 : index
    %c0_38 = arith.constant 0 : index
    %72 = vector.load %arg9[%c0_36, %c0_37, %c0_38] : memref<1x176x256xf32, #tpu.memory_space<vmem>>, vector<1x48x256xf32>
    %73 = vector.shape_cast %72 : vector<1x48x256xf32> to vector<48x256xf32>
    %74 = vector.shape_cast %71 : vector<48x256xf32> to vector<1x48x256xf32>
    tpu.vector_store %arg9[%c0_36, %c0_37, %c0_38], %74 {strides = array<i32>} : memref<1x176x256xf32, #tpu.memory_space<vmem>>, vector<1x48x256xf32>,
    %75 = vector.extract_strided_slice %68 {offsets = [48, 0], sizes = [64, 256], strides = [1, 1]} : vector<144x256xf32> to vector<64x256xf32>
    %cst_39 = arith.constant 0.000000e+00 : f32
    %76 = vector.broadcast %cst_39 : f32 to vector<64x256xf32>
    %77 = arith.maximumf %75, %76 : vector<64x256xf32>
    %78 = vector.extract_strided_slice %68 {offsets = [112, 0], sizes = [32, 256], strides = [1, 1]} : vector<144x256xf32> to vector<32x256xf32>
    %79 = tpu.concatenate %77, %78 in 0 : vector<64x256xf32>, vector<32x256xf32> -> vector<96x256xf32>
    %c17_i32 = arith.constant 17 : i32
    %80 = tpu.dynamic_rotate %79 by %c17_i32 dim 1 : vector<96x256xf32>, i32 -> vector<96x256xf32>
    %81 = vector.broadcast %17 : vector<1x256xf32> to vector<96x256xf32>
    %82 = arith.mulf %80, %81 : vector<96x256xf32>
    %c16_i32_40 = arith.constant 16 : i32
    %83 = tpu.dynamic_rotate %79 by %c16_i32_40 dim 1 : vector<96x256xf32>, i32 -> vector<96x256xf32>
    %84 = vector.broadcast %22 : vector<1x256xf32> to vector<96x256xf32>
    %85 = arith.mulf %83, %84 : vector<96x256xf32>
    %c15_i32 = arith.constant 15 : i32
    %86 = tpu.dynamic_rotate %79 by %c15_i32 dim 1 : vector<96x256xf32>, i32 -> vector<96x256xf32>
    %87 = vector.broadcast %30 : vector<1x256xf32> to vector<96x256xf32>
    %88 = arith.mulf %86, %87 : vector<96x256xf32>
    %c1_i32 = arith.constant 1 : i32
    %89 = tpu.dynamic_rotate %79 by %c1_i32 dim 1 : vector<96x256xf32>, i32 -> vector<96x256xf32>
    %90 = vector.broadcast %35 : vector<1x256xf32> to vector<96x256xf32>
    %91 = arith.mulf %89, %90 : vector<96x256xf32>
    %c255_i32 = arith.constant 255 : i32
    %92 = tpu.dynamic_rotate %79 by %c255_i32 dim 1 : vector<96x256xf32>, i32 -> vector<96x256xf32>
    %93 = vector.broadcast %40 : vector<1x256xf32> to vector<96x256xf32>
    %94 = arith.mulf %92, %93 : vector<96x256xf32>
    %c241_i32 = arith.constant 241 : i32
    %95 = tpu.dynamic_rotate %79 by %c241_i32 dim 1 : vector<96x256xf32>, i32 -> vector<96x256xf32>
    %96 = vector.broadcast %48 : vector<1x256xf32> to vector<96x256xf32>
    %97 = arith.mulf %95, %96 : vector<96x256xf32>
    %c240_i32_41 = arith.constant 240 : i32
    %98 = tpu.dynamic_rotate %79 by %c240_i32_41 dim 1 : vector<96x256xf32>, i32 -> vector<96x256xf32>
    %99 = vector.broadcast %53 : vector<1x256xf32> to vector<96x256xf32>
    %100 = arith.mulf %98, %99 : vector<96x256xf32>
    %c239_i32 = arith.constant 239 : i32
    %101 = tpu.dynamic_rotate %79 by %c239_i32 dim 1 : vector<96x256xf32>, i32 -> vector<96x256xf32>
    %102 = vector.broadcast %61 : vector<1x256xf32> to vector<96x256xf32>
    %103 = arith.mulf %101, %102 : vector<96x256xf32>
    %104 = vector.extract_strided_slice %82 {offsets = [0, 0], sizes = [64, 256], strides = [1, 1]} : vector<96x256xf32> to vector<64x256xf32>
    %105 = vector.extract_strided_slice %85 {offsets = [0, 0], sizes = [64, 256], strides = [1, 1]} : vector<96x256xf32> to vector<64x256xf32>
    %106 = vector.extract_strided_slice %88 {offsets = [0, 0], sizes = [64, 256], strides = [1, 1]} : vector<96x256xf32> to vector<64x256xf32>
    %107 = vector.extract_strided_slice %91 {offsets = [0, 0], sizes = [64, 256], strides = [1, 1]} : vector<96x256xf32> to vector<64x256xf32>
    %108 = vector.extract_strided_slice %79 {offsets = [0, 0], sizes = [64, 256], strides = [1, 1]} : vector<96x256xf32> to vector<64x256xf32>
    %109 = vector.extract_strided_slice %94 {offsets = [0, 0], sizes = [64, 256], strides = [1, 1]} : vector<96x256xf32> to vector<64x256xf32>
    %110 = vector.extract_strided_slice %97 {offsets = [0, 0], sizes = [64, 256], strides = [1, 1]} : vector<96x256xf32> to vector<64x256xf32>
    %111 = vector.extract_strided_slice %100 {offsets = [0, 0], sizes = [64, 256], strides = [1, 1]} : vector<96x256xf32> to vector<64x256xf32>
    %112 = vector.extract_strided_slice %103 {offsets = [0, 0], sizes = [64, 256], strides = [1, 1]} : vector<96x256xf32> to vector<64x256xf32>
    %113 = tpu.concatenate %104, %105, %106, %107, %108, %109, %110, %111, %112 in 0 : vector<64x256xf32>, vector<64x256xf32>, vector<64x256xf32>, vector<64x256xf32>, vector<64x256xf32>, vector<64x256xf32>, vector<64x256xf32>, vector<64x256xf32>, vector<64x256xf32> -> vector<576x256xf32>
    %c0_42 = arith.constant 0 : index
    %c0_43 = arith.constant 0 : index
    %114 = vector.load %arg4[%c0_42, %c0_43] : memref<96x576xf32, #tpu.memory_space<vmem>>, vector<96x576xf32>
    %cst_44 = arith.constant dense<0.000000e+00> : vector<96x256xf32>
    %115 = tpu.matmul %114, %113, %cst_44 {dimension_numbers = #tpu.dot_dimension_numbers<[1], [0], [0], [1], [0, 0, 1, 1], [], []>} : vector<96x576xf32>, vector<576x256xf32>, vector<96x256xf32> -> vector<96x256xf32>
    %c0_45 = arith.constant 0 : index
    %c0_46 = arith.constant 0 : index
    %116 = vector.load %arg5[%c0_45, %c0_46] : memref<96x1xf32, #tpu.memory_space<vmem>>, vector<96x1xf32>
    %117 = vector.broadcast %116 : vector<96x1xf32> to vector<96x256xf32>
    %118 = arith.addf %115, %117 : vector<96x256xf32>
    %119 = vector.extract_strided_slice %118 {offsets = [0, 0], sizes = [48, 256], strides = [1, 1]} : vector<96x256xf32> to vector<48x256xf32>
    %cst_47 = arith.constant 0.000000e+00 : f32
    %120 = vector.broadcast %cst_47 : f32 to vector<48x256xf32>
    %121 = arith.maximumf %119, %120 : vector<48x256xf32>
    %c0_48 = arith.constant 0 : index
    %c48 = arith.constant 48 : index
    %c0_49 = arith.constant 0 : index
    %122 = vector.load %arg9[%c0_48, %c48, %c0_49] : memref<1x176x256xf32, #tpu.memory_space<vmem>>, vector<1x48x256xf32>
    %123 = vector.shape_cast %122 : vector<1x48x256xf32> to vector<48x256xf32>
    %124 = vector.shape_cast %121 : vector<48x256xf32> to vector<1x48x256xf32>
    tpu.vector_store %arg9[%c0_48, %c48, %c0_49], %124 {strides = array<i32>} : memref<1x176x256xf32, #tpu.memory_space<vmem>>, vector<1x48x256xf32>,
    %125 = vector.extract_strided_slice %118 {offsets = [48, 0], sizes = [48, 256], strides = [1, 1]} : vector<96x256xf32> to vector<48x256xf32>
    %cst_50 = arith.constant 0.000000e+00 : f32
    %126 = vector.broadcast %cst_50 : f32 to vector<48x256xf32>
    %127 = arith.maximumf %125, %126 : vector<48x256xf32>
    %c17_i32_51 = arith.constant 17 : i32
    %128 = tpu.dynamic_rotate %127 by %c17_i32_51 dim 1 : vector<48x256xf32>, i32 -> vector<48x256xf32>
    %129 = vector.broadcast %17 : vector<1x256xf32> to vector<48x256xf32>
    %130 = arith.mulf %128, %129 : vector<48x256xf32>
    %c16_i32_52 = arith.constant 16 : i32
    %131 = tpu.dynamic_rotate %127 by %c16_i32_52 dim 1 : vector<48x256xf32>, i32 -> vector<48x256xf32>
    %132 = vector.broadcast %22 : vector<1x256xf32> to vector<48x256xf32>
    %133 = arith.mulf %131, %132 : vector<48x256xf32>
    %c15_i32_53 = arith.constant 15 : i32
    %134 = tpu.dynamic_rotate %127 by %c15_i32_53 dim 1 : vector<48x256xf32>, i32 -> vector<48x256xf32>
    %135 = vector.broadcast %30 : vector<1x256xf32> to vector<48x256xf32>
    %136 = arith.mulf %134, %135 : vector<48x256xf32>
    %c1_i32_54 = arith.constant 1 : i32
    %137 = tpu.dynamic_rotate %127 by %c1_i32_54 dim 1 : vector<48x256xf32>, i32 -> vector<48x256xf32>
    %138 = vector.broadcast %35 : vector<1x256xf32> to vector<48x256xf32>
    %139 = arith.mulf %137, %138 : vector<48x256xf32>
    %c255_i32_55 = arith.constant 255 : i32
    %140 = tpu.dynamic_rotate %127 by %c255_i32_55 dim 1 : vector<48x256xf32>, i32 -> vector<48x256xf32>
    %141 = vector.broadcast %40 : vector<1x256xf32> to vector<48x256xf32>
    %142 = arith.mulf %140, %141 : vector<48x256xf32>
    %c241_i32_56 = arith.constant 241 : i32
    %143 = tpu.dynamic_rotate %127 by %c241_i32_56 dim 1 : vector<48x256xf32>, i32 -> vector<48x256xf32>
    %144 = vector.broadcast %48 : vector<1x256xf32> to vector<48x256xf32>
    %145 = arith.mulf %143, %144 : vector<48x256xf32>
    %c240_i32_57 = arith.constant 240 : i32
    %146 = tpu.dynamic_rotate %127 by %c240_i32_57 dim 1 : vector<48x256xf32>, i32 -> vector<48x256xf32>
    %147 = vector.broadcast %53 : vector<1x256xf32> to vector<48x256xf32>
    %148 = arith.mulf %146, %147 : vector<48x256xf32>
    %c239_i32_58 = arith.constant 239 : i32
    %149 = tpu.dynamic_rotate %127 by %c239_i32_58 dim 1 : vector<48x256xf32>, i32 -> vector<48x256xf32>
    %150 = vector.broadcast %61 : vector<1x256xf32> to vector<48x256xf32>
    %151 = arith.mulf %149, %150 : vector<48x256xf32>
    %152 = tpu.concatenate %130, %133, %136, %139, %127, %142, %145, %148, %151 in 0 : vector<48x256xf32>, vector<48x256xf32>, vector<48x256xf32>, vector<48x256xf32>, vector<48x256xf32>, vector<48x256xf32>, vector<48x256xf32>, vector<48x256xf32>, vector<48x256xf32> -> vector<432x256xf32>
    %c0_59 = arith.constant 0 : index
    %c0_60 = arith.constant 0 : index
    %153 = vector.load %arg6[%c0_59, %c0_60] : memref<48x432xf32, #tpu.memory_space<vmem>>, vector<48x432xf32>
    %cst_61 = arith.constant dense<0.000000e+00> : vector<48x256xf32>
    %154 = tpu.matmul %153, %152, %cst_61 {dimension_numbers = #tpu.dot_dimension_numbers<[1], [0], [0], [1], [0, 0, 1, 1], [], []>} : vector<48x432xf32>, vector<432x256xf32>, vector<48x256xf32> -> vector<48x256xf32>
    %c0_62 = arith.constant 0 : index
    %c0_63 = arith.constant 0 : index
    %155 = vector.load %arg7[%c0_62, %c0_63] : memref<48x1xf32, #tpu.memory_space<vmem>>, vector<48x1xf32>
    %156 = vector.broadcast %155 : vector<48x1xf32> to vector<48x256xf32>
    %157 = arith.addf %154, %156 : vector<48x256xf32>
    %cst_64 = arith.constant 0.000000e+00 : f32
    %158 = vector.broadcast %cst_64 : f32 to vector<48x256xf32>
    %159 = arith.maximumf %157, %158 : vector<48x256xf32>
    %c0_65 = arith.constant 0 : index
    %c96 = arith.constant 96 : index
    %c0_66 = arith.constant 0 : index
    %160 = vector.load %arg9[%c0_65, %c96, %c0_66] : memref<1x176x256xf32, #tpu.memory_space<vmem>>, vector<1x48x256xf32>
    %161 = vector.shape_cast %160 : vector<1x48x256xf32> to vector<48x256xf32>
    %162 = vector.shape_cast %159 : vector<48x256xf32> to vector<1x48x256xf32>
    tpu.vector_store %arg9[%c0_65, %c96, %c0_66], %162 {strides = array<i32>} : memref<1x176x256xf32, #tpu.memory_space<vmem>>, vector<1x48x256xf32>,
    %163 = vector.extract_strided_slice %82 {offsets = [64, 0], sizes = [32, 256], strides = [1, 1]} : vector<96x256xf32> to vector<32x256xf32>
    %164 = vector.extract_strided_slice %85 {offsets = [64, 0], sizes = [32, 256], strides = [1, 1]} : vector<96x256xf32> to vector<32x256xf32>
    %165 = arith.addf %163, %164 : vector<32x256xf32>
    %166 = vector.extract_strided_slice %88 {offsets = [64, 0], sizes = [32, 256], strides = [1, 1]} : vector<96x256xf32> to vector<32x256xf32>
    %167 = arith.addf %165, %166 : vector<32x256xf32>
    %168 = vector.extract_strided_slice %91 {offsets = [64, 0], sizes = [32, 256], strides = [1, 1]} : vector<96x256xf32> to vector<32x256xf32>
    %169 = arith.addf %167, %168 : vector<32x256xf32>
    %170 = vector.extract_strided_slice %79 {offsets = [64, 0], sizes = [32, 256], strides = [1, 1]} : vector<96x256xf32> to vector<32x256xf32>
    %171 = arith.addf %169, %170 : vector<32x256xf32>
    %172 = vector.extract_strided_slice %94 {offsets = [64, 0], sizes = [32, 256], strides = [1, 1]} : vector<96x256xf32> to vector<32x256xf32>
    %173 = arith.addf %171, %172 : vector<32x256xf32>
    %174 = vector.extract_strided_slice %97 {offsets = [64, 0], sizes = [32, 256], strides = [1, 1]} : vector<96x256xf32> to vector<32x256xf32>
    %175 = arith.addf %173, %174 : vector<32x256xf32>
    %176 = vector.extract_strided_slice %100 {offsets = [64, 0], sizes = [32, 256], strides = [1, 1]} : vector<96x256xf32> to vector<32x256xf32>
    %177 = arith.addf %175, %176 : vector<32x256xf32>
    %178 = vector.extract_strided_slice %103 {offsets = [64, 0], sizes = [32, 256], strides = [1, 1]} : vector<96x256xf32> to vector<32x256xf32>
    %179 = arith.addf %177, %178 : vector<32x256xf32>
    %cst_67 = arith.constant 0.111111112 : f32
    %180 = vector.broadcast %cst_67 : f32 to vector<32x256xf32>
    %181 = arith.mulf %179, %180 : vector<32x256xf32>
    %c0_68 = arith.constant 0 : index
    %c0_69 = arith.constant 0 : index
    %182 = vector.load %arg8[%c0_68, %c0_69] : memref<32x1xf32, #tpu.memory_space<vmem>>, vector<32x1xf32>
    %183 = vector.broadcast %182 : vector<32x1xf32> to vector<32x256xf32>
    %184 = arith.addf %181, %183 : vector<32x256xf32>
    %cst_70 = arith.constant 0.000000e+00 : f32
    %185 = vector.broadcast %cst_70 : f32 to vector<32x256xf32>
    %186 = arith.maximumf %184, %185 : vector<32x256xf32>
    %c0_71 = arith.constant 0 : index
    %c144 = arith.constant 144 : index
    %c0_72 = arith.constant 0 : index
    %187 = vector.load %arg9[%c0_71, %c144, %c0_72] : memref<1x176x256xf32, #tpu.memory_space<vmem>>, vector<1x32x256xf32>
    %188 = vector.shape_cast %187 : vector<1x32x256xf32> to vector<32x256xf32>
    %189 = vector.shape_cast %186 : vector<32x256xf32> to vector<1x32x256xf32>
    tpu.vector_store %arg9[%c0_71, %c144, %c0_72], %189 {strides = array<i32>} : memref<1x176x256xf32, #tpu.memory_space<vmem>>, vector<1x32x256xf32>,
    return
  }
  func.func @transform_0(%arg0: i32) -> (i32, i32, i32) {
    %c0_i32 = arith.constant 0 : i32
    %c0_i32_0 = arith.constant 0 : i32
    %c0_i32_1 = arith.constant 0 : i32
    return %arg0, %c0_i32, %c0_i32_0 : i32, i32, i32
  }
  func.func @transform_1(%arg0: i32) -> (i32, i32) {
    %c0_i32 = arith.constant 0 : i32
    %c0_i32_0 = arith.constant 0 : i32
    %c0_i32_1 = arith.constant 0 : i32
    return %c0_i32, %c0_i32_0 : i32, i32
  }
  func.func @transform_2(%arg0: i32) -> (i32, i32) {
    %c0_i32 = arith.constant 0 : i32
    %c0_i32_0 = arith.constant 0 : i32
    %c0_i32_1 = arith.constant 0 : i32
    return %c0_i32, %c0_i32_0 : i32, i32
  }
  func.func @transform_3(%arg0: i32) -> (i32, i32) {
    %c0_i32 = arith.constant 0 : i32
    %c0_i32_0 = arith.constant 0 : i32
    %c0_i32_1 = arith.constant 0 : i32
    return %c0_i32, %c0_i32_0 : i32, i32
  }
  func.func @transform_4(%arg0: i32) -> (i32, i32) {
    %c0_i32 = arith.constant 0 : i32
    %c0_i32_0 = arith.constant 0 : i32
    %c0_i32_1 = arith.constant 0 : i32
    return %c0_i32, %c0_i32_0 : i32, i32
  }
  func.func @transform_5(%arg0: i32) -> (i32, i32) {
    %c0_i32 = arith.constant 0 : i32
    %c0_i32_0 = arith.constant 0 : i32
    %c0_i32_1 = arith.constant 0 : i32
    return %c0_i32, %c0_i32_0 : i32, i32
  }
  func.func @transform_6(%arg0: i32) -> (i32, i32) {
    %c0_i32 = arith.constant 0 : i32
    %c0_i32_0 = arith.constant 0 : i32
    %c0_i32_1 = arith.constant 0 : i32
    return %c0_i32, %c0_i32_0 : i32, i32
  }
  func.func @transform_7(%arg0: i32) -> (i32, i32) {
    %c0_i32 = arith.constant 0 : i32
    %c0_i32_0 = arith.constant 0 : i32
    %c0_i32_1 = arith.constant 0 : i32
    return %c0_i32, %c0_i32_0 : i32, i32
  }
  func.func @transform_8(%arg0: i32) -> (i32, i32, i32) {
    %c0_i32 = arith.constant 0 : i32
    %c0_i32_0 = arith.constant 0 : i32
    %c0_i32_1 = arith.constant 0 : i32
    return %arg0, %c0_i32, %c0_i32_0 : i32, i32, i32
  }
}

</mosaic_0001>

<bundles_post_ra>
// kernel: tiny_modified_inception.1
= control target key start
LH: loop header
LB: loop body
LE: loop exit
PB: predicated region body
PF: predicated region fallthrough
CT: control target
= control target key end

     0   :  { %s3493_s27 = smov 0   ;;  %s6593_s0 = inlined_call_operand.vmem [shape: f32[2,4,256], index: 0, kind: input, shape index: {}]   ;;  %s6594_s1 = inlined_call_operand.vmem [shape: f32[144,4], index: 1, kind: input, shape index: {}]   ;;  %s6595_s2 = inlined_call_operand.vmem [shape: f32[144,1], index: 2, kind: input, shape index: {}]   ;;  %s6596_s3 = inlined_call_operand.vmem [shape: f32[96,576], index: 3, kind: input, shape index: {}]   ;;  %s6597_s4 = inlined_call_operand.vmem [shape: f32[96,1], index: 4, kind: input, shape index: {}]   ;;  %s6598_s5 = inlined_call_operand.vmem [shape: f32[48,432], index: 5, kind: input, shape index: {}]   ;;  %s6599_s6 = inlined_call_operand.vmem [shape: f32[48,1], index: 6, kind: input, shape index: {}]   ;;  %s6600_s7 = inlined_call_operand.vmem [shape: f32[32,1], index: 7, kind: input, shape index: {}]   ;;  %s6601_s8 = inlined_call_operand.vmem [shape: f32[2,176,256], index: 8, kind: output, shape index: {}]  }
   0x1 LB: > { %s3011_s28 = sadd.s32 4294967295, %s3436_s27   ;;  %p3015_p0 = scmp.ge.s32.totalorder %s3436_s27, 1  ;;  %s3436_s27 = sphi %s3493_s27, %s18_s27  }
   0x2   : > { %p262_p1 = scmp.lt.s32.totalorder %s3436_s27, 3 }
   0x4   : > { %p263_p2 = pnand %p3015_p0, %p262_p1 }
   0x6   : > { %266 = sbr.rel (%p263_p2) target bundleno = 1440 (0x5a0), region = 52 }
   0xd   : > { %p296_p3 = scmp.lt.s32.totalorder %s3011_s28, 1  ;;  %v6602_v0 = vmov 0.0   ;;  %v3439_v1 = vmov 0   ;;  %v378_v2 = vld [vmem:[%s6595_s2 + $0x30] sm:$0xff]  ;;  %vm537_vm0 = vcmask 1043456   ;;  %v380_v4 = vld [vmem:[%s6595_s2 + $0x40] sm:$0xff]  ;;  %v306_v42 = vlaneseq }
   0xe   : > { %606 = vmatprep.mubr.f32.mxu0 %v6602_v0  ;;  %3427 = vset.pattern.permute.xlu0 %v3439_v1  ;;  %v379_v6 = vld [vmem:[%s6595_s2 + $0x38] sm:$0xff]  ;;  %v353_v7 = vld [vmem:[%s6594_s1] sm:$0xff]  ;;  %vm482_vm1 = vcmask 31744   ;;  %v381_v8 = vld [vmem:[%s6595_s2 + $0x48] sm:$0xff]  ;;  %s3440_s15 = smov 127   ;;  %s3441_s16 = smov 113  }
   0xf   : > { %s6903_s28 = smov (!%p296_p3, %s3011_s28), 1  ;;  %3428 = vset.pattern.permute.xlu1 %v3439_v1  ;;  %422 = vperm.xlu0 %3427, %v378_v2   ;;  %v382_v9 = vld [vmem:[%s6595_s2 + $0x50] sm:$0xff]  ;;  %v354_v10 = vld [vmem:[%s6594_s1 + $0x8] sm:$0xff]  ;;  %v383_v11 = vld [vmem:[%s6595_s2 + $0x58] sm:$0xff]  ;;  %v3628_v47 = vand.u32 127, %v306_v42  ;;  %s3442_s17 = smov 17  }
  0x10   : > { %s3059_s29 = sshll.u32 %s6903_s28, 3  ;;  %432 = vperm.xlu1 %3428, %v380_v4   ;;  %v384_v12 = vld [vmem:[%s6595_s2 + $0x60] sm:$0xff]  ;;  %v355_v13 = vld [vmem:[%s6594_s1 + $0x10] sm:$0xff]  ;;  %v385_v14 = vld [vmem:[%s6595_s2 + $0x68] sm:$0xff]  ;;  %s3443_s18 = smov 112  }
  0x11   : > { %s300_s10 = scalar_lea.vmem %s6593_s0, %s3059_s29  ;;  %v356_v15 = vld [vmem:[%s6594_s1 + $0x18] sm:$0xff]  ;;  %v357_v16 = vld [vmem:[%s6594_s1 + $0x20] sm:$0xff]  ;;  %v358_v17 = vld [vmem:[%s6594_s1 + $0x28] sm:$0xff]  ;;  %v3633_v52 = vadd.s32 128, %v3628_v47  ;;  %s3444_s19 = smov 16   ;;  %vm321_vm6 = vcmp.ge.s32.totalorder %v3628_v47, 16 }
  0x12   : > { %v371_v3 = vld [vmem:[%s300_s10] sm:$0xff]  ;;  %v359_v18 = vld [vmem:[%s6594_s1 + $0x30] sm:$0xff]  ;;  %v360_v19 = vld [vmem:[%s6594_s1 + $0x38] sm:$0xff]  ;;  %s3445_s20 = smov 15   ;;  %s3446_s21 = smov 1   ;;  %vm1191_vm9 = vcmp.lt.s32.totalorder %v3628_v47, 127 }
  0x13   : > { %v481_v5 = vcombine.high %v371_v3, %v371_v3  ;;  %427 = vperm.xlu0 %3427, %v379_v6   ;;  %v361_v20 = vld [vmem:[%s6594_s1 + $0x40] sm:$0xff]  ;;  %v362_v21 = vld [vmem:[%s6594_s1 + $0x48] sm:$0xff]  ;;  %v363_v22 = vld [vmem:[%s6594_s1 + $0x50] sm:$0xff]  ;;  %v310_v57 = vcvt.s32.f32 %v3633_v52  ;;  %vm342_vm3 = vcmp.lt.s32.totalorder %v3633_v52, 240  ;;  %vm803_vm12 = vcmp.lt.s32.totalorder %v3628_v47, 17  ;;  %s3447_s10 = smov 111  }
  0x14   : > { %437 = vperm.xlu1 %3428, %v381_v8   ;;  %v364_v23 = vld [vmem:[%s6594_s1 + $0x58] sm:$0xff]  ;;  %v365_v24 = vld [vmem:[%s6594_s1 + $0x60] sm:$0xff]  ;;  %v366_v25 = vld [vmem:[%s6594_s1 + $0x68] sm:$0xff]  ;;  %vm1288_vm13 = vcmp.lt.s32.totalorder %v3628_v47, 113  ;;  %vm1385_vm14 = vcmp.lt.s32.totalorder %v3628_v47, 112  ;;  %vm900_vm15 = vcmp.lt.s32.totalorder %v3628_v47, 16 }
  0x15   : > { %3019 = vmatprep.subr.msk.mxu0 %vm537_vm0, %v481_v5  ;;  %v312_v62 = vadd.f32 0.5, %v310_v57  ;;  %s3408_s30 = smul.u32 352, %s6903_s28 }
  0x16   : > { %3020 = vmatpush1.msk.msra.mxu0 %vm537_vm0, %v371_v3 }
  0x17   : > { %3021 = vmatmul.mubr.msk.f32.vlgmr.msra.gmra.mrb[0].mxu0 %vm482_vm1, %v353_v7  ;;  %442 = vperm.xlu0 %3427, %v382_v9   ;;  %v314_v3 = vmul.f32 0.0625, %v312_v62  ;;  %s4898_s24 = scalar_lea.vmem %s6601_s8, %s3408_s30 }
  0x18   : > { %612 = vmatprep.mubr.f32.mxu0 %v6602_v0  ;;  %447 = vperm.xlu1 %3428, %v383_v11   ;;  %v309_v11 = vcvt.s32.f32 %v3628_v47 }
  0x19   : > { %v316_v9 = vfloor.f32 %v314_v3 }
  0x1b   : > { %3022 = vmatmul.mubr.msk.f32.gmra.mrb[2].mxu0 %vm482_vm1, %v354_v10  ;;  %452 = vperm.xlu0 %3427, %v384_v12  }
  0x1c   : > { %618 = vmatprep.mubr.f32.mxu0 %v6602_v0  ;;  %457 = vperm.xlu1 %3428, %v385_v14  }
  0x1f   : > { %3023 = vmatmul.mubr.msk.f32.gmra.mrb[4].mxu0 %vm482_vm1, %v355_v13 }
  0x20   : > { %624 = vmatprep.mubr.f32.mxu0 %v6602_v0 }
  0x23   : > { %3024 = vmatmul.mubr.msk.f32.gmra.mrb[6].mxu0 %vm482_vm1, %v356_v15  ;;  %v318_v15 = vmul.f32 16.0, %v316_v9 }
  0x24   : > { %630 = vmatprep.mubr.f32.mxu0 %v6602_v0 }
  0x27   : > { %3025 = vmatmul.mubr.msk.f32.gmra.mrb[8].mxu0 %vm482_vm1, %v357_v16 }
  0x28   : > { %636 = vmatprep.mubr.f32.mxu0 %v6602_v0 }
  0x2b   : > { %3026 = vmatmul.mubr.msk.f32.gmra.mrb[10].mxu0 %vm482_vm1, %v358_v17 }
  0x2c   : > { %642 = vmatprep.mubr.f32.mxu0 %v6602_v0 }
  0x2f   : > { %3027 = vmatmul.mubr.msk.f32.gmra.mrb[12].mxu0 %vm482_vm1, %v359_v18 }
  0x30   : > { %648 = vmatprep.mubr.f32.mxu0 %v6602_v0 }
  0x33   : > { %3028 = vmatmul.mubr.msk.f32.gmra.mrb[14].mxu0 %vm482_vm1, %v360_v19 }
  0x34   : > { %654 = vmatprep.mubr.f32.mxu0 %v6602_v0 }
  0x37   : > { %3029 = vmatmul.mubr.msk.f32.gmra.mrb[16].mxu0 %vm482_vm1, %v361_v20  ;;  %v311_v20 = vadd.f32 0.5, %v309_v11 }
  0x38   : > { %660 = vmatprep.mubr.f32.mxu0 %v6602_v0 }
  0x3b   : > { %3030 = vmatmul.mubr.msk.f32.gmra.mrb[18].mxu0 %vm482_vm1, %v362_v21 }
  0x3c   : > { %666 = vmatprep.mubr.f32.mxu0 %v6602_v0 }
  0x3f   : > { %3031 = vmatmul.mubr.msk.f32.gmra.mrb[20].mxu0 %vm482_vm1, %v363_v22 }
  0x40   : > { %672 = vmatprep.mubr.f32.mxu0 %v6602_v0 }
  0x43   : > { %3032 = vmatmul.mubr.msk.f32.gmra.mrb[22].mxu0 %vm482_vm1, %v364_v23 }
  0x44   : > { %678 = vmatprep.mubr.f32.mxu0 %v6602_v0 }
  0x47   : > { %3033 = vmatmul.mubr.msk.f32.gmra.mrb[24].mxu0 %vm482_vm1, %v365_v24 }
  0x48   : > { %684 = vmatprep.mubr.f32.mxu0 %v6602_v0 }
  0x4b   : > { %3034 = vmatmul.mubr.msk.f32.gmra.mrb[26].mxu0 %vm482_vm1, %v366_v25  ;;  %v3675_v25 = vsub.f32 %v310_v57, %v318_v15  ;;  %v367_v15 = vld [vmem:[%s6594_s1 + $0x70] sm:$0xff] }
  0x4c   : > { %690 = vmatprep.mubr.f32.mxu0 %v6602_v0 }
  0x4d   : > { %vm324_vm2 = vcmp.ge.f32.partialorder %v3675_v25, 0.5  ;;  %vm332_vm8 = vcmp.le.f32.partialorder %v3675_v25, 14.5 }
  0x4e   : > { %vm3689_vm4 = vmand %vm342_vm3, %vm324_vm2 }
  0x4f   : > { %3035 = vmatmul.mubr.msk.f32.gmra.mrb[28].mxu0 %vm482_vm1, %v367_v15  ;;  %vm350_vm0 = vmand %vm342_vm3, %vm332_vm8 }
  0x50   : > { %696 = vmatprep.mubr.f32.mxu0 %v6602_v0 }
  0x8e   : > { %v423_v38 = vpop.permute.xlu0 %422 }
  0x8f   : > { %v433_v50 = vpop.permute.xlu1 %432 }
  0x92   : > { %v428_v44 = vpop.permute.xlu0 %427 }
  0x93   : > { %v438_v63 = vpop.permute.xlu1 %437 }
  0x96   : > { %v443_v19 = vpop.permute.xlu0 %442 }
  0x97   : > { %v448_v16 = vpop.permute.xlu1 %447 }
  0xea   : > { %v3602_v26 = vpop.f32.mrb[0].mxu0 }
  0xeb   : > { %6675 = vst [vmem:[#allocation2_spill] sm:$0xff] %v3602_v26  ;;  %v3604_v27 = vpop.f32.mrb[1].mxu0 }
  0xec   : > { %6676 = vst [vmem:[#allocation3_spill] sm:$0xff] %v3604_v27 }
  0xee   : > { %v3606_v28 = vpop.f32.mrb[2].mxu0 }
  0xef   : > { %6677 = vst [vmem:[#allocation4_spill] sm:$0xff] %v3606_v28  ;;  %v3608_v29 = vpop.f32.mrb[3].mxu0 }
  0xf0   : > { %6678 = vst [vmem:[#allocation5_spill] sm:$0xff] %v3608_v29 }
  0xf2   : > { %v3610_v30 = vpop.f32.mrb[4].mxu0 }
  0xf3   : > { %6679 = vst [vmem:[#allocation6_spill] sm:$0xff] %v3610_v30  ;;  %v3612_v31 = vpop.f32.mrb[5].mxu0 }
  0xf4   : > { %6680 = vst [vmem:[#allocation7_spill] sm:$0xff] %v3612_v31 }
  0xf6   : > { %v3614_v32 = vpop.f32.mrb[6].mxu0 }
  0xf7   : > { %6681 = vst [vmem:[#allocation8_spill] sm:$0xff] %v3614_v32  ;;  %v3616_v33 = vpop.f32.mrb[7].mxu0 }
  0xf8   : > { %6682 = vst [vmem:[#allocation9_spill] sm:$0xff] %v3616_v33 }
  0xfa   : > { %v3618_v34 = vpop.f32.mrb[8].mxu0 }
  0xfb   : > { %6683 = vst [vmem:[#allocation10_spill] sm:$0xff] %v3618_v34  ;;  %v3620_v35 = vpop.f32.mrb[9].mxu0 }
  0xfc   : > { %6684 = vst [vmem:[#allocation11_spill] sm:$0xff] %v3620_v35 }
  0xfe   : > { %v3622_v36 = vpop.f32.mrb[10].mxu0 }
  0xff   : > { %6685 = vst [vmem:[#allocation12_spill] sm:$0xff] %v3622_v36  ;;  %v3624_v37 = vpop.f32.mrb[11].mxu0 }
 0x100   : > { %6686 = vst [vmem:[#allocation13_spill] sm:$0xff] %v3624_v37 }
 0x102   : > { %v644_v39 = vpop.f32.mrb[12].mxu0 }
 0x103   : > { %v645_v40 = vadd.f32 %v644_v39, %v423_v38  ;;  %v646_v41 = vpop.f32.mrb[13].mxu0 }
 0x104   : > { %v647_v45 = vadd.f32 %v646_v41, %v423_v38 }
 0x105   : > { %v3626_v43 = vmax.f32 %v645_v40, 0.0  ;;  %v313_v40 = vmul.f32 0.0625, %v311_v20 }
 0x106   : > { %v650_v46 = vpop.f32.mrb[14].mxu0  ;;  %v3637_v54 = vmax.f32 %v647_v45, 0.0 }
 0x107   : > { %v651_v48 = vadd.f32 %v650_v46, %v428_v44  ;;  %v652_v49 = vpop.f32.mrb[15].mxu0  ;;  %1143 = vrot.lane.b32.xlu0 %v3626_v43, %s3440_s15  ;;  %v315_v57 = vfloor.f32 %v313_v40 }
 0x108   : > { %v653_v51 = vadd.f32 %v652_v49, %v428_v44 }
 0x109   : > { %v3635_v53 = vmax.f32 %v651_v48, 0.0 }
 0x10a   : > { %v3639_v55 = vmax.f32 %v653_v51, 0.0  ;;  %v656_v56 = vpop.f32.mrb[16].mxu0 }
 0x10b   : > { %1145 = vrot.lane.b32.xlu1 %v3635_v53, %s3440_s15  ;;  %1240 = vrot.lane.b32.xlu0 %v3626_v43, %s3441_s16  ;;  %v658_v58 = vpop.f32.mrb[17].mxu0  ;;  %v657_v59 = vadd.f32 %v656_v56, %v433_v50  ;;  %v3126_v1 = vpack.c.bf16 %v3635_v53, %v3626_v43  ;;  %v453_v56 = vpop.permute.xlu0 %452 }
 0x10c   : > { %v3124_v60 = vpack.c.bf16 %v3639_v55, %v3637_v54  ;;  %v659_v61 = vadd.f32 %v658_v58, %v433_v50  ;;  %v458_v50 = vpop.permute.xlu1 %457 }
 0x10d   : > { %v3654_v6 = vmax.f32 %v657_v59, 0.0 }
 0x10e   : > { %3125 = vmatprep.subr.bf16.mxu1 %v3124_v60  ;;  %v662_v2 = vpop.f32.mrb[18].mxu0  ;;  %v3656_v7 = vmax.f32 %v659_v61, 0.0 }
 0x10f   : > { %1242 = vrot.lane.b32.xlu1 %v3635_v53, %s3441_s16  ;;  %755 = vrot.lane.b32.xlu0 %v3626_v43, %s3442_s17  ;;  %v664_v4 = vpop.f32.mrb[19].mxu0  ;;  %v663_v5 = vadd.f32 %v662_v2, %v438_v63  ;;  %v317_v2 = vmul.f32 16.0, %v315_v57 }
 0x110   : > { %3127 = vmatpush1.bf16.msra.mxu1 %v3126_v1  ;;  %v665_v8 = vadd.f32 %v664_v4, %v438_v63 }
 0x111   : > { %v3658_v10 = vmax.f32 %v663_v5, 0.0 }
 0x112   : > { %v3661_v12 = vmax.f32 %v665_v8, 0.0  ;;  %v668_v13 = vpop.f32.mrb[20].mxu0 }
 0x113   : > { %v670_v14 = vpop.f32.mrb[21].mxu0  ;;  %757 = vrot.lane.b32.xlu1 %v3635_v53, %s3442_s17  ;;  %1337 = vrot.lane.b32.xlu0 %v3626_v43, %s3443_s18  ;;  %v3130_v18 = vpack.c.bf16 %v3658_v10, %v3654_v6  ;;  %v669_v38 = vadd.f32 %v668_v13, %v443_v19  ;;  %v3721_v13 = vsub.f32 %v309_v11, %v317_v2  ;;  %v6689_v11 = vmov 0 }
 0x114   : > { %v3128_v17 = vpack.c.bf16 %v3661_v12, %v3656_v7  ;;  %v671_v21 = vadd.f32 %v670_v14, %v443_v19 }
 0x115   : > { %v3697_v49 = vmax.f32 %v669_v38, 0.0  ;;  %vm331_vm5 = vcmp.le.f32.partialorder %v3721_v13, 14.5  ;;  %vm323_vm10 = vcmp.ge.f32.partialorder %v3721_v13, 0.5 }
 0x116   : > { %v674_v22 = vpop.f32.mrb[22].mxu0  ;;  %3129 = vmatprep.subr.bf16.mxu1 %v3128_v17  ;;  %v3679_v41 = vmax.f32 %v671_v21, 0.0  ;;  %vm3735_vm7 = vmand %vm321_vm6, %vm331_vm5  ;;  %v369_v17 = vld [vmem:[%s6594_s1 + $0x80] sm:$0xff] }
 0x117   : > { %v675_v23 = vadd.f32 %v674_v22, %v448_v16  ;;  %v676_v24 = vpop.f32.mrb[23].mxu0  ;;  %1339 = vrot.lane.b32.xlu1 %v3635_v53, %s3443_s18  ;;  %852 = vrot.lane.b32.xlu0 %v3626_v43, %s3444_s19  ;;  %v6690_v11 = vsel %vm3735_vm7, 4294967295, %v6689_v11  ;;  %vm325_vm11 = vmand %vm321_vm6, %vm323_vm10 }
 0x118   : > { %v677_v39 = vadd.f32 %v676_v24, %v448_v16  ;;  %3131 = vmatpush1.bf16.msra.mxu1 %v3130_v18  ;;  %6691 = vst [vmem:[#allocation14_spill] sm:$0xff] %v6690_v11  ;;  %v368_v16 = vld [vmem:[%s6594_s1 + $0x78] sm:$0xff]  ;;  %v370_v18 = vld [vmem:[%s6594_s1 + $0x88] sm:$0xff] }
 0x119   : > { %v3681_v42 = vmax.f32 %v675_v23, 0.0  ;;  %3036 = vmatmul.mubr.msk.f32.gmra.mrb[30].mxu0 %vm482_vm1, %v368_v16 }
 0x11a   : > { %v3683_v44 = vmax.f32 %v677_v39, 0.0  ;;  %v680_v45 = vpop.f32.mrb[24].mxu0  ;;  %702 = vmatprep.mubr.f32.mxu0 %v6602_v0 }
 0x11b   : > { %v682_v48 = vpop.f32.mrb[25].mxu0  ;;  %854 = vrot.lane.b32.xlu1 %v3635_v53, %s3444_s19  ;;  %949 = vrot.lane.b32.xlu0 %v3626_v43, %s3445_s20  ;;  %v3134_v60 = vpack.c.bf16 %v3681_v42, %v3697_v49  ;;  %v681_v63 = vadd.f32 %v680_v45, %v453_v56 }
 0x11c   : > { %v3132_v51 = vpack.c.bf16 %v3683_v44, %v3679_v41  ;;  %v683_v58 = vadd.f32 %v682_v48, %v453_v56 }
 0x11d   : > { %v3717_v8 = vmax.f32 %v681_v63, 0.0  ;;  %3037 = vmatmul.mubr.msk.f32.gmra.mrb[32].mxu0 %vm482_vm1, %v369_v17 }
 0x11e   : > { %v686_v59 = vpop.f32.mrb[26].mxu0  ;;  %3133 = vmatprep.subr.bf16.mxu1 %v3132_v51  ;;  %v3707_v3 = vmax.f32 %v683_v58, 0.0  ;;  %708 = vmatprep.mubr.f32.mxu0 %v6602_v0  ;;  %v3895_v58 = vsel %vm332_vm8, 1.0, %v6602_v0 }
 0x11f   : > { %v687_v61 = vadd.f32 %v686_v59, %v458_v50  ;;  %v688_v62 = vpop.f32.mrb[27].mxu0  ;;  %951 = vrot.lane.b32.xlu1 %v3635_v53, %s3445_s20  ;;  %1046 = vrot.lane.b32.xlu0 %v3626_v43, %s3446_s21  ;;  %v3900_v59 = vsel %vm331_vm5, 1.0, %v6602_v0  ;;  %vm2591_vm5 = vcmask 392192  }
 0x120   : > { %v689_v1 = vadd.f32 %v688_v62, %v458_v50  ;;  %3135 = vmatpush1.bf16.msra.mxu1 %v3134_v60  ;;  %6696 = vst [vmem:[#allocation19_spill] sm:$0xff] %v3900_v59 }
 0x121   : > { %v3709_v4 = vmax.f32 %v687_v61, 0.0  ;;  %3038 = vmatmul.mubr.msk.f32.gmra.mrb[34].mxu0 %vm482_vm1, %v370_v18  ;;  %vm1482_vm1 = vcmp.lt.s32.totalorder %v3628_v47, 111 }
 0x122   : > { %v3711_v5 = vmax.f32 %v689_v1, 0.0 }
 0x123   : > { %1048 = vrot.lane.b32.xlu1 %v3635_v53, %s3446_s21  ;;  %1167 = vrot.lane.b32.xlu0 %v3637_v54, %s3440_s15  ;;  %v3138_v14 = vpack.c.bf16 %v3709_v4, %v3717_v8 }
 0x124   : > { %v3136_v9 = vpack.c.bf16 %v3711_v5, %v3707_v3 }
 0x126   : > { %3137 = vmatprep.subr.bf16.mxu1 %v3136_v9 }
 0x127   : > { %1169 = vrot.lane.b32.xlu1 %v3639_v55, %s3440_s15  ;;  %1264 = vrot.lane.b32.xlu0 %v3637_v54, %s3441_s16 }
 0x128   : > { %3139 = vmatpush1.bf16.msra.mxu1 %v3138_v14 }
 0x12b   : > { %1266 = vrot.lane.b32.xlu1 %v3639_v55, %s3441_s16  ;;  %779 = vrot.lane.b32.xlu0 %v3637_v54, %s3442_s17 }
 0x12f   : > { %781 = vrot.lane.b32.xlu1 %v3639_v55, %s3442_s17  ;;  %1361 = vrot.lane.b32.xlu0 %v3637_v54, %s3443_s18 }
 0x133   : > { %1363 = vrot.lane.b32.xlu1 %v3639_v55, %s3443_s18  ;;  %876 = vrot.lane.b32.xlu0 %v3637_v54, %s3444_s19 }
 0x137   : > { %878 = vrot.lane.b32.xlu1 %v3639_v55, %s3444_s19  ;;  %973 = vrot.lane.b32.xlu0 %v3637_v54, %s3445_s20 }
 0x13b   : > { %975 = vrot.lane.b32.xlu1 %v3639_v55, %s3445_s20  ;;  %1147 = vrot.lane.b32.xlu0 %v3654_v6, %s3440_s15 }
 0x13f   : > { %1149 = vrot.lane.b32.xlu1 %v3658_v10, %s3440_s15  ;;  %1244 = vrot.lane.b32.xlu0 %v3654_v6, %s3441_s16 }
 0x143   : > { %1246 = vrot.lane.b32.xlu1 %v3658_v10, %s3441_s16  ;;  %759 = vrot.lane.b32.xlu0 %v3654_v6, %s3442_s17 }
 0x147   : > { %761 = vrot.lane.b32.xlu1 %v3658_v10, %s3442_s17  ;;  %1341 = vrot.lane.b32.xlu0 %v3654_v6, %s3443_s18 }
 0x14b   : > { %1343 = vrot.lane.b32.xlu1 %v3658_v10, %s3443_s18  ;;  %856 = vrot.lane.b32.xlu0 %v3654_v6, %s3444_s19 }
 0x14f   : > { %858 = vrot.lane.b32.xlu1 %v3658_v10, %s3444_s19  ;;  %953 = vrot.lane.b32.xlu0 %v3654_v6, %s3445_s20 }
 0x153   : > { %955 = vrot.lane.b32.xlu1 %v3658_v10, %s3445_s20  ;;  %1171 = vrot.lane.b32.xlu0 %v3656_v7, %s3440_s15 }
 0x157   : > { %1173 = vrot.lane.b32.xlu1 %v3661_v12, %s3440_s15  ;;  %1268 = vrot.lane.b32.xlu0 %v3656_v7, %s3441_s16 }
 0x15b   : > { %1270 = vrot.lane.b32.xlu1 %v3661_v12, %s3441_s16  ;;  %783 = vrot.lane.b32.xlu0 %v3656_v7, %s3442_s17 }
 0x15f   : > { %785 = vrot.lane.b32.xlu1 %v3661_v12, %s3442_s17  ;;  %1365 = vrot.lane.b32.xlu0 %v3656_v7, %s3443_s18 }
 0x163   : > { %1367 = vrot.lane.b32.xlu1 %v3661_v12, %s3443_s18  ;;  %880 = vrot.lane.b32.xlu0 %v3656_v7, %s3444_s19 }
 0x167   : > { %882 = vrot.lane.b32.xlu1 %v3661_v12, %s3444_s19  ;;  %977 = vrot.lane.b32.xlu0 %v3656_v7, %s3445_s20 }
 0x16b   : > { %979 = vrot.lane.b32.xlu1 %v3661_v12, %s3445_s20  ;;  %1151 = vrot.lane.b32.xlu0 %v3697_v49, %s3440_s15 }
 0x16f   : > { %1153 = vrot.lane.b32.xlu1 %v3681_v42, %s3440_s15  ;;  %1248 = vrot.lane.b32.xlu0 %v3697_v49, %s3441_s16 }
 0x173   : > { %1250 = vrot.lane.b32.xlu1 %v3681_v42, %s3441_s16  ;;  %763 = vrot.lane.b32.xlu0 %v3697_v49, %s3442_s17 }
 0x177   : > { %765 = vrot.lane.b32.xlu1 %v3681_v42, %s3442_s17  ;;  %1345 = vrot.lane.b32.xlu0 %v3697_v49, %s3443_s18 }
 0x179   : > { %v1144_v19 = vpop.permute.xlu0 %1143 }
 0x17b   : > { %1347 = vrot.lane.b32.xlu1 %v3681_v42, %s3443_s18  ;;  %860 = vrot.lane.b32.xlu0 %v3697_v49, %s3444_s19 }
 0x17d   : > { %v1146_v20 = vpop.permute.xlu1 %1145  ;;  %v3842_v21 = vpop.permute.xlu0 %1240 }
 0x17f   : > { %862 = vrot.lane.b32.xlu1 %v3681_v42, %s3444_s19  ;;  %957 = vrot.lane.b32.xlu0 %v3697_v49, %s3445_s20 }
 0x181   : > { %v3848_v22 = vpop.permute.xlu1 %1242  ;;  %v756_v23 = vpop.permute.xlu0 %755 }
 0x183   : > { %959 = vrot.lane.b32.xlu1 %v3681_v42, %s3445_s20  ;;  %1175 = vrot.lane.b32.xlu0 %v3679_v41, %s3440_s15 }
 0x185   : > { %v758_v24 = vpop.permute.xlu1 %757  ;;  %v3854_v38 = vpop.permute.xlu0 %1337 }
 0x187   : > { %1177 = vrot.lane.b32.xlu1 %v3683_v44, %s3440_s15  ;;  %1272 = vrot.lane.b32.xlu0 %v3679_v41, %s3441_s16 }
 0x189   : > { %v3860_v39 = vpop.permute.xlu1 %1339  ;;  %v3862_v40 = vpop.permute.xlu0 %852 }
 0x18b   : > { %1274 = vrot.lane.b32.xlu1 %v3683_v44, %s3441_s16  ;;  %787 = vrot.lane.b32.xlu0 %v3679_v41, %s3442_s17 }
 0x18d   : > { %v3868_v45 = vpop.permute.xlu1 %854  ;;  %v3870_v48 = vpop.permute.xlu0 %949 }
 0x18e   : > { %6692 = vst [vmem:[#allocation15_spill] sm:$0xff] %v3870_v48 }
 0x18f   : > { %789 = vrot.lane.b32.xlu1 %v3683_v44, %s3442_s17  ;;  %1369 = vrot.lane.b32.xlu0 %v3679_v41, %s3443_s18 }
 0x191   : > { %v3876_v50 = vpop.permute.xlu1 %951  ;;  %v3878_v51 = vpop.permute.xlu0 %1046 }
 0x192   : > { %6693 = vst [vmem:[#allocation16_spill] sm:$0xff] %v3876_v50  ;;  %6694 = vst [vmem:[#allocation17_spill] sm:$0xff] %v3878_v51 }
 0x193   : > { %1371 = vrot.lane.b32.xlu1 %v3683_v44, %s3443_s18  ;;  %884 = vrot.lane.b32.xlu0 %v3679_v41, %s3444_s19 }
 0x195   : > { %v3884_v56 = vpop.permute.xlu1 %1048  ;;  %v1168_v57 = vpop.permute.xlu0 %1167 }
 0x196   : > { %6695 = vst [vmem:[#allocation18_spill] sm:$0xff] %v3884_v56  ;;  %v1192_v60 = vsel %vm1191_vm9, %v1144_v19, %v1168_v57  ;;  %v1204_v61 = vsel %vm1191_vm9, %v1168_v57, %v1144_v19  ;;  %v3931_v57 = vsel %vm325_vm11, 1.0, %v6602_v0 }
 0x197   : > { %886 = vrot.lane.b32.xlu1 %v3683_v44, %s3444_s19  ;;  %981 = vrot.lane.b32.xlu0 %v3679_v41, %s3445_s20  ;;  %v1216_v9 = vmul.f32 %v1192_v60, %v3900_v59  ;;  %v1217_v14 = vmul.f32 %v1204_v61, %v3895_v58  ;;  %6697 = vst [vmem:[#allocation20_spill] sm:$0xff] %v3931_v57  ;;  %v3936_v60 = vsel %vm324_vm2, 1.0, %v6602_v0  ;;  %vm997_vm2 = vcmp.lt.s32.totalorder %v3628_v47, 15 }
 0x199   : > { %v1170_v62 = vpop.permute.xlu1 %1169  ;;  %v3906_v63 = vpop.permute.xlu0 %1264 }
 0x19a   : > { %v1193_v1 = vsel %vm1191_vm9, %v1146_v20, %v1170_v62  ;;  %v1205_v2 = vsel %vm1191_vm9, %v1170_v62, %v1146_v20 }
 0x19b   : > { %v1218_v15 = vmul.f32 %v1193_v1, %v3900_v59  ;;  %v1219_v16 = vmul.f32 %v1205_v2, %v3895_v58  ;;  %983 = vrot.lane.b32.xlu1 %v3683_v44, %s3445_s20  ;;  %1155 = vrot.lane.b32.xlu0 %v3717_v8, %s3440_s15 }
 0x19d   : > { %v3921_v17 = vpop.permute.xlu1 %1266  ;;  %v780_v18 = vpop.permute.xlu0 %779  ;;  %v3140_v19 = vpack.c.bf16 %v1219_v16, %v1217_v14  ;;  %v3142_v20 = vpack.c.bf16 %v1218_v15, %v1216_v9 }
 0x19e   : > { %v804_v61 = vsel %vm803_vm12, %v756_v23, %v780_v18  ;;  %v816_v62 = vsel %vm803_vm12, %v780_v18, %v756_v23 }
 0x19f   : > { %1157 = vrot.lane.b32.xlu1 %v3709_v4, %s3440_s15  ;;  %1252 = vrot.lane.b32.xlu0 %v3717_v8, %s3441_s16  ;;  %v828_v15 = vmul.f32 %v816_v62, %v3931_v57  ;;  %v829_v16 = vmul.f32 %v804_v61, %v3936_v60 }
 0x1a0   : > { %3141 = vmatprep.subr.bf16.mxu1 %v3140_v19 }
 0x1a1   : > { %3143 = vmatpush1.bf16.msra.mxu1 %v3142_v20  ;;  %v782_v1 = vpop.permute.xlu1 %781  ;;  %v3944_v2 = vpop.permute.xlu0 %1361 }
 0x1a2   : > { %v805_v9 = vsel %vm803_vm12, %v758_v24, %v782_v1  ;;  %v817_v14 = vsel %vm803_vm12, %v782_v1, %v758_v24 }
 0x1a3   : > { %v830_v23 = vmul.f32 %v817_v14, %v3931_v57  ;;  %v831_v18 = vmul.f32 %v805_v9, %v3936_v60  ;;  %1254 = vrot.lane.b32.xlu1 %v3709_v4, %s3441_s16  ;;  %767 = vrot.lane.b32.xlu0 %v3717_v8, %s3442_s17 }
 0x1a5   : > { %v3062_v19 = vpack.c.bf16 %v830_v23, %v828_v15  ;;  %v3958_v20 = vpop.permute.xlu1 %1363  ;;  %v3960_v0 = vpop.permute.xlu0 %876  ;;  %v3060_v24 = vpack.c.bf16 %v831_v18, %v829_v16 }
 0x1a7   : > { %769 = vrot.lane.b32.xlu1 %v3709_v4, %s3442_s17  ;;  %3061 = vmatprep.subr.bf16.mxu0 %v3060_v24 }
 0x1a8   : > { %1349 = vrot.lane.b32.xlu0 %v3717_v8, %s3443_s18  ;;  %3063 = vmatpush1.bf16.msra.mxu0 %v3062_v19 }
 0x1a9   : > { %v3966_v61 = vpop.permute.xlu1 %878  ;;  %v3968_v62 = vpop.permute.xlu0 %973 }
 0x1aa   : > { %6698 = vst [vmem:[#allocation21_spill] sm:$0xff] %v3968_v62  ;;  %v388_v62 = vld [vmem:[%s6595_s2 + $0x80] sm:$0xff] }
 0x1ab   : > { %1351 = vrot.lane.b32.xlu1 %v3709_v4, %s3443_s18 }
 0x1ac   : > { %864 = vrot.lane.b32.xlu0 %v3717_v8, %s3444_s19 }
 0x1ad   : > { %v3974_v1 = vpop.permute.xlu1 %975  ;;  %v1148_v9 = vpop.permute.xlu0 %1147 }
 0x1ae   : > { %6699 = vst [vmem:[#allocation22_spill] sm:$0xff] %v3974_v1 }
 0x1af   : > { %866 = vrot.lane.b32.xlu1 %v3709_v4, %s3444_s19 }
 0x1b0   : > { %961 = vrot.lane.b32.xlu0 %v3717_v8, %s3445_s20 }
 0x1b1   : > { %v1150_v14 = vpop.permute.xlu1 %1149  ;;  %v3980_v15 = vpop.permute.xlu0 %1244 }
 0x1b3   : > { %963 = vrot.lane.b32.xlu1 %v3709_v4, %s3445_s20 }
 0x1b4   : > { %1179 = vrot.lane.b32.xlu0 %v3707_v3, %s3440_s15 }
 0x1b5   : > { %v3986_v16 = vpop.permute.xlu1 %1246  ;;  %v760_v23 = vpop.permute.xlu0 %759 }
 0x1b7   : > { %1181 = vrot.lane.b32.xlu1 %v3711_v5, %s3440_s15 }
 0x1b8   : > { %1070 = vrot.lane.b32.xlu0 %v3637_v54, %s3446_s21 }
 0x1b9   : > { %v762_v18 = vpop.permute.xlu1 %761  ;;  %v3992_v19 = vpop.permute.xlu0 %1341 }
 0x1bb   : > { %1072 = vrot.lane.b32.xlu1 %v3639_v55, %s3446_s21 }
 0x1bc   : > { %1276 = vrot.lane.b32.xlu0 %v3707_v3, %s3441_s16 }
 0x1bd   : > { %v3998_v24 = vpop.permute.xlu1 %1343  ;;  %v4000_v37 = vpop.permute.xlu0 %856 }
 0x1bf   : > { %1436 = vrot.lane.b32.xlu1 %v3635_v53, %s3447_s10 }
 0x1c0   : > { %791 = vrot.lane.b32.xlu0 %v3707_v3, %s3442_s17 }
 0x1c1   : > { %v4006_v36 = vpop.permute.xlu1 %858  ;;  %v4008_v35 = vpop.permute.xlu0 %953 }
 0x1c2   : > { %6700 = vst [vmem:[#allocation23_spill] sm:$0xff] %v4008_v35 }
 0x1c3   : > { %1460 = vrot.lane.b32.xlu1 %v3639_v55, %s3447_s10 }
 0x1c4   : > { %1373 = vrot.lane.b32.xlu0 %v3707_v3, %s3443_s18 }
 0x1c5   : > { %v4014_v34 = vpop.permute.xlu1 %955  ;;  %v1172_v33 = vpop.permute.xlu0 %1171 }
 0x1c6   : > { %6701 = vst [vmem:[#allocation24_spill] sm:$0xff] %v4014_v34  ;;  %v1194_v53 = vsel %vm1191_vm9, %v1148_v9, %v1172_v33  ;;  %v1206_v32 = vsel %vm1191_vm9, %v1172_v33, %v1148_v9 }
 0x1c7   : > { %1278 = vrot.lane.b32.xlu1 %v3711_v5, %s3441_s16  ;;  %v1220_v28 = vmul.f32 %v1194_v53, %v3900_v59  ;;  %v1221_v27 = vmul.f32 %v1206_v32, %v3895_v58 }
 0x1c8   : > { %888 = vrot.lane.b32.xlu0 %v3707_v3, %s3444_s19 }
 0x1c9   : > { %v1174_v31 = vpop.permute.xlu1 %1173  ;;  %v4024_v55 = vpop.permute.xlu0 %1268 }
 0x1ca   : > { %v1195_v30 = vsel %vm1191_vm9, %v1150_v14, %v1174_v31  ;;  %v1207_v29 = vsel %vm1191_vm9, %v1174_v31, %v1150_v14 }
 0x1cb   : > { %v1222_v26 = vmul.f32 %v1195_v30, %v3900_v59  ;;  %v1223_v33 = vmul.f32 %v1207_v29, %v3895_v58  ;;  %1052 = vrot.lane.b32.xlu1 %v3658_v10, %s3446_s21 }
 0x1cc   : > { %985 = vrot.lane.b32.xlu0 %v3707_v3, %s3445_s20 }
 0x1cd   : > { %v4038_v9 = vpop.permute.xlu1 %1270  ;;  %v784_v51 = vpop.permute.xlu0 %783  ;;  %v3144_v56 = vpack.c.bf16 %v1223_v33, %v1221_v27  ;;  %v3146_v35 = vpack.c.bf16 %v1222_v26, %v1220_v28 }
 0x1ce   : > { %v818_v31 = vsel %vm803_vm12, %v784_v51, %v760_v23  ;;  %v806_v29 = vsel %vm803_vm12, %v760_v23, %v784_v51  ;;  %v1534_v51 = vld [vmem:[%s6596_s3 + $0x18] sm:$0xff] }
 0x1cf   : > { %1076 = vrot.lane.b32.xlu1 %v3661_v12, %s3446_s21  ;;  %3145 = vmatprep.subr.bf16.mxu1 %v3144_v56  ;;  %v832_v27 = vmul.f32 %v818_v31, %v3931_v57  ;;  %v833_v14 = vmul.f32 %v806_v29, %v3936_v60 }
 0x1d0   : > { %1434 = vrot.lane.b32.xlu0 %v3626_v43, %s3447_s10  ;;  %3147 = vmatpush1.bf16.msra.mxu1 %v3146_v35 }
 0x1d1   : > { %v786_v30 = vpop.permute.xlu1 %785  ;;  %v4048_v32 = vpop.permute.xlu0 %1365  ;;  %1901 = vmatprep.mubr.f32.mxu1 %v1534_v51 }
 0x1d2   : > { %v807_v26 = vsel %vm803_vm12, %v762_v18, %v786_v30  ;;  %v819_v28 = vsel %vm803_vm12, %v786_v30, %v762_v18 }
 0x1d3   : > { %v834_v43 = vmul.f32 %v819_v28, %v3931_v57  ;;  %v835_v35 = vmul.f32 %v807_v26, %v3936_v60  ;;  %793 = vrot.lane.b32.xlu1 %v3711_v5, %s3442_s17 }
 0x1d4   : > { %1458 = vrot.lane.b32.xlu0 %v3637_v54, %s3447_s10 }
 0x1d5   : > { %v3066_v56 = vpack.c.bf16 %v834_v43, %v832_v27  ;;  %v4065_v23 = vpop.permute.xlu1 %1367  ;;  %v4067_v18 = vpop.permute.xlu0 %880  ;;  %v3064_v53 = vpack.c.bf16 %v835_v35, %v833_v14 }
 0x1d7   : > { %1375 = vrot.lane.b32.xlu1 %v3711_v5, %s3443_s18  ;;  %3065 = vmatprep.subr.bf16.mxu0 %v3064_v53 }
 0x1d8   : > { %1050 = vrot.lane.b32.xlu0 %v3654_v6, %s3446_s21  ;;  %3067 = vmatpush1.bf16.msra.mxu0 %v3066_v56 }
 0x1d9   : > { %v4073_v33 = vpop.permute.xlu1 %882  ;;  %v4075_v31 = vpop.permute.xlu0 %977 }
 0x1da   : > { %6702 = vst [vmem:[#allocation25_spill] sm:$0xff] %v4075_v31 }
 0x1db   : > { %1440 = vrot.lane.b32.xlu1 %v3658_v10, %s3447_s10 }
 0x1dc   : > { %1074 = vrot.lane.b32.xlu0 %v3656_v7, %s3446_s21 }
 0x1dd   : > { %v4081_v54 = vpop.permute.xlu1 %979  ;;  %v1152_v29 = vpop.permute.xlu0 %1151 }
 0x1de   : > { %6703 = vst [vmem:[#allocation26_spill] sm:$0xff] %v4081_v54 }
 0x1df   : > { %1464 = vrot.lane.b32.xlu1 %v3661_v12, %s3447_s10 }
 0x1e0   : > { %1438 = vrot.lane.b32.xlu0 %v3654_v6, %s3447_s10 }
 0x1e1   : > { %v1154_v30 = vpop.permute.xlu1 %1153  ;;  %v4087_v27 = vpop.permute.xlu0 %1248 }
 0x1e3   : > { %890 = vrot.lane.b32.xlu1 %v3711_v5, %s3444_s19 }
 0x1e4   : > { %1462 = vrot.lane.b32.xlu0 %v3656_v7, %s3447_s10 }
 0x1e5   : > { %v4093_v10 = vpop.permute.xlu1 %1250  ;;  %v764_v26 = vpop.permute.xlu0 %763 }
 0x1e7   : > { %1056 = vrot.lane.b32.xlu1 %v3681_v42, %s3446_s21 }
 0x1e8   : > { %1054 = vrot.lane.b32.xlu0 %v3697_v49, %s3446_s21 }
 0x1e9   : > { %v766_v12 = vpop.permute.xlu1 %765  ;;  %v4099_v6 = vpop.permute.xlu0 %1345 }
 0x1eb   : > { %1080 = vrot.lane.b32.xlu1 %v3683_v44, %s3446_s21 }
 0x1ec   : > { %1078 = vrot.lane.b32.xlu0 %v3679_v41, %s3446_s21 }
 0x1ed   : > { %v4105_v28 = vpop.permute.xlu1 %1347  ;;  %v4107_v7 = vpop.permute.xlu0 %860 }
 0x1ee   : > { %6704 = vst [vmem:[#allocation27_spill] sm:$0xff] %v4107_v7 }
 0x1ef   : > { %1444 = vrot.lane.b32.xlu1 %v3681_v42, %s3447_s10 }
 0x1f0   : > { %1442 = vrot.lane.b32.xlu0 %v3697_v49, %s3447_s10 }
 0x1f1   : > { %v4113_v51 = vpop.permute.xlu1 %862  ;;  %v4115_v14 = vpop.permute.xlu0 %957 }
 0x1f2   : > { %6705 = vst [vmem:[#allocation28_spill] sm:$0xff] %v4115_v14 }
 0x1f3   : > { %987 = vrot.lane.b32.xlu1 %v3711_v5, %s3445_s20 }
 0x1f4   : > { %1466 = vrot.lane.b32.xlu0 %v3679_v41, %s3447_s10 }
 0x1f5   : > { %v4121_v43 = vpop.permute.xlu1 %959  ;;  %v1176_v35 = vpop.permute.xlu0 %1175 }
 0x1f6   : > { %6706 = vst [vmem:[#allocation29_spill] sm:$0xff] %v4121_v43  ;;  %v1196_v42 = vsel %vm1191_vm9, %v1152_v29, %v1176_v35  ;;  %v1208_v49 = vsel %vm1191_vm9, %v1176_v35, %v1152_v29 }
 0x1f7   : > { %1468 = vrot.lane.b32.xlu1 %v3683_v44, %s3447_s10  ;;  %v1224_v44 = vmul.f32 %v1196_v42, %v3900_v59  ;;  %v1225_v43 = vmul.f32 %v1208_v49, %v3895_v58 }
 0x1f8   : > { %1058 = vrot.lane.b32.xlu0 %v3717_v8, %s3446_s21 }
 0x1f9   : > { %v1178_v56 = vpop.permute.xlu1 %1177  ;;  %v4131_v53 = vpop.permute.xlu0 %1272 }
 0x1fa   : > { %v1197_v41 = vsel %vm1191_vm9, %v1154_v30, %v1178_v56  ;;  %v1209_v14 = vsel %vm1191_vm9, %v1178_v56, %v1154_v30  ;;  %v1532_v30 = vld [vmem:[%s6596_s3 + $0x8] sm:$0xff] }
 0x1fb   : > { %v1226_v31 = vmul.f32 %v1197_v41, %v3900_v59  ;;  %v1227_v29 = vmul.f32 %v1209_v14, %v3895_v58  ;;  %1060 = vrot.lane.b32.xlu1 %v3709_v4, %s3446_s21  ;;  %1764 = vmatprep.mubr.f32.mxu0 %v1532_v30 }
 0x1fc   : > { %1082 = vrot.lane.b32.xlu0 %v3707_v3, %s3446_s21 }
 0x1fd   : > { %v4145_v35 = vpop.permute.xlu1 %1274  ;;  %v788_v11 = vpop.permute.xlu0 %787  ;;  %v3148_v34 = vpack.c.bf16 %v1227_v29, %v1225_v43  ;;  %v3150_v54 = vpack.c.bf16 %v1226_v31, %v1224_v44 }
 0x1fe   : > { %v808_v14 = vsel %vm803_vm12, %v764_v26, %v788_v11  ;;  %v820_v42 = vsel %vm803_vm12, %v788_v11, %v764_v26 }
 0x1ff   : > { %1448 = vrot.lane.b32.xlu1 %v3709_v4, %s3447_s10  ;;  %3149 = vmatprep.subr.bf16.mxu1 %v3148_v34  ;;  %v836_v56 = vmul.f32 %v820_v42, %v3931_v57  ;;  %v837_v41 = vmul.f32 %v808_v14, %v3936_v60  ;;  %v374_v14 = vld [vmem:[%s6595_s2 + $0x10] sm:$0xff] }
 0x200   : > { %1446 = vrot.lane.b32.xlu0 %v3717_v8, %s3447_s10  ;;  %3151 = vmatpush1.bf16.msra.mxu1 %v3150_v54 }
 0x201   : > { %v790_v31 = vpop.permute.xlu1 %789  ;;  %v4158_v43 = vpop.permute.xlu0 %1369 }
 0x202   : > { %v809_v49 = vsel %vm803_vm12, %v766_v12, %v790_v31  ;;  %v821_v4 = vsel %vm803_vm12, %v790_v31, %v766_v12  ;;  %v372_v12 = vld [vmem:[%s6595_s2] sm:$0xff]  ;;  %v1598_v31 = vld [vmem:[%s6597_s4 + $0x38] sm:$0xff] }
 0x203   : > { %v838_v11 = vmul.f32 %v821_v4, %v3931_v57  ;;  %v839_v26 = vmul.f32 %v809_v49, %v3936_v60  ;;  %1084 = vrot.lane.b32.xlu1 %v3711_v5, %s3446_s21  ;;  %v1599_v4 = vld [vmem:[%s6597_s4 + $0x40] sm:$0xff] }
 0x204   : > { %1470 = vrot.lane.b32.xlu0 %v3707_v3, %s3447_s10  ;;  %v373_v3 = vld [vmem:[%s6595_s2 + $0x8] sm:$0xff] }
 0x205   : > { %v3070_v34 = vpack.c.bf16 %v838_v11, %v836_v56  ;;  %v4172_v8 = vpop.permute.xlu1 %1371  ;;  %v4174_v54 = vpop.permute.xlu0 %884  ;;  %v3068_v44 = vpack.c.bf16 %v839_v26, %v837_v41  ;;  %v1600_v41 = vld [vmem:[%s6597_s4 + $0x48] sm:$0xff]  ;;  %v1601_v26 = vld [vmem:[%s6597_s4 + $0x50] sm:$0xff] }
 0x206   : > { %6707 = vst [vmem:[#allocation30_spill] sm:$0xff] %v4174_v54 }
 0x207   : > { %1472 = vrot.lane.b32.xlu1 %v3711_v5, %s3447_s10  ;;  %3069 = vmatprep.subr.bf16.mxu0 %v3068_v44  ;;  %v1597_v5 = vld [vmem:[%s6597_s4 + $0x30] sm:$0xff] }
 0x208   : > { %392 = vperm.xlu0 %3427, %v372_v12   ;;  %3071 = vmatpush1.bf16.msra.mxu0 %v3070_v34  ;;  %v1602_v12 = vld [vmem:[%s6597_s4 + $0x58] sm:$0xff] }
 0x209   : > { %v4184_v29 = vpop.permute.xlu1 %886  ;;  %v4186_v30 = vpop.permute.xlu0 %981 }
 0x20a   : > { %6708 = vst [vmem:[#allocation31_spill] sm:$0xff] %v4184_v29  ;;  %6709 = vst [vmem:[#allocation32_spill] sm:$0xff] %v4186_v30  ;;  %v4237_v30 = vpop.f32.mrb[28].mxu0 }
 0x20b   : > { %397 = vperm.xlu1 %3428, %v373_v3   ;;  %v375_v3 = vld [vmem:[%s6595_s2 + $0x18] sm:$0xff]  ;;  %6712 = vst [vmem:[#allocation35_spill] sm:$0xff] %v4237_v30 }
 0x20c   : > { %402 = vperm.xlu0 %3427, %v374_v14  }
 0x20d   : > { %v4194_v42 = vpop.permute.xlu1 %983  ;;  %v1156_v49 = vpop.permute.xlu0 %1155 }
 0x20e   : > { %6710 = vst [vmem:[#allocation33_spill] sm:$0xff] %v4194_v42  ;;  %v4239_v42 = vpop.f32.mrb[29].mxu0 }
 0x20f   : > { %1635 = vperm.xlu1 %3428, %v1597_v5   ;;  %v376_v5 = vld [vmem:[%s6595_s2 + $0x20] sm:$0xff]  ;;  %6713 = vst [vmem:[#allocation36_spill] sm:$0xff] %v4239_v42 }
 0x210   : > { %1640 = vperm.xlu0 %3427, %v1598_v31  }
 0x211   : > { %v1158_v56 = vpop.permute.xlu1 %1157  ;;  %v4205_v11 = vpop.permute.xlu0 %1252 }
 0x213   : > { %1645 = vperm.xlu1 %3428, %v1599_v4   ;;  %v377_v4 = vld [vmem:[%s6595_s2 + $0x28] sm:$0xff] }
 0x214   : > { %1650 = vperm.xlu0 %3427, %v1600_v41  }
 0x215   : > { %v4210_v34 = vpop.permute.xlu1 %1254  ;;  %v4215_v44 = vpop.permute.xlu0 %767 }
 0x217   : > { %1655 = vperm.xlu1 %3428, %v1601_v26   ;;  %v386_v26 = vld [vmem:[%s6595_s2 + $0x70] sm:$0xff] }
 0x218   : > { %1660 = vperm.xlu0 %3427, %v1602_v12  }
 0x219   : > { %v4220_v14 = vpop.permute.xlu1 %769 }
 0x21a   : > { %v4225_v31 = vpop.permute.xlu0 %1349 }
 0x21b   : > { %407 = vperm.xlu1 %3428, %v375_v3   ;;  %v387_v3 = vld [vmem:[%s6595_s2 + $0x78] sm:$0xff] }
 0x21c   : > { %412 = vperm.xlu0 %3427, %v376_v5   ;;  %v4244_v5 = vpop.f32.mrb[30].mxu0 }
 0x21d   : > { %v4230_v41 = vpop.permute.xlu1 %1351  ;;  %6714 = vst [vmem:[#allocation37_spill] sm:$0xff] %v4244_v5  ;;  %v4251_v50 = vpop.f32.mrb[31].mxu0 }
 0x21e   : > { %v4235_v12 = vpop.permute.xlu0 %864  ;;  %6716 = vst [vmem:[#allocation39_spill] sm:$0xff] %v4251_v50  ;;  %v1302_v50 = vsel %vm1288_vm13, %v3921_v17, %v3848_v22 }
 0x21f   : > { %6711 = vst [vmem:[#allocation34_spill] sm:$0xff] %v4235_v12  ;;  %417 = vperm.xlu1 %3428, %v377_v4   ;;  %v4255_v4 = vpop.f32.mrb[32].mxu0 }
 0x220   : > { %462 = vperm.xlu0 %3427, %v386_v26   ;;  %6718 = vst [vmem:[#allocation41_spill] sm:$0xff] %v4255_v4  ;;  %v389_v26 = vld [vmem:[%s6595_s2 + $0x88] sm:$0xff]  ;;  %v4260_v42 = vpop.f32.mrb[33].mxu0 }
 0x221   : > { %v4246_v48 = vpop.permute.xlu1 %866  ;;  %6719 = vst [vmem:[#allocation42_spill] sm:$0xff] %v4260_v42 }
 0x222   : > { %6715 = vst [vmem:[#allocation38_spill] sm:$0xff] %v4246_v48  ;;  %v4253_v12 = vpop.permute.xlu0 %961 }
 0x223   : > { %6717 = vst [vmem:[#allocation40_spill] sm:$0xff] %v4253_v12  ;;  %467 = vperm.xlu1 %3428, %v387_v3   ;;  %v4269_v3 = vpop.f32.mrb[34].mxu0 }
 0x224   : > { %472 = vperm.xlu0 %3427, %v388_v62   ;;  %6721 = vst [vmem:[#allocation44_spill] sm:$0xff] %v4269_v3  ;;  %v4275_v42 = vpop.f32.mrb[35].mxu0  ;;  %v1290_v3 = vsel %vm1288_vm13, %v3848_v22, %v3921_v17 }
 0x225   : > { %v4262_v5 = vpop.permute.xlu1 %963  ;;  %6722 = vst [vmem:[#allocation45_spill] sm:$0xff] %v4275_v42 }
 0x226   : > { %6720 = vst [vmem:[#allocation43_spill] sm:$0xff] %v4262_v5  ;;  %v1180_v30 = vpop.permute.xlu0 %1179  ;;  %v6723_v5 = vmov 0.0  }
 0x227   : > { %477 = vperm.xlu1 %3428, %v389_v26   ;;  %v1198_v62 = vsel %vm1191_vm9, %v1156_v49, %v1180_v30  ;;  %v1210_v4 = vsel %vm1191_vm9, %v1180_v30, %v1156_v49  ;;  %v4280_v12 = vsel %vm3689_vm4, 1.0, %v6723_v5  ;;  %v1301_v26 = vsel %vm1288_vm13, %v3906_v63, %v3842_v21 }
 0x228   : > { %v1316_v30 = vmul.f32 %v1302_v50, %v4280_v12  ;;  %v1228_v1 = vmul.f32 %v1198_v62, %v3900_v59  ;;  %v1229_v54 = vmul.f32 %v1210_v4, %v3895_v58  ;;  %v4304_v22 = vsel %vm323_vm10, 1.0, %v6723_v5 }
 0x229   : > { %v1182_v48 = vpop.permute.xlu1 %1181  ;;  %v1289_v50 = vsel %vm1288_vm13, %v3842_v21, %v3906_v63  ;;  %v1314_v17 = vmul.f32 %v1301_v26, %v4280_v12  ;;  %v1315_v13 = vmul.f32 %v1290_v3, %v4304_v22  ;;  %v1305_v3 = vsel %vm1288_vm13, %v4131_v53, %v4087_v27 }
 0x22a   : > { %v1199_v49 = vsel %vm1191_vm9, %v1158_v56, %v1182_v48  ;;  %v1211_v46 = vsel %vm1191_vm9, %v1182_v48, %v1158_v56  ;;  %v4295_v42 = vpop.permute.xlu0 %1070  ;;  %v1304_v48 = vsel %vm1288_vm13, %v4038_v9, %v3986_v16  ;;  %vm1663_vm4 = vcmask 523264  }
 0x22b   : > { %6724 = vst [vmem:[#allocation46_spill] sm:$0xff] %v4295_v42  ;;  %v1230_v7 = vmul.f32 %v1199_v49, %v3900_v59  ;;  %v1231_v29 = vmul.f32 %v1211_v46, %v3895_v58  ;;  %v1303_v49 = vsel %vm1288_vm13, %v4024_v55, %v3980_v15  ;;  %v1292_v42 = vsel %vm1288_vm13, %v3986_v16, %v4038_v9 }
 0x22c   : > { %v1320_v21 = vmul.f32 %v1304_v48, %v4280_v12  ;;  %v3156_v63 = vpack.c.bf16 %v1316_v30, %v1314_v17  ;;  %v1319_v9 = vmul.f32 %v1292_v42, %v4304_v22  ;;  %v1293_v42 = vsel %vm1288_vm13, %v4087_v27, %v4131_v53 }
 0x22d   : > { %v4315_v56 = vpop.permute.xlu1 %1072  ;;  %v3152_v4 = vpack.c.bf16 %v1231_v29, %v1229_v54  ;;  %v3154_v62 = vpack.c.bf16 %v1230_v7, %v1228_v1  ;;  %v1313_v54 = vmul.f32 %v1289_v50, %v4304_v22  ;;  %v1306_v1 = vsel %vm1288_vm13, %v4145_v35, %v4093_v10 }
 0x22e   : > { %v1277_v46 = vpop.permute.xlu0 %1276  ;;  %v1291_v7 = vsel %vm1288_vm13, %v3980_v15, %v4024_v55  ;;  %v1318_v29 = vmul.f32 %v1303_v49, %v4280_v12  ;;  %v1294_v15 = vsel %vm1288_vm13, %v4093_v10, %v4145_v35  ;;  %v1324_v55 = vmul.f32 %v1306_v1, %v4280_v12 }
 0x22f   : > { %3153 = vmatprep.subr.bf16.mxu1 %v3152_v4  ;;  %v3158_v30 = vpack.c.bf16 %v1315_v13, %v1313_v54  ;;  %v1317_v50 = vmul.f32 %v1291_v7, %v4304_v22  ;;  %v1322_v17 = vmul.f32 %v1305_v3, %v4280_v12  ;;  %v1323_v10 = vmul.f32 %v1294_v15, %v4304_v22 }
 0x230   : > { %3155 = vmatpush1.bf16.msra.mxu1 %v3154_v62  ;;  %v3160_v48 = vpack.c.bf16 %v1320_v21, %v1318_v29  ;;  %v1399_v13 = vsel %vm1385_vm14, %v3958_v20, %v3860_v39  ;;  %v1321_v27 = vmul.f32 %v1293_v42, %v4304_v22  ;;  %v1295_v53 = vsel %vm1288_vm13, %v4205_v11, %v1277_v46 }
 0x231   : > { %v4337_v16 = vpop.permute.xlu1 %1436  ;;  %3157 = vmatprep.subr.bf16.mxu1 %v3156_v63  ;;  %v3162_v62 = vpack.c.bf16 %v1319_v9, %v1317_v50  ;;  %v3164_v49 = vpack.c.bf16 %v1324_v55, %v1322_v17  ;;  %v1307_v21 = vsel %vm1288_vm13, %v1277_v46, %v4205_v11  ;;  %v4377_v63 = vsel %vm342_vm3, 1.0, %v6723_v5 }
 0x232   : > { %v4344_v26 = vpop.permute.xlu0 %791  ;;  %6725 = vst [vmem:[#allocation47_spill] sm:$0xff] %v4377_v63  ;;  %v1398_v54 = vsel %vm1385_vm14, %v3944_v2, %v3854_v38  ;;  %v1413_v7 = vmul.f32 %v1399_v13, %v4377_v63  ;;  %v3166_v9 = vpack.c.bf16 %v1323_v10, %v1321_v27  ;;  %v1325_v3 = vmul.f32 %v1295_v53, %v4304_v22 }
 0x233   : > { %v1411_v50 = vmul.f32 %v1398_v54, %v4377_v63  ;;  %v1400_v10 = vsel %vm1385_vm14, %v4048_v32, %v3992_v19  ;;  %v1387_v13 = vsel %vm1385_vm14, %v3860_v39, %v3958_v20  ;;  %v1403_v27 = vsel %vm1385_vm14, %v4172_v8, %v4105_v28 }
 0x234   : > { %3159 = vmatpush1.bf16.msra.mxu1 %v3158_v30  ;;  %v1326_v30 = vmul.f32 %v1307_v21, %v4280_v12  ;;  %v4422_v21 = vsel %vm321_vm6, 1.0, %v6723_v5  ;;  %v913_v54 = vsel %vm900_vm15, %v3960_v0, %v3862_v40  ;;  %v1386_v39 = vsel %vm1385_vm14, %v3854_v38, %v3944_v2 }
 0x235   : > { %v4357_v4 = vpop.permute.xlu1 %1460  ;;  %3161 = vmatprep.subr.bf16.mxu1 %v3160_v48  ;;  %v1401_v48 = vsel %vm1385_vm14, %v4065_v23, %v3998_v24  ;;  %v3172_v53 = vpack.c.bf16 %v1413_v7, %v1411_v50  ;;  %v914_v20 = vsel %vm900_vm15, %v3966_v61, %v3868_v45  ;;  %v1402_v7 = vsel %vm1385_vm14, %v4158_v43, %v4099_v6 }
 0x236   : > { %v4361_v35 = vpop.permute.xlu0 %1373  ;;  %v1389_v38 = vsel %vm1385_vm14, %v3998_v24, %v4065_v23  ;;  %v1421_v2 = vmul.f32 %v1403_v27, %v4377_v63  ;;  %v4460_v24 = vmul.f32 %v914_v20, %v4422_v21  ;;  %v1388_v23 = vsel %vm1385_vm14, %v3992_v19, %v4048_v32 }
 0x237   : > { %v1391_v50 = vsel %vm1385_vm14, %v4105_v28, %v4172_v8  ;;  %v3178_v32 = vpack.c.bf16 %v1389_v38, %v1388_v23  ;;  %v1404_v8 = vsel %vm1385_vm14, %v4361_v35, %v4225_v31  ;;  %v1390_v27 = vsel %vm1385_vm14, %v4099_v6, %v4158_v43 }
 0x238   : > { %3163 = vmatpush1.bf16.msra.mxu1 %v3162_v62  ;;  %v1496_v20 = vsel %vm1482_vm1, %v4357_v4, %v4337_v16  ;;  %vm1094_vm3 = vcmp.lt.s32.totalorder %v3628_v47, 1 }
 0x239   : > { %v1279_v1 = vpop.permute.xlu1 %1278  ;;  %3165 = vmatprep.subr.bf16.mxu1 %v3164_v49  ;;  %v1417_v49 = vmul.f32 %v1401_v48, %v4377_v63  ;;  %v1419_v48 = vmul.f32 %v1402_v7, %v4377_v63 }
 0x23a   : > { %v1296_v29 = vsel %vm1288_vm13, %v4210_v34, %v1279_v1  ;;  %v1308_v11 = vsel %vm1288_vm13, %v1279_v1, %v4210_v34  ;;  %v4390_v46 = vpop.permute.xlu0 %888  ;;  %v1415_v1 = vmul.f32 %v1400_v10, %v4377_v63  ;;  %v4501_v10 = vsel %vm350_vm0, 1.0, %v6723_v5 }
 0x23b   : > { %v1327_v15 = vmul.f32 %v1296_v29, %v4304_v22  ;;  %v1328_v55 = vmul.f32 %v1308_v11, %v4280_v12  ;;  %v3180_v25 = vpack.c.bf16 %v1421_v2, %v1419_v48  ;;  %6726 = vst [vmem:[#allocation48_spill] sm:$0xff] %v4501_v10  ;;  %v3182_v2 = vpack.c.bf16 %v1391_v50, %v1390_v27  ;;  %v6729_v50 = vld [vmem:[#allocation30_spill] sm:$0xff] }
 0x23c   : > { %3167 = vmatpush1.bf16.msra.mxu1 %v3166_v9  ;;  %v3174_v9 = vpack.c.bf16 %v1387_v13, %v1386_v39  ;;  %v1539_v27 = vld [vmem:[%s6596_s3 + $0x40] sm:$0xff] }
 0x23d   : > { %v4402_v34 = vpop.permute.xlu1 %1052  ;;  %v3168_v42 = vpack.c.bf16 %v1328_v55, %v1326_v30  ;;  %v3170_v17 = vpack.c.bf16 %v1327_v15, %v1325_v3  ;;  %v901_v3 = vsel %vm900_vm15, %v3862_v40, %v3960_v0  ;;  %v4453_v30 = vmul.f32 %v913_v54, %v4422_v21 }
 0x23e   : > { %v4408_v62 = vpop.permute.xlu0 %985  ;;  %v822_v15 = vsel %vm803_vm12, %v4344_v26, %v4215_v44  ;;  %v3176_v55 = vpack.c.bf16 %v1417_v49, %v1415_v1  ;;  %v810_v0 = vsel %vm803_vm12, %v4215_v44, %v4344_v26  ;;  %v902_v40 = vsel %vm900_vm15, %v3868_v45, %v3966_v61 }
 0x23f   : > { %3169 = vmatprep.subr.bf16.mxu1 %v3168_v42  ;;  %v840_v44 = vmul.f32 %v822_v15, %v3931_v57  ;;  %v841_v52 = vmul.f32 %v810_v0, %v3936_v60  ;;  %v3076_v13 = vpack.c.bf16 %v902_v40, %v901_v3  ;;  %v916_v49 = vsel %vm900_vm15, %v4073_v33, %v4006_v36  ;;  %v6728_v40 = vld [vmem:[#allocation27_spill] sm:$0xff] }
 0x240   : > { %3171 = vmatpush1.bf16.msra.mxu1 %v3170_v17  ;;  %v3078_v17 = vpack.c.bf16 %v4460_v24, %v4453_v30  ;;  %v1423_v1 = vmul.f32 %v1404_v8, %v4377_v63  ;;  %v903_v30 = vsel %vm900_vm15, %v4000_v37, %v4067_v18  ;;  %v915_v15 = vsel %vm900_vm15, %v4067_v18, %v4000_v37 }
 0x241   : > { %v4441_v29 = vpop.permute.xlu1 %1076  ;;  %3173 = vmatprep.subr.bf16.mxu1 %v3172_v53  ;;  %v1392_v24 = vsel %vm1385_vm14, %v4225_v31, %v4361_v35  ;;  %v931_v23 = vmul.f32 %v916_v49, %v4422_v21  ;;  %v929_v0 = vmul.f32 %v915_v15, %v4422_v21 }
 0x242   : > { %v1435_v11 = vpop.permute.xlu0 %1434 }
 0x244   : > { %3175 = vmatpush1.bf16.msra.mxu1 %v3174_v9 }
 0x245   : > { %v794_v19 = vpop.permute.xlu1 %793  ;;  %3177 = vmatprep.subr.bf16.mxu1 %v3176_v55  ;;  %v1510_v55 = vmul.f32 %v1496_v20, %v4501_v10 }
 0x246   : > { %v811_v45 = vsel %vm803_vm12, %v4220_v14, %v794_v19  ;;  %v823_v61 = vsel %vm803_vm12, %v794_v19, %v4220_v14  ;;  %v1459_v28 = vpop.permute.xlu0 %1458  ;;  %v917_v19 = vsel %vm900_vm15, %v6729_v50, %v6728_v40 }
 0x247   : > { %v842_v26 = vmul.f32 %v823_v61, %v3931_v57  ;;  %v843_v42 = vmul.f32 %v811_v45, %v3936_v60  ;;  %v1495_v14 = vsel %vm1482_vm1, %v1459_v28, %v1435_v11  ;;  %v1483_v6 = vsel %vm1482_vm1, %v1435_v11, %v1459_v28  ;;  %v1533_v45 = vld [vmem:[%s6596_s3 + $0x10] sm:$0xff]  ;;  %v6730_v61 = vld [vmem:[#allocation22_spill] sm:$0xff] }
 0x248   : > { %3179 = vmatpush1.bf16.msra.mxu1 %v3178_v32  ;;  %v1508_v43 = vmul.f32 %v1495_v14, %v4501_v10  ;;  %v904_v11 = vsel %vm900_vm15, %v4006_v36, %v4073_v33  ;;  %v6727_v36 = vld [vmem:[#allocation31_spill] sm:$0xff]  ;;  %v1507_v48 = vmul.f32 %v1483_v6, %v3900_v59  ;;  %v6731_v28 = vld [vmem:[#allocation16_spill] sm:$0xff]  ;;  %v905_v14 = vsel %vm900_vm15, %v6728_v40, %v6729_v50  ;;  %v6735_v6 = vld [vmem:[#allocation26_spill] sm:$0xff] }
 0x249   : > { %v3074_v53 = vpack.c.bf16 %v842_v26, %v840_v44  ;;  %v1376_v54 = vpop.permute.xlu1 %1375  ;;  %3181 = vmatprep.subr.bf16.mxu1 %v3180_v25  ;;  %v3072_v39 = vpack.c.bf16 %v843_v42, %v841_v52  ;;  %v918_v33 = vsel %vm900_vm15, %v6727_v36, %v4113_v51  ;;  %v3080_v31 = vpack.c.bf16 %v904_v11, %v903_v30  ;;  %v6732_v26 = vld [vmem:[#allocation21_spill] sm:$0xff]  ;;  %v1543_v50 = vld [vmem:[%s6596_s3 + $0x60] sm:$0xff] }
 0x24a   : > { %v1405_v7 = vsel %vm1385_vm14, %v1376_v54, %v4230_v41  ;;  %v4521_v38 = vpop.permute.xlu0 %1050  ;;  %v1393_v9 = vsel %vm1385_vm14, %v4230_v41, %v1376_v54  ;;  %v1484_v41 = vsel %vm1482_vm1, %v4337_v16, %v4357_v4  ;;  %v3188_v35 = vpack.c.bf16 %v1510_v55, %v1508_v43  ;;  %v6734_v54 = vld [vmem:[#allocation34_spill] sm:$0xff]  ;;  %v6736_v43 = vld [vmem:[#allocation24_spill] sm:$0xff]  ;;  %v1544_v55 = vld [vmem:[%s6596_s3 + $0x68] sm:$0xff] }
 0x24b   : > { %v1425_v3 = vmul.f32 %v1405_v7, %v4377_v63  ;;  %3073 = vmatprep.subr.bf16.mxu0 %v3072_v39  ;;  %v3186_v4 = vpack.c.bf16 %v1393_v9, %v1392_v24  ;;  %v906_v32 = vsel %vm900_vm15, %v4113_v51, %v6727_v36  ;;  %v1509_v44 = vmul.f32 %v1484_v41, %v3900_v59  ;;  %v6733_v51 = vld [vmem:[#allocation15_spill] sm:$0xff] }
 0x24c   : > { %3075 = vmatpush1.bf16.msra.mxu0 %v3074_v53  ;;  %3183 = vmatpush1.bf16.msra.mxu1 %v3182_v2  ;;  %v999_v25 = vsel %vm997_vm2, %v6731_v28, %v6730_v61  ;;  %v935_v52 = vmul.f32 %v918_v33, %v4422_v21  ;;  %v998_v42 = vsel %vm997_vm2, %v6733_v51, %v6732_v26 }
 0x24d   : > { %v1441_v37 = vpop.permute.xlu1 %1440  ;;  %3077 = vmatprep.subr.bf16.mxu0 %v3076_v13  ;;  %v3184_v18 = vpack.c.bf16 %v1425_v3, %v1423_v1  ;;  %v3190_v13 = vpack.c.bf16 %v1509_v44, %v1507_v48  ;;  %v933_v53 = vmul.f32 %v917_v19, %v4422_v21  ;;  %v919_v39 = vsel %vm900_vm15, %v4390_v46, %v6734_v54  ;;  %v1538_v3 = vld [vmem:[%s6596_s3 + $0x38] sm:$0xff] }
 0x24e   : > { %v4557_v16 = vpop.permute.xlu0 %1074  ;;  %v3084_v1 = vpack.c.bf16 %v906_v32, %v905_v14  ;;  %v1011_v7 = vsel %vm997_vm2, %v6730_v61, %v6731_v28  ;;  %v1025_v2 = vmul.f32 %v999_v25, %v3895_v58  ;;  %v1001_v9 = vsel %vm997_vm2, %v6736_v43, %v6735_v6 }
 0x24f   : > { %3185 = vmatprep.subr.bf16.mxu1 %v3184_v18  ;;  %v3086_v30 = vpack.c.bf16 %v935_v52, %v933_v53  ;;  %v907_v15 = vsel %vm900_vm15, %v6734_v54, %v4390_v46  ;;  %v937_v24 = vmul.f32 %v919_v39, %v4422_v21  ;;  %v4639_v32 = vsel %vm3735_vm7, 1.0, %v6723_v5  ;;  %v6739_v52 = vld [vmem:[#allocation25_spill] sm:$0xff] }
 0x250   : > { %3079 = vmatpush1.bf16.msra.mxu0 %v3078_v17  ;;  %3187 = vmatpush1.bf16.msra.mxu1 %v3186_v4  ;;  %v3082_v17 = vpack.c.bf16 %v931_v23, %v929_v0  ;;  %v6737_v23 = vld [vmem:[#allocation38_spill] sm:$0xff]  ;;  %v1010_v44 = vsel %vm997_vm2, %v6732_v26, %v6733_v51  ;;  %v1024_v25 = vmul.f32 %v1011_v7, %v4639_v32  ;;  %v6741_v54 = vld [vmem:[#allocation33_spill] sm:$0xff] }
 0x251   : > { %v1465_v8 = vpop.permute.xlu1 %1464  ;;  %3081 = vmatprep.subr.bf16.mxu0 %v3080_v31  ;;  %3189 = vmatprep.subr.bf16.mxu1 %v3188_v35  ;;  %v1013_v26 = vsel %vm997_vm2, %v6735_v6, %v6736_v43  ;;  %v1029_v51 = vmul.f32 %v1001_v9, %v3895_v58  ;;  %v1022_v53 = vmul.f32 %v1010_v44, %v4639_v32  ;;  %v6742_v39 = vld [vmem:[#allocation29_spill] sm:$0xff] }
 0x252   : > { %v1439_v49 = vpop.permute.xlu0 %1438  ;;  %v1486_v20 = vsel %vm1482_vm1, %v1441_v37, %v1465_v8  ;;  %v1498_v11 = vsel %vm1482_vm1, %v1465_v8, %v1441_v37  ;;  %v6740_v8 = vld [vmem:[#allocation23_spill] sm:$0xff]  ;;  %v1554_v43 = vld [vmem:[%s6596_s3 + $0xb8] sm:$0xff] }
 0x253   : > { %1902 = vmatmul.mubr.f32.vlgmr.msra.gmra.mrb[0].mxu1 %v1533_v45  ;;  %v1513_v18 = vmul.f32 %v1486_v20, %v3900_v59  ;;  %v1514_v31 = vmul.f32 %v1498_v11, %v4501_v10  ;;  %v1023_v45 = vmul.f32 %v998_v42, %v3895_v58  ;;  %v1003_v20 = vsel %vm997_vm2, %v6742_v39, %v6741_v54 }
 0x254   : > { %3083 = vmatpush1.bf16.msra.mxu0 %v3082_v17  ;;  %3191 = vmatpush1.bf16.msra.mxu1 %v3190_v13  ;;  %v1000_v17 = vsel %vm997_vm2, %v6740_v8, %v6739_v52  ;;  %v1012_v7 = vsel %vm997_vm2, %v6739_v52, %v6740_v8  ;;  %v3094_v9 = vpack.c.bf16 %v1024_v25, %v1022_v53  ;;  %v6748_v25 = vld [vmem:[#allocation40_spill] sm:$0xff]  ;;  %v1564_v53 = vld [vmem:[%s6596_s3 + $0x108] sm:$0xff] }
 0x255   : > { %v891_v41 = vpop.permute.xlu1 %890  ;;  %3085 = vmatprep.subr.bf16.mxu0 %v3084_v1  ;;  %1907 = vmatprep.mubr.f32.mxu1 %v1539_v27  ;;  %v3092_v42 = vpack.c.bf16 %v1025_v2, %v1023_v45  ;;  %v1549_v27 = vld [vmem:[%s6596_s3 + $0x90] sm:$0xff]  ;;  %v1548_v1 = vld [vmem:[%s6596_s3 + $0x88] sm:$0xff]  ;;  %v1027_v2 = vmul.f32 %v1000_v17, %v3895_v58  ;;  %v1004_v52 = vsel %vm997_vm2, %v6748_v25, %v4408_v62 }
 0x256   : > { %v908_v36 = vsel %vm900_vm15, %v6737_v23, %v891_v41  ;;  %v920_v46 = vsel %vm900_vm15, %v891_v41, %v6737_v23  ;;  %v1463_v37 = vpop.permute.xlu0 %1462  ;;  %v1015_v41 = vsel %vm997_vm2, %v6741_v54, %v6742_v39  ;;  %v1026_v23 = vmul.f32 %v1012_v7, %v4639_v32 }
 0x257   : > { %v939_v33 = vmul.f32 %v920_v46, %v4422_v21  ;;  %v1485_v48 = vsel %vm1482_vm1, %v1439_v49, %v1463_v37  ;;  %v1497_v4 = vsel %vm1482_vm1, %v1463_v37, %v1439_v49  ;;  %1908 = vmatmul.mubr.f32.gmra.mrb[2].mxu1 %v1538_v3  ;;  %v3088_v0 = vpack.c.bf16 %v908_v36, %v907_v15  ;;  %v6744_v15 = vld [vmem:[#allocation28_spill] sm:$0xff] }
 0x258   : > { %v1511_v35 = vmul.f32 %v1485_v48, %v3900_v59  ;;  %v1512_v40 = vmul.f32 %v1497_v4, %v4501_v10  ;;  %3087 = vmatpush1.bf16.msra.mxu0 %v3086_v30  ;;  %1913 = vmatprep.mubr.f32.mxu1 %v1544_v55  ;;  %v1028_v3 = vmul.f32 %v1013_v26, %v4639_v32  ;;  %v6743_v30 = vld [vmem:[#allocation32_spill] sm:$0xff]  ;;  %v6745_v48 = vld [vmem:[#allocation18_spill] sm:$0xff] }
 0x259   : > { %v3090_v61 = vpack.c.bf16 %v939_v33, %v937_v24  ;;  %v4646_v28 = vpop.permute.xlu1 %1056  ;;  %3089 = vmatprep.subr.bf16.mxu0 %v3088_v0  ;;  %v1002_v11 = vsel %vm997_vm2, %v6744_v15, %v6743_v30  ;;  %v1033_v24 = vmul.f32 %v1003_v20, %v3895_v58  ;;  %v1014_v36 = vsel %vm997_vm2, %v6743_v30, %v6744_v15  ;;  %v1553_v46 = vld [vmem:[%s6596_s3 + $0xb0] sm:$0xff]  ;;  %v6749_v20 = vld [vmem:[#allocation43_spill] sm:$0xff] }
 0x25a   : > { %v3194_v14 = vpack.c.bf16 %v1513_v18, %v1511_v35  ;;  %v4653_v13 = vpop.permute.xlu0 %1054  ;;  %v3192_v49 = vpack.c.bf16 %v1514_v31, %v1512_v40  ;;  %v3096_v18 = vpack.c.bf16 %v1029_v51, %v1027_v2  ;;  %v1031_v37 = vmul.f32 %v1002_v11, %v3895_v58  ;;  %v1559_v31 = vld [vmem:[%s6596_s3 + $0xe0] sm:$0xff] }
 0x25b   : > { %1914 = vmatmul.mubr.f32.gmra.mrb[4].mxu1 %v1543_v50  ;;  %v1032_v33 = vmul.f32 %v1015_v41, %v4639_v32  ;;  %v1096_v4 = vsel %vm1094_vm3, %v6745_v48, %v4315_v56  ;;  %v3098_v35 = vpack.c.bf16 %v1028_v3, %v1026_v23  ;;  %v6746_v40 = vld [vmem:[#allocation46_spill] sm:$0xff]  ;;  %v6747_v50 = vld [vmem:[#allocation17_spill] sm:$0xff]  ;;  %v1016_v8 = vsel %vm997_vm2, %v4408_v62, %v6748_v25 }
 0x25c   : > { %3193 = vmatprep.subr.bf16.mxu1 %v3192_v49  ;;  %3091 = vmatpush1.bf16.msra.mxu0 %v3090_v61  ;;  %v1095_v19 = vsel %vm1094_vm3, %v6747_v50, %v6746_v40  ;;  %v1107_v44 = vsel %vm1094_vm3, %v6746_v40, %v6747_v50  ;;  %v1030_v61 = vmul.f32 %v1014_v36, %v4639_v32  ;;  %v1558_v49 = vld [vmem:[%s6596_s3 + $0xd8] sm:$0xff]  ;;  %v1563_v11 = vld [vmem:[%s6596_s3 + $0x100] sm:$0xff] }
 0x25d   : > { %3195 = vmatpush1.bf16.msra.mxu1 %v3194_v14  ;;  %v4676_v6 = vpop.permute.xlu1 %1080  ;;  %3093 = vmatprep.subr.bf16.mxu0 %v3092_v42  ;;  %v3100_v17 = vpack.c.bf16 %v1033_v24, %v1031_v37  ;;  %v1122_v14 = vmul.f32 %v1096_v4, %v3936_v60  ;;  %v1119_v51 = vmul.f32 %v1107_v44, %v4304_v22  ;;  %v1569_v37 = vld [vmem:[%s6596_s3 + $0x130] sm:$0xff]  ;;  %v1568_v44 = vld [vmem:[%s6596_s3 + $0x128] sm:$0xff] }
 0x25e   : > { %v4690_v55 = vpop.permute.xlu0 %1078  ;;  %1919 = vmatprep.mubr.f32.mxu1 %v1549_v27  ;;  %v3102_v26 = vpack.c.bf16 %v1032_v33, %v1030_v61  ;;  %v1120_v42 = vmul.f32 %v1095_v19, %v3936_v60  ;;  %v1108_v62 = vsel %vm1094_vm3, %v4315_v56, %v6745_v48  ;;  %v1034_v54 = vmul.f32 %v1016_v8, %v4639_v32 }
 0x25f   : > { %1920 = vmatmul.mubr.f32.gmra.mrb[6].mxu1 %v1548_v1  ;;  %v1035_v39 = vmul.f32 %v1004_v52, %v3895_v58  ;;  %v1097_v56 = vsel %vm1094_vm3, %v4521_v38, %v4557_v16  ;;  %v1121_v30 = vmul.f32 %v1108_v62, %v4304_v22  ;;  %v1098_v24 = vsel %vm1094_vm3, %v4402_v34, %v4441_v29 }
 0x260   : > { %3095 = vmatpush1.bf16.msra.mxu0 %v3094_v9  ;;  %1925 = vmatprep.mubr.f32.mxu1 %v1554_v43  ;;  %v3108_v41 = vpack.c.bf16 %v1122_v14, %v1120_v42  ;;  %v1124_v33 = vmul.f32 %v1097_v56, %v3936_v60  ;;  %v1126_v50 = vmul.f32 %v1098_v24, %v3936_v60  ;;  %v1574_v42 = vld [vmem:[%s6596_s3 + $0x158] sm:$0xff]  ;;  %v1584_v56 = vld [vmem:[%s6596_s3 + $0x1a8] sm:$0xff] }
 0x261   : > { %v1445_v0 = vpop.permute.xlu1 %1444  ;;  %3097 = vmatprep.subr.bf16.mxu0 %v3096_v18  ;;  %v1109_v18 = vsel %vm1094_vm3, %v4557_v16, %v4521_v38  ;;  %v1100_v19 = vsel %vm1094_vm3, %v4646_v28, %v4676_v6  ;;  %v3110_v8 = vpack.c.bf16 %v1121_v30, %v1119_v51  ;;  %v1112_v14 = vsel %vm1094_vm3, %v4676_v6, %v4646_v28  ;;  %v1573_v28 = vld [vmem:[%s6596_s3 + $0x150] sm:$0xff] }
 0x262   : > { %v1443_v45 = vpop.permute.xlu0 %1442 }
 0x263   : > { %1926 = vmatmul.mubr.f32.gmra.mrb[8].mxu1 %v1553_v46 }
 0x264   : > { %3099 = vmatpush1.bf16.msra.mxu0 %v3098_v35  ;;  %1931 = vmatprep.mubr.f32.mxu1 %v1559_v31 }
 0x265   : > { %v988_v27 = vpop.permute.xlu1 %987  ;;  %3101 = vmatprep.subr.bf16.mxu0 %v3100_v17  ;;  %v1123_v17 = vmul.f32 %v1109_v18, %v4304_v22 }
 0x266   : > { %v1005_v1 = vsel %vm997_vm2, %v6749_v20, %v988_v27  ;;  %v1017_v7 = vsel %vm997_vm2, %v988_v27, %v6749_v20  ;;  %v1467_v2 = vpop.permute.xlu0 %1466  ;;  %v1579_v27 = vld [vmem:[%s6596_s3 + $0x180] sm:$0xff] }
 0x267   : > { %v1036_v43 = vmul.f32 %v1017_v7, %v4639_v32  ;;  %v1037_v9 = vmul.f32 %v1005_v1, %v3895_v58  ;;  %v1487_v3 = vsel %vm1482_vm1, %v1443_v45, %v1467_v2  ;;  %1932 = vmatmul.mubr.f32.gmra.mrb[10].mxu1 %v1558_v49  ;;  %v1499_v15 = vsel %vm1482_vm1, %v1467_v2, %v1443_v45  ;;  %v1578_v7 = vld [vmem:[%s6596_s3 + $0x178] sm:$0xff] }
 0x268   : > { %3103 = vmatpush1.bf16.msra.mxu0 %v3102_v26  ;;  %1937 = vmatprep.mubr.f32.mxu1 %v1564_v53  ;;  %v1515_v48 = vmul.f32 %v1487_v3, %v3900_v59  ;;  %v1516_v38 = vmul.f32 %v1499_v15, %v4501_v10  ;;  %v1110_v45 = vsel %vm1094_vm3, %v4441_v29, %v4402_v34 }
 0x269   : > { %v3106_v23 = vpack.c.bf16 %v1036_v43, %v1034_v54  ;;  %v1469_v36 = vpop.permute.xlu1 %1468  ;;  %v3104_v46 = vpack.c.bf16 %v1037_v9, %v1035_v39  ;;  %v3112_v26 = vpack.c.bf16 %v1126_v50, %v1124_v33  ;;  %v1130_v34 = vmul.f32 %v1100_v19, %v3936_v60  ;;  %v1531_v50 = vld [vmem:[%s6596_s3] sm:$0xff]  ;;  %v1588_v19 = vld [vmem:[%s6596_s3 + $0x1c8] sm:$0xff] }
 0x26a   : > { %v1488_v4 = vsel %vm1482_vm1, %v1445_v0, %v1469_v36  ;;  %v1500_v31 = vsel %vm1482_vm1, %v1469_v36, %v1445_v0  ;;  %v1059_v35 = vpop.permute.xlu0 %1058  ;;  %v1099_v0 = vsel %vm1094_vm3, %v4653_v13, %v4690_v55  ;;  %v1111_v29 = vsel %vm1094_vm3, %v4690_v55, %v4653_v13  ;;  %v1583_v36 = vld [vmem:[%s6596_s3 + $0x1a0] sm:$0xff] }
 0x26b   : > { %v1517_v16 = vmul.f32 %v1488_v4, %v3900_v59  ;;  %v1518_v40 = vmul.f32 %v1500_v31, %v4501_v10  ;;  %3105 = vmatprep.subr.bf16.mxu0 %v3104_v46  ;;  %1938 = vmatmul.mubr.f32.gmra.mrb[12].mxu1 %v1563_v11  ;;  %v1128_v51 = vmul.f32 %v1099_v0, %v3936_v60 }
 0x26c   : > { %3107 = vmatpush1.bf16.msra.mxu0 %v3106_v23  ;;  %1943 = vmatprep.mubr.f32.mxu1 %v1569_v37  ;;  %v1125_v62 = vmul.f32 %v1110_v45, %v4304_v22  ;;  %v1129_v55 = vmul.f32 %v1112_v14, %v4304_v22  ;;  %v1127_v53 = vmul.f32 %v1111_v29, %v4304_v22  ;;  %v1537_v45 = vld [vmem:[%s6596_s3 + $0x30] sm:$0xff]  ;;  %v1547_v14 = vld [vmem:[%s6596_s3 + $0x80] sm:$0xff] }
 0x26d   : > { %v3198_v61 = vpack.c.bf16 %v1517_v16, %v1515_v48  ;;  %v1061_v25 = vpop.permute.xlu1 %1060  ;;  %3109 = vmatprep.subr.bf16.mxu0 %v3108_v41  ;;  %v3196_v52 = vpack.c.bf16 %v1518_v40, %v1516_v38  ;;  %v3116_v20 = vpack.c.bf16 %v1130_v34, %v1128_v51  ;;  %v1589_v48 = vld [vmem:[%s6596_s3 + $0x1d0] sm:$0xff]  ;;  %v6751_v34 = vld [vmem:[#allocation3_spill] sm:$0xff]  ;;  %v1546_v51 = vld [vmem:[%s6596_s3 + $0x78] sm:$0xff] }
 0x26e   : > { %v1083_v49 = vpop.permute.xlu0 %1082  ;;  %v3114_v13 = vpack.c.bf16 %v1125_v62, %v1123_v17  ;;  %v3118_v43 = vpack.c.bf16 %v1129_v55, %v1127_v53  ;;  %v1540_v17 = vld [vmem:[%s6596_s3 + $0x48] sm:$0xff]  ;;  %v1545_v62 = vld [vmem:[%s6596_s3 + $0x70] sm:$0xff] }
 0x26f   : > { %1944 = vmatmul.mubr.f32.gmra.mrb[14].mxu1 %v1568_v44  ;;  %3197 = vmatprep.subr.bf16.mxu1 %v3196_v52  ;;  %v1113_v39 = vsel %vm1094_vm3, %v1083_v49, %v1059_v35  ;;  %v1101_v1 = vsel %vm1094_vm3, %v1059_v35, %v1083_v49  ;;  %v1542_v52 = vld [vmem:[%s6596_s3 + $0x58] sm:$0xff]  ;;  %v6752_v55 = vld [vmem:[#allocation4_spill] sm:$0xff] }
 0x270   : > { %3111 = vmatpush1.bf16.msra.mxu0 %v3110_v8  ;;  %3199 = vmatpush1.bf16.msra.mxu1 %v3198_v61  ;;  %v1131_v9 = vmul.f32 %v1113_v39, %v4304_v22  ;;  %v1132_v11 = vmul.f32 %v1101_v1, %v3936_v60  ;;  %v1536_v61 = vld [vmem:[%s6596_s3 + $0x28] sm:$0xff]  ;;  %v1541_v8 = vld [vmem:[%s6596_s3 + $0x50] sm:$0xff]  ;;  %v6754_v1 = vld [vmem:[#allocation6_spill] sm:$0xff] }
 0x271   : > { %v1449_v6 = vpop.permute.xlu1 %1448  ;;  %3113 = vmatprep.subr.bf16.mxu0 %v3112_v26  ;;  %1949 = vmatprep.mubr.f32.mxu1 %v1574_v42  ;;  %v6750_v26 = vld [vmem:[#allocation2_spill] sm:$0xff] }
 0x272   : > { %v1447_v54 = vpop.permute.xlu0 %1446 }
 0x273   : > { %1950 = vmatmul.mubr.f32.gmra.mrb[16].mxu1 %v1573_v28  ;;  %v1552_v28 = vld [vmem:[%s6596_s3 + $0xa8] sm:$0xff] }
 0x274   : > { %3115 = vmatpush1.bf16.msra.mxu0 %v3114_v13  ;;  %1955 = vmatprep.mubr.f32.mxu1 %v1579_v27 }
 0x275   : > { %v1085_v2 = vpop.permute.xlu1 %1084  ;;  %3117 = vmatprep.subr.bf16.mxu0 %v3116_v20 }
 0x276   : > { %v1102_v3 = vsel %vm1094_vm3, %v1061_v25, %v1085_v2  ;;  %v1114_v30 = vsel %vm1094_vm3, %v1085_v2, %v1061_v25  ;;  %v1471_v15 = vpop.permute.xlu0 %1470  ;;  %v1535_v25 = vld [vmem:[%s6596_s3 + $0x20] sm:$0xff]  ;;  %v6755_v2 = vld [vmem:[#allocation7_spill] sm:$0xff] }
 0x277   : > { %v1133_v41 = vmul.f32 %v1114_v30, %v4304_v22  ;;  %v1134_v24 = vmul.f32 %v1102_v3, %v3936_v60  ;;  %v1489_v18 = vsel %vm1482_vm1, %v1447_v54, %v1471_v15  ;;  %1956 = vmatmul.mubr.f32.gmra.mrb[18].mxu1 %v1578_v7  ;;  %v1501_v23 = vsel %vm1482_vm1, %v1471_v15, %v1447_v54  ;;  %v6753_v54 = vld [vmem:[#allocation5_spill] sm:$0xff]  ;;  %v1557_v15 = vld [vmem:[%s6596_s3 + $0xd0] sm:$0xff] }
 0x278   : > { %3119 = vmatpush1.bf16.msra.mxu0 %v3118_v43  ;;  %1961 = vmatprep.mubr.f32.mxu1 %v1584_v56  ;;  %v1519_v4 = vmul.f32 %v1489_v18, %v3900_v59  ;;  %v1520_v38 = vmul.f32 %v1501_v23, %v4501_v10  ;;  %v1551_v43 = vld [vmem:[%s6596_s3 + $0xa0] sm:$0xff]  ;;  %v1550_v30 = vld [vmem:[%s6596_s3 + $0x98] sm:$0xff]  ;;  %v1556_v23 = vld [vmem:[%s6596_s3 + $0xc8] sm:$0xff] }
 0x279   : > { %v3122_v46 = vpack.c.bf16 %v1133_v41, %v1131_v9  ;;  %v1473_v37 = vpop.permute.xlu1 %1472  ;;  %v3120_v33 = vpack.c.bf16 %v1134_v24, %v1132_v11 }
 0x27a   : > { %v1490_v31 = vsel %vm1482_vm1, %v1449_v6, %v1473_v37  ;;  %v1502_v35 = vsel %vm1482_vm1, %v1473_v37, %v1449_v6 }
 0x27b   : > { %v1521_v16 = vmul.f32 %v1490_v31, %v3900_v59  ;;  %v1522_v40 = vmul.f32 %v1502_v35, %v4501_v10  ;;  %3121 = vmatprep.subr.bf16.mxu0 %v3120_v33  ;;  %1962 = vmatmul.mubr.f32.gmra.mrb[20].mxu1 %v1583_v36  ;;  %v1555_v36 = vld [vmem:[%s6596_s3 + $0xc0] sm:$0xff] }
 0x27c   : > { %3123 = vmatpush1.bf16.msra.mxu0 %v3122_v46  ;;  %1967 = vmatprep.mubr.f32.mxu1 %v1589_v48  ;;  %v1562_v46 = vld [vmem:[%s6596_s3 + $0xf8] sm:$0xff]  ;;  %v1561_v48 = vld [vmem:[%s6596_s3 + $0xf0] sm:$0xff]  ;;  %v1567_v31 = vld [vmem:[%s6596_s3 + $0x120] sm:$0xff] }
 0x27d   : > { %v3202_v0 = vpack.c.bf16 %v1521_v16, %v1519_v4  ;;  %v3200_v44 = vpack.c.bf16 %v1522_v40, %v1520_v38  ;;  %v1560_v4 = vld [vmem:[%s6596_s3 + $0xe8] sm:$0xff]  ;;  %v1566_v16 = vld [vmem:[%s6596_s3 + $0x118] sm:$0xff]  ;;  %v1565_v40 = vld [vmem:[%s6596_s3 + $0x110] sm:$0xff] }
 0x27f   : > { %1765 = vmatmul.mubr.f32.vlgmr.msra.gmra.mrb[36].mxu0 %v1531_v50  ;;  %1968 = vmatmul.mubr.f32.gmra.mrb[22].mxu1 %v1588_v19  ;;  %v1572_v50 = vld [vmem:[%s6596_s3 + $0x148] sm:$0xff] }
 0x280   : > { %3201 = vmatprep.subr.bf16.mxu1 %v3200_v44  ;;  %1770 = vmatprep.mubr.f32.mxu0 %v1537_v45  ;;  %v6757_v45 = vld [vmem:[#allocation9_spill] sm:$0xff] }
 0x281   : > { %3203 = vmatpush1.bf16.msra.mxu1 %v3202_v0  ;;  %2038 = vmatprep.mubr.f32.mxu1 %v6723_v5  ;;  %v6756_v0 = vld [vmem:[#allocation8_spill] sm:$0xff] }
 0x283   : > { %1771 = vmatmul.mubr.f32.gmra.mrb[38].mxu0 %v1536_v61 }
 0x284   : > { %3039 = vmatmul.mubr.msk.f32.vlgmr.msra.gmra.mrb[0].mxu1 %vm1663_vm4, %v1535_v25  ;;  %1776 = vmatprep.mubr.f32.mxu0 %v1542_v52  ;;  %v6758_v52 = vld [vmem:[#allocation10_spill] sm:$0xff] }
 0x285   : > { %2044 = vmatprep.mubr.f32.mxu1 %v6723_v5 }
 0x287   : > { %v393_v49 = vpop.permute.xlu0 %392  ;;  %1777 = vmatmul.mubr.f32.gmra.mrb[40].mxu0 %v1541_v8 }
 0x288   : > { %v609_v42 = vadd.f32 %v6750_v26, %v393_v49  ;;  %v611_v29 = vadd.f32 %v6751_v34, %v393_v49  ;;  %3040 = vmatmul.mubr.msk.f32.gmra.mrb[2].mxu1 %vm1663_vm4, %v1540_v17  ;;  %1782 = vmatprep.mubr.f32.mxu0 %v1547_v14  ;;  %v6759_v17 = vld [vmem:[#allocation11_spill] sm:$0xff]  ;;  %v1571_v49 = vld [vmem:[%s6596_s3 + $0x140] sm:$0xff]  ;;  %v1570_v34 = vld [vmem:[%s6596_s3 + $0x138] sm:$0xff] }
 0x289   : > { %2050 = vmatprep.mubr.f32.mxu1 %v6723_v5 }
 0x28a   : > { %v715_v6 = vmax.f32 %v609_v42, 0.0  ;;  %v716_v27 = vmax.f32 %v611_v29, 0.0  ;;  %v398_v13 = vpop.permute.xlu1 %397  ;;  %v1577_v29 = vld [vmem:[%s6596_s3 + $0x170] sm:$0xff] }
 0x28b   : > { %v615_v53 = vadd.f32 %v6752_v55, %v398_v13  ;;  %v617_v39 = vadd.f32 %v6753_v54, %v398_v13  ;;  %v403_v20 = vpop.permute.xlu0 %402  ;;  %1783 = vmatmul.mubr.f32.gmra.mrb[42].mxu0 %v1546_v51  ;;  %v6761_v13 = vld [vmem:[#allocation13_spill] sm:$0xff]  ;;  %v6762_v54 = vld [vmem:[#allocation35_spill] sm:$0xff] }
 0x28c   : > { %727 = vst [vmem:[%s4898_s24] sm:$0xff] %v715_v6  ;;  %728 = vst [vmem:[%s4898_s24 + $0x8] sm:$0xff] %v716_v27  ;;  %v621_v7 = vadd.f32 %v6754_v1, %v403_v20  ;;  %v623_v56 = vadd.f32 %v6755_v2, %v403_v20  ;;  %3041 = vmatmul.mubr.msk.f32.gmra.mrb[4].mxu1 %vm1663_vm4, %v1545_v62  ;;  %1788 = vmatprep.mubr.f32.mxu0 %v1552_v28  ;;  %v6760_v6 = vld [vmem:[#allocation12_spill] sm:$0xff]  ;;  %v1576_v20 = vld [vmem:[%s6596_s3 + $0x168] sm:$0xff] }
 0x28d   : > { %v717_v9 = vmax.f32 %v615_v53, 0.0  ;;  %v718_v3 = vmax.f32 %v617_v39, 0.0  ;;  %2056 = vmatprep.mubr.f32.mxu1 %v6723_v5  ;;  %v1575_v2 = vld [vmem:[%s6596_s3 + $0x160] sm:$0xff] }
 0x28e   : > { %v719_v11 = vmax.f32 %v621_v7, 0.0  ;;  %v720_v41 = vmax.f32 %v623_v56, 0.0  ;;  %v4924_v24 = vpop.permute.xlu1 %1635  ;;  %v1582_v56 = vld [vmem:[%s6596_s3 + $0x198] sm:$0xff] }
 0x28f   : > { %729 = vst [vmem:[%s4898_s24 + $0x10] sm:$0xff] %v717_v9  ;;  %730 = vst [vmem:[%s4898_s24 + $0x18] sm:$0xff] %v718_v3  ;;  %v4928_v18 = vpop.permute.xlu0 %1640  ;;  %1789 = vmatmul.mubr.f32.gmra.mrb[44].mxu0 %v1551_v43  ;;  %v6763_v9 = vld [vmem:[#allocation37_spill] sm:$0xff] }
 0x290   : > { %731 = vst [vmem:[%s4898_s24 + $0x20] sm:$0xff] %v719_v11  ;;  %732 = vst [vmem:[%s4898_s24 + $0x28] sm:$0xff] %v720_v41  ;;  %3042 = vmatmul.mubr.msk.f32.gmra.mrb[6].mxu1 %vm1663_vm4, %v1550_v30  ;;  %1794 = vmatprep.mubr.f32.mxu0 %v1557_v15  ;;  %v6764_v15 = vld [vmem:[#allocation41_spill] sm:$0xff]  ;;  %v1581_v41 = vld [vmem:[%s6596_s3 + $0x190] sm:$0xff] }
 0x291   : > { %2062 = vmatprep.mubr.f32.mxu1 %v6723_v5 }
 0x292   : > { %v4943_v37 = vpop.permute.xlu1 %1645 }
 0x293   : > { %v4945_v33 = vpop.permute.xlu0 %1650  ;;  %1795 = vmatmul.mubr.f32.gmra.mrb[46].mxu0 %v1556_v23  ;;  %v1580_v23 = vld [vmem:[%s6596_s3 + $0x188] sm:$0xff] }
 0x294   : > { %3043 = vmatmul.mubr.msk.f32.gmra.mrb[8].mxu1 %vm1663_vm4, %v1555_v36  ;;  %1800 = vmatprep.mubr.f32.mxu0 %v1562_v46  ;;  %v1587_v36 = vld [vmem:[%s6596_s3 + $0x1c0] sm:$0xff] }
 0x295   : > { %2068 = vmatprep.mubr.f32.mxu1 %v6723_v5 }
 0x296   : > { %v4958_v35 = vpop.permute.xlu1 %1655 }
 0x297   : > { %v4960_v38 = vpop.permute.xlu0 %1660  ;;  %1801 = vmatmul.mubr.f32.gmra.mrb[48].mxu0 %v1561_v48  ;;  %v6765_v48 = vld [vmem:[#allocation44_spill] sm:$0xff] }
 0x298   : > { %3044 = vmatmul.mubr.msk.f32.gmra.mrb[10].mxu1 %vm1663_vm4, %v1560_v4  ;;  %1806 = vmatprep.mubr.f32.mxu0 %v1567_v31  ;;  %v6766_v31 = vld [vmem:[#allocation36_spill] sm:$0xff] }
 0x299   : > { %2074 = vmatprep.mubr.f32.mxu1 %v6723_v5 }
 0x29a   : > { %v408_v19 = vpop.permute.xlu1 %407 }
 0x29b   : > { %v627_v44 = vadd.f32 %v6756_v0, %v408_v19  ;;  %v629_v61 = vadd.f32 %v6757_v45, %v408_v19  ;;  %v413_v25 = vpop.permute.xlu0 %412  ;;  %1807 = vmatmul.mubr.f32.gmra.mrb[50].mxu0 %v1566_v16  ;;  %v6767_v19 = vld [vmem:[#allocation39_spill] sm:$0xff] }
 0x29c   : > { %v633_v8 = vadd.f32 %v6758_v52, %v413_v25  ;;  %v635_v14 = vadd.f32 %v6759_v17, %v413_v25  ;;  %3045 = vmatmul.mubr.msk.f32.gmra.mrb[12].mxu1 %vm1663_vm4, %v1565_v40  ;;  %1812 = vmatprep.mubr.f32.mxu0 %v1572_v50  ;;  %v1586_v40 = vld [vmem:[%s6596_s3 + $0x1b8] sm:$0xff]  ;;  %v1585_v50 = vld [vmem:[%s6596_s3 + $0x1b0] sm:$0xff] }
 0x29d   : > { %v721_v26 = vmax.f32 %v627_v44, 0.0  ;;  %v722_v42 = vmax.f32 %v629_v61, 0.0  ;;  %2080 = vmatprep.mubr.f32.mxu1 %v6723_v5  ;;  %v6768_v44 = vld [vmem:[#allocation42_spill] sm:$0xff]  ;;  %v1590_v61 = vld [vmem:[%s6596_s3 + $0x1d8] sm:$0xff] }
 0x29e   : > { %v723_v51 = vmax.f32 %v633_v8, 0.0  ;;  %v724_v62 = vmax.f32 %v635_v14, 0.0  ;;  %v418_v28 = vpop.permute.xlu1 %417  ;;  %v6769_v25 = vld [vmem:[#allocation45_spill] sm:$0xff] }
 0x29f   : > { %733 = vst [vmem:[%s4898_s24 + $0x30] sm:$0xff] %v721_v26  ;;  %734 = vst [vmem:[%s4898_s24 + $0x38] sm:$0xff] %v722_v42  ;;  %v639_v27 = vadd.f32 %v6760_v6, %v418_v28  ;;  %v641_v55 = vadd.f32 %v6761_v13, %v418_v28  ;;  %v463_v53 = vpop.permute.xlu0 %462  ;;  %1813 = vmatmul.mubr.f32.gmra.mrb[52].mxu0 %v1571_v49 }
 0x2a0   : > { %735 = vst [vmem:[%s4898_s24 + $0x40] sm:$0xff] %v723_v51  ;;  %736 = vst [vmem:[%s4898_s24 + $0x48] sm:$0xff] %v724_v62  ;;  %v4995_v39 = vadd.f32 %v6762_v54, %v463_v53  ;;  %3046 = vmatmul.mubr.msk.f32.gmra.mrb[14].mxu1 %vm1663_vm4, %v1570_v34  ;;  %1818 = vmatprep.mubr.f32.mxu0 %v1577_v29  ;;  %v5037_v16 = vadd.f32 %v6766_v31, %v463_v53 }
 0x2a1   : > { %v725_v1 = vmax.f32 %v639_v27, 0.0  ;;  %v726_v7 = vmax.f32 %v641_v55, 0.0  ;;  %2086 = vmatprep.mubr.f32.mxu1 %v6723_v5 }
 0x2a2   : > { %771 = vrot.lane.b32.xlu0 %v4995_v39, %s3442_s17  ;;  %v468_v43 = vpop.permute.xlu1 %467 }
 0x2a3   : > { %737 = vst [vmem:[%s4898_s24 + $0x50] sm:$0xff] %v725_v1  ;;  %738 = vst [vmem:[%s4898_s24 + $0x58] sm:$0xff] %v726_v7  ;;  %v5013_v3 = vadd.f32 %v6763_v9, %v468_v43  ;;  %v473_v30 = vpop.permute.xlu0 %472  ;;  %1819 = vmatmul.mubr.f32.gmra.mrb[54].mxu0 %v1576_v20  ;;  %v5052_v0 = vadd.f32 %v6767_v19, %v468_v43 }
 0x2a4   : > { %v5016_v11 = vadd.f32 %v6764_v15, %v473_v30  ;;  %3047 = vmatmul.mubr.msk.f32.gmra.mrb[16].mxu1 %vm1663_vm4, %v1575_v2  ;;  %1824 = vmatprep.mubr.f32.mxu0 %v1582_v56  ;;  %v5055_v45 = vadd.f32 %v6768_v44, %v473_v30 }
 0x2a5   : > { %773 = vrot.lane.b32.xlu1 %v5013_v3, %s3442_s17  ;;  %2092 = vmatprep.mubr.f32.mxu1 %v6723_v5 }
 0x2a6   : > { %775 = vrot.lane.b32.xlu0 %v5016_v11, %s3442_s17  ;;  %v478_v46 = vpop.permute.xlu1 %477 }
 0x2a7   : > { %v5034_v4 = vadd.f32 %v6765_v48, %v478_v46  ;;  %1825 = vmatmul.mubr.f32.gmra.mrb[56].mxu0 %v1581_v41  ;;  %v5067_v52 = vadd.f32 %v6769_v25, %v478_v46 }
 0x2a8   : > { %3048 = vmatmul.mubr.msk.f32.gmra.mrb[18].mxu1 %vm1663_vm4, %v1580_v23  ;;  %1830 = vmatprep.mubr.f32.mxu0 %v1587_v36 }
 0x2a9   : > { %777 = vrot.lane.b32.xlu1 %v5034_v4, %s3442_s17  ;;  %2098 = vmatprep.mubr.f32.mxu1 %v6723_v5 }
 0x2aa   : > { %795 = vrot.lane.b32.xlu0 %v5037_v16, %s3442_s17 }
 0x2ab   : > { %1831 = vmatmul.mubr.f32.gmra.mrb[58].mxu0 %v1586_v40 }
 0x2ac   : > { %3049 = vmatmul.mubr.msk.f32.gmra.mrb[20].mxu1 %vm1663_vm4, %v1585_v50 }
 0x2ad   : > { %797 = vrot.lane.b32.xlu1 %v5052_v0, %s3442_s17  ;;  %2104 = vmatprep.mubr.f32.mxu1 %v6723_v5 }
 0x2ae   : > { %799 = vrot.lane.b32.xlu0 %v5055_v45, %s3442_s17 }
 0x2b0   : > { %3050 = vmatmul.mubr.msk.f32.gmra.mrb[22].mxu1 %vm1663_vm4, %v1590_v61 }
 0x2b1   : > { %801 = vrot.lane.b32.xlu1 %v5067_v52, %s3442_s17 }
 0x2b2   : > { %868 = vrot.lane.b32.xlu0 %v4995_v39, %s3444_s19 }
 0x352   : > { %v5074_v8 = vpop.f32.mrb[36].mxu0 }
 0x353   : > { %6770 = vst [vmem:[#allocation31_spill] sm:$0xff] %v5074_v8  ;;  %v5076_v5 = vpop.f32.mrb[37].mxu0 }
 0x354   : > { %6771 = vst [vmem:[#allocation27_spill] sm:$0xff] %v5076_v5 }
 0x356   : > { %v5078_v17 = vpop.f32.mrb[38].mxu0 }
 0x357   : > { %6772 = vst [vmem:[#allocation30_spill] sm:$0xff] %v5078_v17  ;;  %v5080_v14 = vpop.f32.mrb[0].mxu1  ;;  %v5082_v49 = vpop.f32.mrb[39].mxu0 }
 0x358   : > { %6773 = vst [vmem:[#allocation22_spill] sm:$0xff] %v5080_v14  ;;  %6774 = vst [vmem:[#allocation16_spill] sm:$0xff] %v5082_v49  ;;  %v5084_v26 = vpop.f32.mrb[1].mxu1 }
 0x359   : > { %6775 = vst [vmem:[#allocation21_spill] sm:$0xff] %v5084_v26 }
 0x35a   : > { %v5086_v42 = vpop.f32.mrb[40].mxu0 }
 0x35b   : > { %6776 = vst [vmem:[#allocation15_spill] sm:$0xff] %v5086_v42  ;;  %v5088_v34 = vpop.f32.mrb[2].mxu1  ;;  %v5090_v29 = vpop.f32.mrb[41].mxu0 }
 0x35c   : > { %6777 = vst [vmem:[#allocation34_spill] sm:$0xff] %v5088_v34  ;;  %6778 = vst [vmem:[#allocation26_spill] sm:$0xff] %v5090_v29  ;;  %v5092_v51 = vpop.f32.mrb[3].mxu1 }
 0x35d   : > { %6779 = vst [vmem:[#allocation24_spill] sm:$0xff] %v5092_v51 }
 0x35e   : > { %v5094_v62 = vpop.f32.mrb[42].mxu0 }
 0x35f   : > { %6780 = vst [vmem:[#allocation38_spill] sm:$0xff] %v5094_v62  ;;  %v5096_v28 = vpop.f32.mrb[4].mxu1  ;;  %v5098_v6 = vpop.f32.mrb[43].mxu0 }
 0x360   : > { %6781 = vst [vmem:[#allocation14_spill] sm:$0xff] %v5096_v28  ;;  %6782 = vst [vmem:[#allocation25_spill] sm:$0xff] %v5098_v6  ;;  %v5100_v27 = vpop.f32.mrb[5].mxu1 }
 0x361   : > { %6783 = vst [vmem:[#allocation23_spill] sm:$0xff] %v5100_v27 }
 0x362   : > { %v5102_v13 = vpop.f32.mrb[44].mxu0 }
 0x363   : > { %6784 = vst [vmem:[#allocation33_spill] sm:$0xff] %v5102_v13  ;;  %v5104_v55 = vpop.f32.mrb[6].mxu1  ;;  %v5106_v53 = vpop.f32.mrb[45].mxu0 }
 0x364   : > { %6785 = vst [vmem:[#allocation29_spill] sm:$0xff] %v5104_v55  ;;  %6786 = vst [vmem:[#allocation32_spill] sm:$0xff] %v5106_v53  ;;  %v5108_v54 = vpop.f32.mrb[7].mxu1 }
 0x365   : > { %6787 = vst [vmem:[#allocation28_spill] sm:$0xff] %v5108_v54 }
 0x366   : > { %v5110_v20 = vpop.f32.mrb[46].mxu0 }
 0x367   : > { %6788 = vst [vmem:[#allocation18_spill] sm:$0xff] %v5110_v20  ;;  %v5112_v1 = vpop.f32.mrb[8].mxu1  ;;  %v5114_v7 = vpop.f32.mrb[47].mxu0 }
 0x368   : > { %6789 = vst [vmem:[#allocation46_spill] sm:$0xff] %v5112_v1  ;;  %6790 = vst [vmem:[#allocation17_spill] sm:$0xff] %v5114_v7  ;;  %v5116_v2 = vpop.f32.mrb[9].mxu1 }
 0x369   : > { %6791 = vst [vmem:[#allocation40_spill] sm:$0xff] %v5116_v2 }
 0x36a   : > { %v1802_v56 = vpop.f32.mrb[48].mxu0 }
 0x36b   : > { %v5118_v43 = vpop.f32.mrb[10].mxu1  ;;  %v1804_v9 = vpop.f32.mrb[49].mxu0  ;;  %v1803_v15 = vadd.f32 %v1802_v56, %v4924_v24 }
 0x36c   : > { %6792 = vst [vmem:[#allocation43_spill] sm:$0xff] %v5118_v43  ;;  %v5120_v30 = vpop.f32.mrb[11].mxu1  ;;  %v1805_v23 = vadd.f32 %v1804_v9, %v4924_v24 }
 0x36d   : > { %6793 = vst [vmem:[#allocation2_spill] sm:$0xff] %v5120_v30 }
 0x36e   : > { %v1808_v41 = vpop.f32.mrb[50].mxu0 }
 0x36f   : > { %v2076_v36 = vpop.f32.mrb[12].mxu1  ;;  %v1810_v46 = vpop.f32.mrb[51].mxu0  ;;  %v1809_v50 = vadd.f32 %v1808_v41, %v4928_v18 }
 0x370   : > { %v3337_v48 = vadd.f32 %v2076_v36, %v1803_v15  ;;  %v2078_v31 = vpop.f32.mrb[13].mxu1  ;;  %v1811_v61 = vadd.f32 %v1810_v46, %v4928_v18 }
 0x371   : > { %v3339_v40 = vadd.f32 %v2078_v31, %v1805_v23 }
 0x372   : > { %v5125_v19 = vmax.f32 %v3337_v48, 0.0  ;;  %v1814_v44 = vpop.f32.mrb[52].mxu0 }
 0x373   : > { %v2082_v25 = vpop.f32.mrb[14].mxu1  ;;  %v1816_v43 = vpop.f32.mrb[53].mxu0  ;;  %v1815_v56 = vadd.f32 %v1814_v44, %v4943_v37 }
 0x374   : > { %6794 = vst [vmem:[#allocation3_spill] sm:$0xff] %v5125_v19  ;;  %v3341_v30 = vadd.f32 %v2082_v25, %v1809_v50  ;;  %v2084_v7 = vpop.f32.mrb[15].mxu1  ;;  %2147 = vrot.lane.b32.xlu1 %v5125_v19, %s3442_s17  ;;  %v1817_v41 = vadd.f32 %v1816_v43, %v4943_v37 }
 0x375   : > { %v3343_v24 = vadd.f32 %v2084_v7, %v1811_v61 }
 0x376   : > { %v5131_v9 = vmax.f32 %v3341_v30, 0.0  ;;  %v1820_v15 = vpop.f32.mrb[54].mxu0 }
 0x377   : > { %v2088_v23 = vpop.f32.mrb[16].mxu1  ;;  %v1822_v36 = vpop.f32.mrb[55].mxu0  ;;  %v1821_v7 = vadd.f32 %v1820_v15, %v4945_v33 }
 0x378   : > { %6795 = vst [vmem:[#allocation4_spill] sm:$0xff] %v5131_v9  ;;  %v3345_v48 = vadd.f32 %v2088_v23, %v1815_v56  ;;  %v2090_v31 = vpop.f32.mrb[17].mxu1  ;;  %2149 = vrot.lane.b32.xlu0 %v5131_v9, %s3442_s17  ;;  %2195 = vrot.lane.b32.xlu1 %v5125_v19, %s3444_s19  ;;  %v1823_v30 = vadd.f32 %v1822_v36, %v4945_v33 }
 0x379   : > { %v3347_v18 = vadd.f32 %v2090_v31, %v1817_v41 }
 0x37a   : > { %v1826_v46 = vpop.f32.mrb[56].mxu0 }
 0x37b   : > { %v2094_v50 = vpop.f32.mrb[18].mxu1  ;;  %v1828_v44 = vpop.f32.mrb[57].mxu0  ;;  %v1827_v25 = vadd.f32 %v1826_v46, %v4958_v35 }
 0x37c   : > { %v3349_v61 = vadd.f32 %v2094_v50, %v1821_v7  ;;  %v2096_v37 = vpop.f32.mrb[19].mxu1  ;;  %2197 = vrot.lane.b32.xlu0 %v5131_v9, %s3444_s19  ;;  %2243 = vrot.lane.b32.xlu1 %v5125_v19, %s3445_s20  ;;  %v1829_v41 = vadd.f32 %v1828_v44, %v4958_v35 }
 0x37d   : > { %v3351_v43 = vadd.f32 %v2096_v37, %v1823_v30  ;;  %v5166_v37 = vmax.f32 %v3339_v40, 0.0  ;;  %v5194_v40 = vmax.f32 %v3345_v48, 0.0  ;;  %v5226_v48 = vmax.f32 %v3347_v18, 0.0  ;;  %v5246_v18 = vpop.permute.xlu0 %771 }
 0x37e   : > { %v1832_v56 = vpop.f32.mrb[58].mxu0  ;;  %6802 = vst [vmem:[#allocation11_spill] sm:$0xff] %v5246_v18  ;;  %v2532_v18 = vld [vmem:[%s6598_s5 + $0x8] sm:$0xff] }
 0x37f   : > { %v2100_v15 = vpop.f32.mrb[20].mxu1  ;;  %v1834_v23 = vpop.f32.mrb[59].mxu0  ;;  %v1833_v7 = vadd.f32 %v1832_v56, %v4960_v38  ;;  %6796 = vst [vmem:[#allocation5_spill] sm:$0xff] %v5166_v37  ;;  %6798 = vst [vmem:[#allocation7_spill] sm:$0xff] %v5194_v40  ;;  %2674 = vmatprep.mubr.f32.mxu0 %v2532_v18 }
 0x380   : > { %v5146_v31 = vadd.f32 %v2100_v15, %v1827_v25  ;;  %v2102_v33 = vpop.f32.mrb[21].mxu1  ;;  %2245 = vrot.lane.b32.xlu0 %v5131_v9, %s3445_s20  ;;  %2387 = vrot.lane.b32.xlu1 %v5125_v19, %s3441_s16  ;;  %v1835_v46 = vadd.f32 %v1834_v23, %v4960_v38  ;;  %v5172_v38 = vmax.f32 %v3343_v24, 0.0  ;;  %v5200_v24 = vmax.f32 %v3349_v61, 0.0  ;;  %6800 = vst [vmem:[#allocation9_spill] sm:$0xff] %v5226_v48 }
 0x381   : > { %v5152_v36 = vadd.f32 %v2102_v33, %v1829_v41  ;;  %v5232_v61 = vmax.f32 %v3351_v43, 0.0  ;;  %v5248_v43 = vpop.permute.xlu1 %773  ;;  %v5254_v25 = vpop.permute.xlu0 %775 }
 0x382   : > { %6797 = vst [vmem:[#allocation6_spill] sm:$0xff] %v5172_v38  ;;  %6799 = vst [vmem:[#allocation8_spill] sm:$0xff] %v5200_v24  ;;  %v5269_v15 = vmax.f32 %v5146_v31, 0.0 }
 0x383   : > { %v2106_v30 = vpop.f32.mrb[22].mxu1  ;;  %6801 = vst [vmem:[#allocation10_spill] sm:$0xff] %v5232_v61  ;;  %6803 = vst [vmem:[#allocation12_spill] sm:$0xff] %v5248_v43  ;;  %v5320_v55 = vmax.f32 %v5152_v36, 0.0 }
 0x384   : > { %v3357_v50 = vadd.f32 %v2106_v30, %v1833_v7  ;;  %v2108_v35 = vpop.f32.mrb[23].mxu1  ;;  %2389 = vrot.lane.b32.xlu0 %v5131_v9, %s3441_s16  ;;  %2291 = vrot.lane.b32.xlu1 %v5125_v19, %s3446_s21  ;;  %6804 = vst [vmem:[#allocation13_spill] sm:$0xff] %v5254_v25  ;;  %6807 = vst [vmem:[#allocation41_spill] sm:$0xff] %v5269_v15 }
 0x385   : > { %v5160_v44 = vadd.f32 %v2108_v35, %v1835_v46  ;;  %v5260_v56 = vpop.permute.xlu1 %777  ;;  %v5266_v41 = vpop.permute.xlu0 %795  ;;  %6813 = vst [vmem:[#allocation49_spill] sm:$0xff] %v5320_v55 }
 0x386   : > { %6805 = vst [vmem:[#allocation35_spill] sm:$0xff] %v5260_v56  ;;  %6806 = vst [vmem:[#allocation37_spill] sm:$0xff] %v5266_v41  ;;  %v5277_v33 = vmax.f32 %v3357_v50, 0.0 }
 0x387   : > { %v5331_v6 = vmax.f32 %v5160_v44, 0.0 }
 0x388   : > { %2293 = vrot.lane.b32.xlu0 %v5131_v9, %s3446_s21  ;;  %2435 = vrot.lane.b32.xlu1 %v5125_v19, %s3443_s18  ;;  %6809 = vst [vmem:[#allocation36_spill] sm:$0xff] %v5277_v33 }
 0x389   : > { %v5271_v23 = vpop.permute.xlu1 %797  ;;  %v5279_v7 = vpop.permute.xlu0 %799  ;;  %6814 = vst [vmem:[#allocation50_spill] sm:$0xff] %v5331_v6 }
 0x38a   : > { %6808 = vst [vmem:[#allocation44_spill] sm:$0xff] %v5271_v23  ;;  %6810 = vst [vmem:[#allocation39_spill] sm:$0xff] %v5279_v7 }
 0x38c   : > { %2437 = vrot.lane.b32.xlu0 %v5131_v9, %s3443_s18  ;;  %2159 = vrot.lane.b32.xlu1 %v5166_v37, %s3442_s17 }
 0x38d   : > { %v5285_v31 = vpop.permute.xlu1 %801  ;;  %v5291_v46 = vpop.permute.xlu0 %868 }
 0x38e   : > { %6811 = vst [vmem:[#allocation42_spill] sm:$0xff] %v5285_v31  ;;  %6812 = vst [vmem:[#allocation45_spill] sm:$0xff] %v5291_v46 }
 0x390   : > { %2161 = vrot.lane.b32.xlu0 %v5172_v38, %s3442_s17  ;;  %2207 = vrot.lane.b32.xlu1 %v5166_v37, %s3444_s19 }
 0x394   : > { %2209 = vrot.lane.b32.xlu0 %v5172_v38, %s3444_s19  ;;  %2255 = vrot.lane.b32.xlu1 %v5166_v37, %s3445_s20 }
 0x398   : > { %2257 = vrot.lane.b32.xlu0 %v5172_v38, %s3445_s20  ;;  %2399 = vrot.lane.b32.xlu1 %v5166_v37, %s3441_s16 }
 0x39c   : > { %2401 = vrot.lane.b32.xlu0 %v5172_v38, %s3441_s16  ;;  %2303 = vrot.lane.b32.xlu1 %v5166_v37, %s3446_s21 }
 0x3a0   : > { %2305 = vrot.lane.b32.xlu0 %v5172_v38, %s3446_s21  ;;  %2447 = vrot.lane.b32.xlu1 %v5166_v37, %s3443_s18 }
 0x3a4   : > { %2449 = vrot.lane.b32.xlu0 %v5172_v38, %s3443_s18  ;;  %2151 = vrot.lane.b32.xlu1 %v5194_v40, %s3442_s17 }
 0x3a8   : > { %2153 = vrot.lane.b32.xlu0 %v5200_v24, %s3442_s17  ;;  %2199 = vrot.lane.b32.xlu1 %v5194_v40, %s3444_s19 }
 0x3ac   : > { %2201 = vrot.lane.b32.xlu0 %v5200_v24, %s3444_s19  ;;  %2343 = vrot.lane.b32.xlu1 %v5194_v40, %s3440_s15 }
 0x3b0   : > { %2345 = vrot.lane.b32.xlu0 %v5200_v24, %s3440_s15  ;;  %2247 = vrot.lane.b32.xlu1 %v5194_v40, %s3445_s20 }
 0x3b4   : > { %2249 = vrot.lane.b32.xlu0 %v5200_v24, %s3445_s20  ;;  %2391 = vrot.lane.b32.xlu1 %v5194_v40, %s3441_s16 }
 0x3b8   : > { %2393 = vrot.lane.b32.xlu0 %v5200_v24, %s3441_s16  ;;  %2295 = vrot.lane.b32.xlu1 %v5194_v40, %s3446_s21 }
 0x3bc   : > { %2297 = vrot.lane.b32.xlu0 %v5200_v24, %s3446_s21  ;;  %2439 = vrot.lane.b32.xlu1 %v5194_v40, %s3443_s18 }
 0x3c0   : > { %2441 = vrot.lane.b32.xlu0 %v5200_v24, %s3443_s18  ;;  %2163 = vrot.lane.b32.xlu1 %v5226_v48, %s3442_s17 }
 0x3c4   : > { %2165 = vrot.lane.b32.xlu0 %v5232_v61, %s3442_s17  ;;  %2211 = vrot.lane.b32.xlu1 %v5226_v48, %s3444_s19 }
 0x3c8   : > { %2213 = vrot.lane.b32.xlu0 %v5232_v61, %s3444_s19  ;;  %2355 = vrot.lane.b32.xlu1 %v5226_v48, %s3440_s15 }
 0x3cc   : > { %2357 = vrot.lane.b32.xlu0 %v5232_v61, %s3440_s15  ;;  %2259 = vrot.lane.b32.xlu1 %v5226_v48, %s3445_s20 }
 0x3d0   : > { %2261 = vrot.lane.b32.xlu0 %v5232_v61, %s3445_s20  ;;  %2403 = vrot.lane.b32.xlu1 %v5226_v48, %s3441_s16 }
 0x3d4   : > { %2405 = vrot.lane.b32.xlu0 %v5232_v61, %s3441_s16  ;;  %2307 = vrot.lane.b32.xlu1 %v5226_v48, %s3446_s21 }
 0x3d8   : > { %2309 = vrot.lane.b32.xlu0 %v5232_v61, %s3446_s21  ;;  %2451 = vrot.lane.b32.xlu1 %v5226_v48, %s3443_s18 }
 0x3dc   : > { %2453 = vrot.lane.b32.xlu0 %v5232_v61, %s3443_s18  ;;  %2155 = vrot.lane.b32.xlu1 %v5269_v15, %s3442_s17 }
 0x3e0   : > { %2157 = vrot.lane.b32.xlu0 %v5277_v33, %s3442_s17  ;;  %2203 = vrot.lane.b32.xlu1 %v5269_v15, %s3444_s19 }
 0x3e4   : > { %2205 = vrot.lane.b32.xlu0 %v5277_v33, %s3444_s19  ;;  %2347 = vrot.lane.b32.xlu1 %v5269_v15, %s3440_s15 }
 0x3e6   : > { %v2148_v30 = vpop.permute.xlu1 %2147 }
 0x3e8   : > { %2349 = vrot.lane.b32.xlu0 %v5277_v33, %s3440_s15  ;;  %2251 = vrot.lane.b32.xlu1 %v5269_v15, %s3445_s20 }
 0x3ea   : > { %v2150_v50 = vpop.permute.xlu0 %2149  ;;  %v5297_v35 = vpop.permute.xlu1 %2195 }
 0x3ec   : > { %2253 = vrot.lane.b32.xlu0 %v5277_v33, %s3445_s20  ;;  %2395 = vrot.lane.b32.xlu1 %v5269_v15, %s3441_s16 }
 0x3ee   : > { %v5303_v20 = vpop.permute.xlu0 %2197  ;;  %v5305_v2 = vpop.permute.xlu1 %2243 }
 0x3f0   : > { %2397 = vrot.lane.b32.xlu0 %v5277_v33, %s3441_s16  ;;  %2299 = vrot.lane.b32.xlu1 %v5269_v15, %s3446_s21 }
 0x3f2   : > { %v5311_v1 = vpop.permute.xlu0 %2245  ;;  %v5313_v54 = vpop.permute.xlu1 %2387 }
 0x3f4   : > { %2301 = vrot.lane.b32.xlu0 %v5277_v33, %s3446_s21  ;;  %2443 = vrot.lane.b32.xlu1 %v5269_v15, %s3443_s18 }
 0x3f6   : > { %v5322_v53 = vpop.permute.xlu0 %2389  ;;  %v5324_v13 = vpop.permute.xlu1 %2291 }
 0x3f8   : > { %2445 = vrot.lane.b32.xlu0 %v5277_v33, %s3443_s18  ;;  %2167 = vrot.lane.b32.xlu1 %v5320_v55, %s3442_s17 }
 0x3fa   : > { %v5333_v62 = vpop.permute.xlu0 %2293  ;;  %v5335_v27 = vpop.permute.xlu1 %2435 }
 0x3fc   : > { %2169 = vrot.lane.b32.xlu0 %v5331_v6, %s3442_s17  ;;  %2483 = vrot.lane.b32.xlu1 %v5125_v19, %s3447_s10 }
 0x3fe   : > { %v5341_v36 = vpop.permute.xlu0 %2437  ;;  %v2160_v28 = vpop.permute.xlu1 %2159 }
 0x3ff   : > { %v2177_v51 = vsel %vm803_vm12, %v2160_v28, %v2148_v30  ;;  %v2171_v44 = vsel %vm803_vm12, %v2148_v30, %v2160_v28 }
 0x400   : > { %2485 = vrot.lane.b32.xlu0 %v5131_v9, %s3447_s10  ;;  %2215 = vrot.lane.b32.xlu1 %v5320_v55, %s3444_s19  ;;  %v2183_v42 = vmul.f32 %v2177_v51, %v3931_v57  ;;  %v2184_v26 = vmul.f32 %v2171_v44, %v3936_v60 }
 0x402   : > { %v2162_v34 = vpop.permute.xlu0 %2161  ;;  %v5351_v29 = vpop.permute.xlu1 %2207 }
 0x403   : > { %v2172_v49 = vsel %vm803_vm12, %v2150_v50, %v2162_v34  ;;  %v2178_v17 = vsel %vm803_vm12, %v2162_v34, %v2150_v50 }
 0x404   : > { %v2185_v14 = vmul.f32 %v2178_v17, %v3931_v57  ;;  %v2186_v5 = vmul.f32 %v2172_v49, %v3936_v60  ;;  %2497 = vrot.lane.b32.xlu0 %v5172_v38, %s3447_s10  ;;  %2359 = vrot.lane.b32.xlu1 %v5320_v55, %s3440_s15 }
 0x406   : > { %v3206_v28 = vpack.c.bf16 %v2185_v14, %v2183_v42  ;;  %v5365_v51 = vpop.permute.xlu0 %2209  ;;  %v5367_v30 = vpop.permute.xlu1 %2255  ;;  %v3204_v8 = vpack.c.bf16 %v2186_v5, %v2184_v26 }
 0x408   : > { %2217 = vrot.lane.b32.xlu0 %v5331_v6, %s3444_s19  ;;  %2263 = vrot.lane.b32.xlu1 %v5320_v55, %s3445_s20 }
 0x409   : > { %3205 = vmatprep.subr.bf16.mxu0 %v3204_v8 }
 0x40a   : > { %3207 = vmatpush1.bf16.msra.mxu0 %v3206_v28  ;;  %v5373_v17 = vpop.permute.xlu0 %2257  ;;  %v5375_v49 = vpop.permute.xlu1 %2399 }
 0x40c   : > { %2489 = vrot.lane.b32.xlu0 %v5200_v24, %s3447_s10  ;;  %2407 = vrot.lane.b32.xlu1 %v5320_v55, %s3441_s16  ;;  %v2534_v24 = vld [vmem:[%s6598_s5 + $0x18] sm:$0xff] }
 0x40d   : > { %3051 = vmatprep.mubr.msk.f32.mxu1 %vm2591_vm5, %v2534_v24 }
 0x40e   : > { %v5381_v14 = vpop.permute.xlu0 %2401  ;;  %v5383_v5 = vpop.permute.xlu1 %2303 }
 0x410   : > { %2361 = vrot.lane.b32.xlu0 %v5331_v6, %s3440_s15  ;;  %2311 = vrot.lane.b32.xlu1 %v5320_v55, %s3446_s21 }
 0x412   : > { %v5389_v8 = vpop.permute.xlu0 %2305  ;;  %v5391_v26 = vpop.permute.xlu1 %2447 }
 0x414   : > { %2265 = vrot.lane.b32.xlu0 %v5331_v6, %s3445_s20  ;;  %2455 = vrot.lane.b32.xlu1 %v5320_v55, %s3443_s18 }
 0x416   : > { %v5397_v42 = vpop.permute.xlu0 %2449  ;;  %v2152_v34 = vpop.permute.xlu1 %2151 }
 0x418   : > { %2501 = vrot.lane.b32.xlu0 %v5232_v61, %s3447_s10  ;;  %2495 = vrot.lane.b32.xlu1 %v5166_v37, %s3447_s10 }
 0x41a   : > { %v2154_v50 = vpop.permute.xlu0 %2153  ;;  %v5403_v44 = vpop.permute.xlu1 %2199 }
 0x41c   : > { %2409 = vrot.lane.b32.xlu0 %v5331_v6, %s3441_s16  ;;  %2487 = vrot.lane.b32.xlu1 %v5194_v40, %s3447_s10 }
 0x41e   : > { %v5409_v28 = vpop.permute.xlu0 %2201  ;;  %v2344_v56 = vpop.permute.xlu1 %2343 }
 0x420   : > { %2313 = vrot.lane.b32.xlu0 %v5331_v6, %s3446_s21  ;;  %2499 = vrot.lane.b32.xlu1 %v5226_v48, %s3447_s10 }
 0x422   : > { %v2346_v31 = vpop.permute.xlu0 %2345  ;;  %v5415_v7 = vpop.permute.xlu1 %2247 }
 0x424   : > { %2341 = vrot.lane.b32.xlu0 %v5131_v9, %s3440_s15  ;;  %2339 = vrot.lane.b32.xlu1 %v5125_v19, %s3440_s15 }
 0x426   : > { %v5421_v25 = vpop.permute.xlu0 %2249  ;;  %v5423_v43 = vpop.permute.xlu1 %2391 }
 0x427   : > { %6815 = vst [vmem:[#allocation51_spill] sm:$0xff] %v5423_v43 }
 0x428   : > { %2457 = vrot.lane.b32.xlu0 %v5331_v6, %s3443_s18  ;;  %2351 = vrot.lane.b32.xlu1 %v5166_v37, %s3440_s15 }
 0x42a   : > { %v5429_v23 = vpop.permute.xlu0 %2393  ;;  %v5431_v46 = vpop.permute.xlu1 %2295 }
 0x42b   : > { %6816 = vst [vmem:[#allocation52_spill] sm:$0xff] %v5431_v46 }
 0x42c   : > { %2353 = vrot.lane.b32.xlu0 %v5172_v38, %s3440_s15  ;;  %2491 = vrot.lane.b32.xlu1 %v5269_v15, %s3447_s10 }
 0x42e   : > { %v5440_v41 = vpop.permute.xlu0 %2297  ;;  %v5442_v10 = vpop.permute.xlu1 %2439 }
 0x42f   : > { %6817 = vst [vmem:[#allocation53_spill] sm:$0xff] %v5440_v41  ;;  %6818 = vst [vmem:[#allocation54_spill] sm:$0xff] %v5442_v10 }
 0x430   : > { %2493 = vrot.lane.b32.xlu0 %v5277_v33, %s3447_s10  ;;  %2503 = vrot.lane.b32.xlu1 %v5320_v55, %s3447_s10 }
 0x432   : > { %v5452_v18 = vpop.permute.xlu0 %2441  ;;  %v2164_v15 = vpop.permute.xlu1 %2163 }
 0x433   : > { %6819 = vst [vmem:[#allocation55_spill] sm:$0xff] %v5452_v18  ;;  %v2173_v40 = vsel %vm803_vm12, %v2152_v34, %v2164_v15  ;;  %v2179_v33 = vsel %vm803_vm12, %v2164_v15, %v2152_v34 }
 0x434   : > { %2505 = vrot.lane.b32.xlu0 %v5331_v6, %s3447_s10  ;;  %870 = vrot.lane.b32.xlu1 %v5013_v3, %s3444_s19  ;;  %v2187_v6 = vmul.f32 %v2179_v33, %v3931_v57  ;;  %v2188_v38 = vmul.f32 %v2173_v40, %v3936_v60 }
 0x436   : > { %v2166_v61 = vpop.permute.xlu0 %2165  ;;  %v5462_v48 = vpop.permute.xlu1 %2211 }
 0x437   : > { %v2174_v24 = vsel %vm803_vm12, %v2154_v50, %v2166_v61  ;;  %v2180_v55 = vsel %vm803_vm12, %v2166_v61, %v2154_v50 }
 0x438   : > { %v2189_v37 = vmul.f32 %v2180_v55, %v3931_v57  ;;  %v2190_v15 = vmul.f32 %v2174_v24, %v3936_v60  ;;  %872 = vrot.lane.b32.xlu0 %v5016_v11, %s3444_s19  ;;  %874 = vrot.lane.b32.xlu1 %v5034_v4, %s3444_s19 }
 0x43a   : > { %v3210_v34 = vpack.c.bf16 %v2189_v37, %v2187_v6  ;;  %v5476_v9 = vpop.permute.xlu0 %2213  ;;  %v2356_v19 = vpop.permute.xlu1 %2355  ;;  %v3208_v10 = vpack.c.bf16 %v2190_v15, %v2188_v38 }
 0x43b   : > { %v2365_v55 = vsel %vm1191_vm9, %v2344_v56, %v2356_v19  ;;  %v2371_v40 = vsel %vm1191_vm9, %v2356_v19, %v2344_v56 }
 0x43c   : > { %892 = vrot.lane.b32.xlu0 %v5037_v16, %s3444_s19  ;;  %3209 = vmatprep.subr.bf16.mxu0 %v3208_v10  ;;  %v2379_v10 = vmul.f32 %v2365_v55, %v3900_v59  ;;  %v2380_v33 = vmul.f32 %v2371_v40, %v3895_v58 }
 0x43d   : > { %894 = vrot.lane.b32.xlu1 %v5052_v0, %s3444_s19  ;;  %3211 = vmatpush1.bf16.msra.mxu0 %v3210_v34 }
 0x43e   : > { %v2358_v61 = vpop.permute.xlu0 %2357  ;;  %v5486_v6 = vpop.permute.xlu1 %2259 }
 0x43f   : > { %v2366_v37 = vsel %vm1191_vm9, %v2346_v31, %v2358_v61  ;;  %v2372_v38 = vsel %vm1191_vm9, %v2358_v61, %v2346_v31 }
 0x440   : > { %v2381_v50 = vmul.f32 %v2366_v37, %v3900_v59  ;;  %v2382_v19 = vmul.f32 %v2372_v38, %v3895_v58  ;;  %896 = vrot.lane.b32.xlu0 %v5055_v45, %s3444_s19 }
 0x441   : > { %898 = vrot.lane.b32.xlu1 %v5067_v52, %s3444_s19 }
 0x442   : > { %v3270_v56 = vpack.c.bf16 %v2381_v50, %v2379_v10  ;;  %v5500_v24 = vpop.permute.xlu0 %2261  ;;  %v5502_v15 = vpop.permute.xlu1 %2403  ;;  %v3268_v31 = vpack.c.bf16 %v2382_v19, %v2380_v33 }
 0x443   : > { %6820 = vst [vmem:[#allocation56_spill] sm:$0xff] %v5502_v15 }
 0x444   : > { %965 = vrot.lane.b32.xlu0 %v4995_v39, %s3445_s20  ;;  %3269 = vmatprep.subr.bf16.mxu1 %v3268_v31 }
 0x445   : > { %967 = vrot.lane.b32.xlu1 %v5013_v3, %s3445_s20  ;;  %3271 = vmatpush1.bf16.msra.mxu1 %v3270_v56 }
 0x446   : > { %v5508_v34 = vpop.permute.xlu0 %2405  ;;  %v5510_v55 = vpop.permute.xlu1 %2307 }
 0x447   : > { %6821 = vst [vmem:[#allocation57_spill] sm:$0xff] %v5510_v55 }
 0x448   : > { %969 = vrot.lane.b32.xlu0 %v5016_v11, %s3445_s20 }
 0x449   : > { %971 = vrot.lane.b32.xlu1 %v5034_v4, %s3445_s20 }
 0x44a   : > { %v5516_v40 = vpop.permute.xlu0 %2309  ;;  %v5518_v61 = vpop.permute.xlu1 %2451 }
 0x44b   : > { %6822 = vst [vmem:[#allocation58_spill] sm:$0xff] %v5516_v40  ;;  %6823 = vst [vmem:[#allocation59_spill] sm:$0xff] %v5518_v61  ;;  %v2226_v40 = vsel %vm900_vm15, %v5365_v51, %v5303_v20 }
 0x44c   : > { %989 = vrot.lane.b32.xlu0 %v5037_v16, %s3445_s20 }
 0x44d   : > { %991 = vrot.lane.b32.xlu1 %v5052_v0, %s3445_s20 }
 0x44e   : > { %v5524_v37 = vpop.permute.xlu0 %2453  ;;  %v2156_v38 = vpop.permute.xlu1 %2155 }
 0x44f   : > { %6824 = vst [vmem:[#allocation60_spill] sm:$0xff] %v5524_v37 }
 0x450   : > { %993 = vrot.lane.b32.xlu0 %v5055_v45, %s3445_s20 }
 0x451   : > { %995 = vrot.lane.b32.xlu1 %v5067_v52, %s3445_s20 }
 0x452   : > { %v2158_v10 = vpop.permute.xlu0 %2157  ;;  %v5530_v33 = vpop.permute.xlu1 %2203 }
 0x454   : > { %1062 = vrot.lane.b32.xlu0 %v4995_v39, %s3446_s21 }
 0x455   : > { %1064 = vrot.lane.b32.xlu1 %v5013_v3, %s3446_s21 }
 0x456   : > { %v5536_v50 = vpop.permute.xlu0 %2205  ;;  %v5538_v19 = vpop.permute.xlu1 %2347 }
 0x458   : > { %1066 = vrot.lane.b32.xlu0 %v5016_v11, %s3446_s21 }
 0x459   : > { %1068 = vrot.lane.b32.xlu1 %v5034_v4, %s3446_s21 }
 0x45a   : > { %v5544_v56 = vpop.permute.xlu0 %2349  ;;  %v5546_v31 = vpop.permute.xlu1 %2251 }
 0x45b   : > { %6825 = vst [vmem:[#allocation61_spill] sm:$0xff] %v5546_v31  ;;  %v2220_v31 = vsel %vm900_vm15, %v5303_v20, %v5365_v51  ;;  %v2219_v20 = vsel %vm900_vm15, %v5297_v35, %v5351_v29 }
 0x45c   : > { %1086 = vrot.lane.b32.xlu0 %v5037_v16, %s3446_s21 }
 0x45d   : > { %1088 = vrot.lane.b32.xlu1 %v5052_v0, %s3446_s21 }
 0x45e   : > { %v5552_v61 = vpop.permute.xlu0 %2253  ;;  %v5554_v37 = vpop.permute.xlu1 %2395 }
 0x45f   : > { %6826 = vst [vmem:[#allocation62_spill] sm:$0xff] %v5552_v61  ;;  %6827 = vst [vmem:[#allocation63_spill] sm:$0xff] %v5554_v37 }
 0x460   : > { %1090 = vrot.lane.b32.xlu0 %v5055_v45, %s3446_s21 }
 0x461   : > { %1092 = vrot.lane.b32.xlu1 %v5067_v52, %s3446_s21 }
 0x462   : > { %v5560_v18 = vpop.permute.xlu0 %2397  ;;  %v5562_v46 = vpop.permute.xlu1 %2299 }
 0x463   : > { %6828 = vst [vmem:[#allocation64_spill] sm:$0xff] %v5560_v18  ;;  %6829 = vst [vmem:[#allocation65_spill] sm:$0xff] %v5562_v46 }
 0x464   : > { %1159 = vrot.lane.b32.xlu0 %v4995_v39, %s3440_s15 }
 0x465   : > { %1161 = vrot.lane.b32.xlu1 %v5013_v3, %s3440_s15 }
 0x466   : > { %v5568_v55 = vpop.permute.xlu0 %2301  ;;  %v5570_v63 = vpop.permute.xlu1 %2443 }
 0x467   : > { %6830 = vst [vmem:[#allocation66_spill] sm:$0xff] %v5568_v55  ;;  %6831 = vst [vmem:[#allocation67_spill] sm:$0xff] %v5570_v63 }
 0x468   : > { %1163 = vrot.lane.b32.xlu0 %v5016_v11, %s3440_s15 }
 0x469   : > { %1165 = vrot.lane.b32.xlu1 %v5034_v4, %s3440_s15 }
 0x46a   : > { %v5576_v37 = vpop.permute.xlu0 %2445  ;;  %v2168_v18 = vpop.permute.xlu1 %2167 }
 0x46b   : > { %6832 = vst [vmem:[#allocation68_spill] sm:$0xff] %v5576_v37  ;;  %v2175_v46 = vsel %vm803_vm12, %v2156_v38, %v2168_v18  ;;  %v2181_v55 = vsel %vm803_vm12, %v2168_v18, %v2156_v38  ;;  %v2225_v37 = vsel %vm900_vm15, %v5351_v29, %v5297_v35  ;;  %v3216_v29 = vpack.c.bf16 %v2220_v31, %v2219_v20 }
 0x46c   : > { %1183 = vrot.lane.b32.xlu0 %v5037_v16, %s3440_s15  ;;  %v2191_v38 = vmul.f32 %v2181_v55, %v3931_v57  ;;  %v2231_v51 = vmul.f32 %v2225_v37, %v4422_v21  ;;  %v2222_v35 = vsel %vm900_vm15, %v5409_v28, %v5476_v9  ;;  %v2221_v37 = vsel %vm900_vm15, %v5403_v44, %v5462_v48 }
 0x46d   : > { %1185 = vrot.lane.b32.xlu1 %v5052_v0, %s3440_s15 }
 0x46e   : > { %v2170_v63 = vpop.permute.xlu0 %2169  ;;  %v5586_v41 = vpop.permute.xlu1 %2483 }
 0x46f   : > { %6833 = vst [vmem:[#allocation69_spill] sm:$0xff] %v5586_v41  ;;  %v2176_v61 = vsel %vm803_vm12, %v2158_v10, %v2170_v63  ;;  %v2182_v18 = vsel %vm803_vm12, %v2170_v63, %v2158_v10  ;;  %v2192_v41 = vmul.f32 %v2175_v46, %v3936_v60  ;;  %v2273_v63 = vsel %vm997_vm2, %v5367_v30, %v5305_v2 }
 0x470   : > { %v2193_v15 = vmul.f32 %v2182_v18, %v3931_v57  ;;  %v2194_v43 = vmul.f32 %v2176_v61, %v3936_v60  ;;  %1187 = vrot.lane.b32.xlu0 %v5055_v45, %s3440_s15  ;;  %v2233_v46 = vmul.f32 %v2226_v40, %v4422_v21  ;;  %v2267_v57 = vsel %vm997_vm2, %v5305_v2, %v5367_v30 }
 0x471   : > { %1189 = vrot.lane.b32.xlu1 %v5067_v52, %s3440_s15  ;;  %v5629_v59 = vmul.f32 %v2273_v63, %v4639_v32  ;;  %v2274_v2 = vsel %vm997_vm2, %v5373_v17, %v5311_v1  ;;  %v2411_v40 = vsel %vm1288_vm13, %v5313_v54, %v5375_v49 }
 0x472   : > { %v3214_v55 = vpack.c.bf16 %v2193_v15, %v2191_v38  ;;  %v5617_v61 = vpop.permute.xlu0 %2485  ;;  %v2216_v10 = vpop.permute.xlu1 %2215  ;;  %v3212_v18 = vpack.c.bf16 %v2194_v43, %v2192_v41  ;;  %v2228_v43 = vsel %vm900_vm15, %v5476_v9, %v5409_v28  ;;  %v2268_v41 = vsel %vm997_vm2, %v5311_v1, %v5373_v17 }
 0x473   : > { %v3218_v30 = vpack.c.bf16 %v2233_v46, %v2231_v51  ;;  %v5652_v15 = vmul.f32 %v2267_v57, %v3895_v58  ;;  %v2227_v1 = vsel %vm900_vm15, %v5462_v48, %v5403_v44  ;;  %v2412_v57 = vsel %vm1288_vm13, %v5322_v53, %v5381_v14 }
 0x474   : > { %1256 = vrot.lane.b32.xlu0 %v4995_v39, %s3441_s16  ;;  %3213 = vmatprep.subr.bf16.mxu0 %v3212_v18  ;;  %v2418_v28 = vsel %vm1288_vm13, %v5381_v14, %v5322_v53  ;;  %v2237_v31 = vmul.f32 %v2228_v43, %v4422_v21  ;;  %v5678_v38 = vmul.f32 %v2274_v2, %v4639_v32 }
 0x475   : > { %1258 = vrot.lane.b32.xlu1 %v5013_v3, %s3441_s16  ;;  %3215 = vmatpush1.bf16.msra.mxu0 %v3214_v55  ;;  %v2282_v63 = vmul.f32 %v2268_v41, %v3895_v58  ;;  %v2417_v46 = vsel %vm1288_vm13, %v5375_v49, %v5313_v54  ;;  %v3220_v53 = vpack.c.bf16 %v2222_v35, %v2221_v37 }
 0x476   : > { %v5662_v17 = vpop.permute.xlu0 %2497  ;;  %3217 = vmatprep.subr.bf16.mxu0 %v3216_v29  ;;  %v2360_v9 = vpop.permute.xlu1 %2359  ;;  %v5688_v14 = vmul.f32 %v2411_v40, %v4304_v22  ;;  %v2235_v48 = vmul.f32 %v2227_v1, %v4422_v21  ;;  %v2229_v44 = vsel %vm900_vm15, %v2216_v10, %v5530_v33  ;;  %v5697_v55 = vmul.f32 %v2412_v57, %v4304_v22 }
 0x477   : > { %v5700_v54 = vmul.f32 %v2418_v28, %v4280_v12  ;;  %v2315_v49 = vsel %vm1094_vm3, %v5324_v13, %v5383_v5  ;;  %v2321_v18 = vsel %vm1094_vm3, %v5383_v5, %v5324_v13  ;;  %v2223_v29 = vsel %vm900_vm15, %v5530_v33, %v2216_v10 }
 0x478   : > { %1260 = vrot.lane.b32.xlu0 %v5016_v11, %s3441_s16  ;;  %v3222_v43 = vpack.c.bf16 %v2237_v31, %v2235_v48  ;;  %v2270_v13 = vsel %vm997_vm2, %v5421_v25, %v5500_v24  ;;  %v2239_v5 = vmul.f32 %v2229_v44, %v4422_v21  ;;  %v3230_v33 = vpack.c.bf16 %v5678_v38, %v5629_v59 }
 0x479   : > { %1262 = vrot.lane.b32.xlu1 %v5034_v4, %s3441_s16  ;;  %3219 = vmatpush1.bf16.msra.mxu0 %v3218_v30  ;;  %v5730_v10 = vmul.f32 %v2417_v46, %v4280_v12  ;;  %v5739_v40 = vmul.f32 %v2321_v18, %v4304_v22  ;;  %v2269_v59 = vsel %vm997_vm2, %v5415_v7, %v5486_v6 }
 0x47a   : > { %v2218_v20 = vpop.permute.xlu0 %2217  ;;  %3221 = vmatprep.subr.bf16.mxu0 %v3220_v53  ;;  %v2264_v51 = vpop.permute.xlu1 %2263  ;;  %v3228_v28 = vpack.c.bf16 %v2282_v63, %v5652_v15  ;;  %v5749_v37 = vmul.f32 %v2315_v49, %v3936_v60  ;;  %v2316_v31 = vsel %vm1094_vm3, %v5333_v62, %v5389_v8  ;;  %v2276_v38 = vsel %vm997_vm2, %v5500_v24, %v5421_v25 }
 0x47b   : > { %v2224_v41 = vsel %vm900_vm15, %v5536_v50, %v2218_v20  ;;  %v2230_v2 = vsel %vm900_vm15, %v2218_v20, %v5536_v50  ;;  %v2322_v50 = vsel %vm1094_vm3, %v5389_v8, %v5333_v62  ;;  %v2286_v46 = vmul.f32 %v2270_v13, %v3895_v58 }
 0x47c   : > { %v2241_v35 = vmul.f32 %v2230_v2, %v4422_v21  ;;  %v3224_v30 = vpack.c.bf16 %v2224_v41, %v2223_v29  ;;  %1280 = vrot.lane.b32.xlu0 %v5037_v16, %s3441_s16  ;;  %v3278_v15 = vpack.c.bf16 %v5697_v55, %v5688_v14  ;;  %v5765_v63 = vmul.f32 %v2322_v50, %v4304_v22  ;;  %v6836_v50 = vld [vmem:[#allocation51_spill] sm:$0xff] }
 0x47d   : > { %1282 = vrot.lane.b32.xlu1 %v5052_v0, %s3441_s16  ;;  %3223 = vmatpush1.bf16.msra.mxu0 %v3222_v43  ;;  %v2465_v62 = vsel %vm1385_vm14, %v5391_v26, %v5335_v27  ;;  %v3276_v25 = vpack.c.bf16 %v5700_v54, %v5730_v10  ;;  %v2284_v8 = vmul.f32 %v2269_v59, %v3895_v58  ;;  %v6837_v59 = vld [vmem:[#allocation56_spill] sm:$0xff] }
 0x47e   : > { %v3226_v1 = vpack.c.bf16 %v2241_v35, %v2239_v5  ;;  %v5745_v57 = vpop.permute.xlu0 %2489  ;;  %3225 = vmatprep.subr.bf16.mxu0 %v3224_v30  ;;  %v5760_v53 = vpop.permute.xlu1 %2407  ;;  %v2367_v24 = vsel %vm1191_vm9, %v5538_v19, %v2360_v9  ;;  %v2373_v48 = vsel %vm1191_vm9, %v2360_v9, %v5538_v19  ;;  %v5785_v44 = vmul.f32 %v2316_v31, %v3936_v60  ;;  %v6835_v30 = vld [vmem:[#allocation61_spill] sm:$0xff] }
 0x47f   : > { %v2466_v54 = vsel %vm1385_vm14, %v5397_v42, %v5341_v36  ;;  %v2275_v49 = vsel %vm997_vm2, %v5486_v6, %v5415_v7  ;;  %v2285_v18 = vmul.f32 %v2276_v38, %v4639_v32  ;;  %v2420_v9 = vsel %vm1288_vm13, %v5508_v34, %v5429_v23  ;;  %v6834_v6 = vld [vmem:[#allocation19_spill] sm:$0xff] }
 0x480   : > { %1284 = vrot.lane.b32.xlu0 %v5055_v45, %s3441_s16  ;;  %v3232_v7 = vpack.c.bf16 %v2286_v46, %v2284_v8  ;;  %v2383_v41 = vmul.f32 %v2367_v24, %v6834_v6  ;;  %v2384_v2 = vmul.f32 %v2373_v48, %v3895_v58  ;;  %v2283_v35 = vmul.f32 %v2275_v49, %v4639_v32  ;;  %v6838_v24 = vld [vmem:[#allocation62_spill] sm:$0xff] }
 0x481   : > { %1286 = vrot.lane.b32.xlu1 %v5067_v52, %s3441_s16  ;;  %3227 = vmatpush1.bf16.msra.mxu0 %v3226_v1  ;;  %v2277_v10 = vsel %vm997_vm2, %v2264_v51, %v6835_v30  ;;  %v2419_v1 = vsel %vm1288_vm13, %v6837_v59, %v6836_v50 }
 0x482   : > { %v2362_v19 = vpop.permute.xlu0 %2361  ;;  %3229 = vmatprep.subr.bf16.mxu0 %v3228_v28  ;;  %v5806_v29 = vpop.permute.xlu1 %2311  ;;  %v2414_v28 = vsel %vm1288_vm13, %v5429_v23, %v5508_v34  ;;  %v3234_v8 = vpack.c.bf16 %v2285_v18, %v2283_v35 }
 0x483   : > { %v2368_v20 = vsel %vm1191_vm9, %v5544_v56, %v2362_v19  ;;  %v2374_v43 = vsel %vm1191_vm9, %v2362_v19, %v5544_v56  ;;  %v2271_v56 = vsel %vm997_vm2, %v6835_v30, %v2264_v51  ;;  %v2430_v51 = vmul.f32 %v2420_v9, %v4280_v12 }
 0x484   : > { %v2385_v13 = vmul.f32 %v2368_v20, %v6834_v6  ;;  %v2386_v5 = vmul.f32 %v2374_v43, %v3895_v58  ;;  %1353 = vrot.lane.b32.xlu0 %v4995_v39, %s3443_s18  ;;  %v2287_v19 = vmul.f32 %v2277_v10, %v4639_v32  ;;  %v2288_v23 = vmul.f32 %v2271_v56, %v3895_v58  ;;  %v6841_v56 = vld [vmem:[#allocation47_spill] sm:$0xff] }
 0x485   : > { %1355 = vrot.lane.b32.xlu1 %v5013_v3, %s3443_s18  ;;  %3231 = vmatpush1.bf16.msra.mxu0 %v3230_v33  ;;  %v2413_v9 = vsel %vm1288_vm13, %v6836_v50, %v6837_v59  ;;  %v2428_v20 = vmul.f32 %v2419_v1, %v4280_v12  ;;  %v2429_v43 = vmul.f32 %v2414_v28, %v4304_v22  ;;  %v6842_v50 = vld [vmem:[#allocation57_spill] sm:$0xff]  ;;  %v6843_v59 = vld [vmem:[#allocation52_spill] sm:$0xff] }
 0x486   : > { %v3274_v31 = vpack.c.bf16 %v2385_v13, %v2383_v41  ;;  %v2266_v38 = vpop.permute.xlu0 %2265  ;;  %3233 = vmatprep.subr.bf16.mxu0 %v3232_v7  ;;  %v3272_v46 = vpack.c.bf16 %v2386_v5, %v2384_v2  ;;  %v5838_v49 = vpop.permute.xlu1 %2455  ;;  %v6839_v7 = vld [vmem:[#allocation58_spill] sm:$0xff]  ;;  %v6840_v41 = vld [vmem:[#allocation53_spill] sm:$0xff]  ;;  %v3242_v30 = vpack.c.bf16 %v5765_v63, %v5739_v40  ;;  %v5863_v10 = vmul.f32 %v2465_v62, %v6841_v56 }
 0x487   : > { %v2272_v33 = vsel %vm997_vm2, %v6838_v24, %v2266_v38  ;;  %v2278_v48 = vsel %vm997_vm2, %v2266_v38, %v6838_v24  ;;  %v2318_v2 = vsel %vm1094_vm3, %v6840_v41, %v6839_v7  ;;  %v2317_v1 = vsel %vm1094_vm3, %v6843_v59, %v6842_v50 }
 0x488   : > { %v2289_v34 = vmul.f32 %v2278_v48, %v4639_v32  ;;  %v2290_v18 = vmul.f32 %v2272_v33, %v3895_v58  ;;  %1357 = vrot.lane.b32.xlu0 %v5016_v11, %s3443_s18  ;;  %3273 = vmatprep.subr.bf16.mxu1 %v3272_v46  ;;  %v2474_v38 = vmul.f32 %v2466_v54, %v6841_v56  ;;  %v6845_v33 = vld [vmem:[#allocation64_spill] sm:$0xff] }
 0x489   : > { %1359 = vrot.lane.b32.xlu1 %v5034_v4, %s3443_s18  ;;  %3235 = vmatpush1.bf16.msra.mxu0 %v3234_v8  ;;  %v2427_v46 = vmul.f32 %v2413_v9, %v4304_v22  ;;  %v2324_v40 = vsel %vm1094_vm3, %v6839_v7, %v6840_v41  ;;  %v3280_v63 = vpack.c.bf16 %v2430_v51, %v2428_v20  ;;  %v6846_v9 = vld [vmem:[#allocation65_spill] sm:$0xff]  ;;  %v6847_v41 = vld [vmem:[#allocation55_spill] sm:$0xff] }
 0x48a   : > { %v3238_v13 = vpack.c.bf16 %v2289_v34, %v2287_v19  ;;  %3275 = vmatpush1.bf16.msra.mxu1 %v3274_v31  ;;  %v5858_v5 = vpop.permute.xlu0 %2501  ;;  %v3236_v35 = vpack.c.bf16 %v2290_v18, %v2288_v23  ;;  %v5869_v28 = vpop.permute.xlu1 %2495  ;;  %v3240_v31 = vpack.c.bf16 %v5785_v44, %v5749_v37  ;;  %v2334_v62 = vmul.f32 %v2318_v2, %v3936_v60  ;;  %v6848_v2 = vld [vmem:[#allocation60_spill] sm:$0xff] }
 0x48b   : > { %3277 = vmatprep.subr.bf16.mxu1 %v3276_v25  ;;  %v6844_v25 = vld [vmem:[#allocation63_spill] sm:$0xff]  ;;  %v3282_v54 = vpack.c.bf16 %v2429_v43, %v2427_v46  ;;  %v2323_v8 = vsel %vm1094_vm3, %v6842_v50, %v6843_v59  ;;  %v2332_v51 = vmul.f32 %v2317_v1, %v3936_v60  ;;  %v2319_v20 = vsel %vm1094_vm3, %v6846_v9, %v5806_v29 }
 0x48c   : > { %1377 = vrot.lane.b32.xlu0 %v5037_v16, %s3443_s18  ;;  %v2415_v37 = vsel %vm1288_vm13, %v6844_v25, %v5760_v53  ;;  %v2421_v44 = vsel %vm1288_vm13, %v5760_v53, %v6844_v25  ;;  %3237 = vmatprep.subr.bf16.mxu0 %v3236_v35  ;;  %v2333_v53 = vmul.f32 %v2324_v40, %v4304_v22  ;;  %v6850_v46 = vld [vmem:[#allocation59_spill] sm:$0xff]  ;;  %v6851_v40 = vld [vmem:[#allocation66_spill] sm:$0xff] }
 0x48d   : > { %1379 = vrot.lane.b32.xlu1 %v5052_v0, %s3443_s18  ;;  %3239 = vmatpush1.bf16.msra.mxu0 %v3238_v13  ;;  %v2431_v34 = vmul.f32 %v2415_v37, %v4304_v22  ;;  %v2432_v14 = vmul.f32 %v2421_v44, %v4280_v12  ;;  %v2331_v18 = vmul.f32 %v2323_v8, %v4304_v22 }
 0x48e   : > { %3279 = vmatpush1.bf16.msra.mxu1 %v3278_v15  ;;  %v2410_v24 = vpop.permute.xlu0 %2409  ;;  %3241 = vmatprep.subr.bf16.mxu0 %v3240_v31  ;;  %v5907_v23 = vpop.permute.xlu1 %2487  ;;  %v2325_v43 = vsel %vm1094_vm3, %v5806_v29, %v6846_v9  ;;  %v3244_v7 = vpack.c.bf16 %v2334_v62, %v2332_v51  ;;  %v2468_v13 = vsel %vm1385_vm14, %v6848_v2, %v6847_v41  ;;  %v6849_v31 = vld [vmem:[#allocation54_spill] sm:$0xff] }
 0x48f   : > { %v2416_v48 = vsel %vm1288_vm13, %v6845_v33, %v2410_v24  ;;  %v2422_v19 = vsel %vm1288_vm13, %v2410_v24, %v6845_v33  ;;  %3281 = vmatprep.subr.bf16.mxu1 %v3280_v63  ;;  %v3246_v1 = vpack.c.bf16 %v2333_v53, %v2331_v18  ;;  %v2467_v29 = vsel %vm1385_vm14, %v6850_v46, %v6849_v31  ;;  %v6856_v18 = vld [vmem:[#allocation67_spill] sm:$0xff] }
 0x490   : > { %v2433_v55 = vmul.f32 %v2416_v48, %v4304_v22  ;;  %v2434_v15 = vmul.f32 %v2422_v19, %v4280_v12  ;;  %1381 = vrot.lane.b32.xlu0 %v5055_v45, %s3443_s18  ;;  %v2336_v37 = vmul.f32 %v2319_v20, %v3936_v60  ;;  %v2460_v8 = vsel %vm1385_vm14, %v5341_v36, %v5397_v42 }
 0x491   : > { %1383 = vrot.lane.b32.xlu1 %v5067_v52, %s3443_s18  ;;  %3243 = vmatpush1.bf16.msra.mxu0 %v3242_v30  ;;  %v2335_v30 = vmul.f32 %v2325_v43, %v4304_v22  ;;  %v2478_v51 = vmul.f32 %v2468_v13, %v6841_v56  ;;  %v3288_v24 = vpack.c.bf16 %v2474_v38, %v5863_v10  ;;  %v6854_v38 = vld [vmem:[#allocation5_spill] sm:$0xff] }
 0x492   : > { %v3286_v35 = vpack.c.bf16 %v2433_v55, %v2431_v34  ;;  %3283 = vmatpush1.bf16.msra.mxu1 %v3282_v54  ;;  %v2314_v50 = vpop.permute.xlu0 %2313  ;;  %v3284_v59 = vpack.c.bf16 %v2434_v15, %v2432_v14  ;;  %3245 = vmatprep.subr.bf16.mxu0 %v3244_v7  ;;  %v5940_v25 = vpop.permute.xlu1 %2499  ;;  %v2459_v19 = vsel %vm1385_vm14, %v5335_v27, %v5391_v26  ;;  %v6852_v34 = vld [vmem:[#allocation3_spill] sm:$0xff]  ;;  %v6853_v14 = vld [vmem:[#allocation4_spill] sm:$0xff]  ;;  %v6855_v27 = vld [vmem:[#allocation6_spill] sm:$0xff] }
 0x493   : > { %v2320_v63 = vsel %vm1094_vm3, %v6851_v40, %v2314_v50  ;;  %v2326_v62 = vsel %vm1094_vm3, %v2314_v50, %v6851_v40  ;;  %v2476_v36 = vmul.f32 %v2467_v29, %v6841_v56  ;;  %v3254_v55 = vpack.c.bf16 %v6853_v14, %v6852_v34  ;;  %v6857_v43 = vld [vmem:[#allocation9_spill] sm:$0xff]  ;;  %v6858_v7 = vld [vmem:[#allocation10_spill] sm:$0xff]  ;;  %v1592_v14 = vld [vmem:[%s6597_s4 + $0x8] sm:$0xff] }
 0x494   : > { %v2337_v44 = vmul.f32 %v2326_v62, %v4304_v22  ;;  %v2338_v54 = vmul.f32 %v2320_v63, %v3936_v60  ;;  %1450 = vrot.lane.b32.xlu0 %v4995_v39, %s3447_s10  ;;  %3285 = vmatprep.subr.bf16.mxu1 %v3284_v59  ;;  %v3290_v15 = vpack.c.bf16 %v2460_v8, %v2459_v19  ;;  %v1591_v63 = vld [vmem:[%s6597_s4] sm:$0xff]  ;;  %v6865_v19 = vld [vmem:[#allocation48_spill] sm:$0xff] }
 0x495   : > { %1452 = vrot.lane.b32.xlu1 %v5013_v3, %s3447_s10  ;;  %3247 = vmatpush1.bf16.msra.mxu0 %v3246_v1  ;;  %v2462_v10 = vsel %vm1385_vm14, %v6847_v41, %v6848_v2  ;;  %v3252_v26 = vpack.c.bf16 %v6855_v27, %v6854_v38  ;;  %v2469_v9 = vsel %vm1385_vm14, %v5838_v49, %v6856_v18  ;;  %v6859_v41 = vld [vmem:[#allocation7_spill] sm:$0xff]  ;;  %v6860_v2 = vld [vmem:[#allocation8_spill] sm:$0xff]  ;;  %v6861_v1 = vld [vmem:[#allocation69_spill] sm:$0xff] }
 0x496   : > { %v3250_v53 = vpack.c.bf16 %v2337_v44, %v2335_v30  ;;  %3287 = vmatpush1.bf16.msra.mxu1 %v3286_v35  ;;  %v2342_v33 = vpop.permute.xlu0 %2341  ;;  %v3248_v48 = vpack.c.bf16 %v2338_v54, %v2336_v37  ;;  %v5961_v42 = vpop.permute.xlu1 %2339  ;;  %v3292_v20 = vpack.c.bf16 %v2478_v51, %v2476_v36  ;;  %v3256_v13 = vpack.c.bf16 %v6858_v7, %v6857_v43  ;;  %v6862_v30 = vld [vmem:[#allocation68_spill] sm:$0xff]  ;;  %v6863_v37 = vld [vmem:[#allocation49_spill] sm:$0xff]  ;;  %v6864_v44 = vld [vmem:[#allocation50_spill] sm:$0xff] }
 0x497   : > { %3289 = vmatprep.subr.bf16.mxu1 %v3288_v24  ;;  %v3258_v35 = vpack.c.bf16 %v6860_v2, %v6859_v41  ;;  %v2461_v50 = vsel %vm1385_vm14, %v6849_v31, %v6850_v46  ;;  %v2514_v59 = vsel %vm1482_vm1, %v5662_v17, %v5617_v61  ;;  %v2513_v29 = vsel %vm1482_vm1, %v5869_v28, %v6861_v1  ;;  %v1594_v41 = vld [vmem:[%s6597_s4 + $0x18] sm:$0xff] }
 0x498   : > { %1454 = vrot.lane.b32.xlu0 %v5016_v11, %s3447_s10  ;;  %3249 = vmatprep.subr.bf16.mxu0 %v3248_v48  ;;  %v3294_v62 = vpack.c.bf16 %v2462_v10, %v2461_v50  ;;  %v3260_v54 = vpack.c.bf16 %v6864_v44, %v6863_v37  ;;  %v2480_v8 = vmul.f32 %v2469_v9, %v6841_v56  ;;  %v1593_v10 = vld [vmem:[%s6597_s4 + $0x10] sm:$0xff] }
 0x499   : > { %1456 = vrot.lane.b32.xlu1 %v5034_v4, %s3447_s10  ;;  %3251 = vmatpush1.bf16.msra.mxu0 %v3250_v53  ;;  %v2507_v51 = vsel %vm1482_vm1, %v6861_v1, %v5869_v28  ;;  %v2515_v24 = vsel %vm1482_vm1, %v5940_v25, %v5907_v23  ;;  %v2508_v48 = vsel %vm1482_vm1, %v5617_v61, %v5662_v17 }
 0x49a   : > { %3291 = vmatpush1.bf16.msra.mxu1 %v3290_v15  ;;  %v2458_v40 = vpop.permute.xlu0 %2457  ;;  %3253 = vmatprep.subr.bf16.mxu0 %v3252_v26  ;;  %v2352_v46 = vpop.permute.xlu1 %2351  ;;  %v2522_v36 = vmul.f32 %v2514_v59, %v6865_v19  ;;  %v2520_v34 = vmul.f32 %v2513_v29, %v6865_v19  ;;  %v2463_v15 = vsel %vm1385_vm14, %v6856_v18, %v5838_v49 }
 0x49b   : > { %v2470_v31 = vsel %vm1385_vm14, %v2458_v40, %v6862_v30  ;;  %3293 = vmatprep.subr.bf16.mxu1 %v3292_v20  ;;  %v2464_v28 = vsel %vm1385_vm14, %v6862_v30, %v2458_v40  ;;  %v2516_v61 = vsel %vm1482_vm1, %v5858_v5, %v5745_v57  ;;  %v2519_v27 = vmul.f32 %v2507_v51, %v6834_v6 }
 0x49c   : > { %v2482_v53 = vmul.f32 %v2470_v31, %v6841_v56  ;;  %1474 = vrot.lane.b32.xlu0 %v5037_v16, %s3447_s10  ;;  %v2509_v49 = vsel %vm1482_vm1, %v5907_v23, %v5940_v25  ;;  %v2524_v26 = vmul.f32 %v2515_v24, %v6865_v19  ;;  %v3298_v9 = vpack.c.bf16 %v2464_v28, %v2463_v15  ;;  %v2555_v24 = vld [vmem:[%s6599_s6] sm:$0xff] }
 0x49d   : > { %1605 = vperm.xlu1 %3428, %v1591_v63   ;;  %3255 = vmatpush1.bf16.msra.mxu0 %v3254_v55  ;;  %v2369_v20 = vsel %vm1191_vm9, %v2352_v46, %v5961_v42  ;;  %v2521_v7 = vmul.f32 %v2508_v48, %v6834_v6  ;;  %v2510_v23 = vsel %vm1482_vm1, %v5745_v57, %v5858_v5  ;;  %v1595_v57 = vld [vmem:[%s6597_s4 + $0x20] sm:$0xff] }
 0x49e   : > { %3295 = vmatpush1.bf16.msra.mxu1 %v3294_v62  ;;  %v2354_v17 = vpop.permute.xlu0 %2353  ;;  %v3296_v38 = vpack.c.bf16 %v2482_v53, %v2480_v8  ;;  %v2492_v55 = vpop.permute.xlu1 %2491  ;;  %3257 = vmatprep.subr.bf16.mxu0 %v3256_v13  ;;  %v3300_v13 = vpack.c.bf16 %v2522_v36, %v2520_v34  ;;  %v2526_v2 = vmul.f32 %v2516_v61, %v6865_v19  ;;  %v6866_v62 = vld [vmem:[#allocation41_spill] sm:$0xff] }
 0x49f   : > { %v2370_v18 = vsel %vm1191_vm9, %v2354_v17, %v2342_v33  ;;  %v2364_v43 = vsel %vm1191_vm9, %v2342_v33, %v2354_v17  ;;  %v2523_v33 = vmul.f32 %v2509_v49, %v6834_v6  ;;  %v2363_v50 = vsel %vm1191_vm9, %v5961_v42, %v2352_v46  ;;  %v6867_v42 = vld [vmem:[#allocation36_spill] sm:$0xff]  ;;  %v2556_v17 = vld [vmem:[%s6599_s6 + $0x8] sm:$0xff]  ;;  %v2531_v49 = vld [vmem:[%s6598_s5] sm:$0xff] }
 0x4a0   : > { %1610 = vperm.xlu0 %3427, %v1592_v14   ;;  %3297 = vmatprep.subr.bf16.mxu1 %v3296_v38  ;;  %v2378_v25 = vmul.f32 %v2370_v18, %v3895_v58  ;;  %v2376_v5 = vmul.f32 %v2369_v20, %v3895_v58  ;;  %v2377_v1 = vmul.f32 %v2364_v43, %v6834_v6  ;;  %v2559_v43 = vld [vmem:[%s6599_s6 + $0x20] sm:$0xff] }
 0x4a1   : > { %1615 = vperm.xlu1 %3428, %v1593_v10   ;;  %3259 = vmatpush1.bf16.msra.mxu0 %v3258_v35  ;;  %v2525_v40 = vmul.f32 %v2510_v23, %v6834_v6  ;;  %v3302_v63 = vpack.c.bf16 %v2521_v7, %v2519_v27  ;;  %v3262_v35 = vpack.c.bf16 %v6867_v42, %v6866_v62  ;;  %v2557_v27 = vld [vmem:[%s6599_s6 + $0x10] sm:$0xff]  ;;  %v2535_v7 = vld [vmem:[%s6598_s5 + $0x20] sm:$0xff] }
 0x4a2   : > { %3299 = vmatpush1.bf16.msra.mxu1 %v3298_v9  ;;  %v2494_v59 = vpop.permute.xlu0 %2493  ;;  %v2504_v29 = vpop.permute.xlu1 %2503  ;;  %3261 = vmatprep.subr.bf16.mxu0 %v3260_v54  ;;  %v3304_v30 = vpack.c.bf16 %v2526_v2, %v2524_v26  ;;  %v2375_v31 = vmul.f32 %v2363_v50, %v6834_v6  ;;  %v3264_v44 = vpack.c.bf16 %v2378_v25, %v2376_v5  ;;  %v1596_v54 = vld [vmem:[%s6597_s4 + $0x28] sm:$0xff]  ;;  %v2558_v9 = vld [vmem:[%s6599_s6 + $0x18] sm:$0xff]  ;;  %v2533_v25 = vld [vmem:[%s6598_s5 + $0x10] sm:$0xff] }
 0x4a3   : > { %3301 = vmatprep.subr.bf16.mxu1 %v3300_v13  ;;  %v2511_v46 = vsel %vm1482_vm1, %v2492_v55, %v2504_v29  ;;  %v2517_v37 = vsel %vm1482_vm1, %v2504_v29, %v2492_v55  ;;  %v3306_v8 = vpack.c.bf16 %v2525_v40, %v2523_v33  ;;  %v2536_v55 = vld [vmem:[%s6598_s5 + $0x28] sm:$0xff]  ;;  %v2538_v33 = vld [vmem:[%s6598_s5 + $0x38] sm:$0xff]  ;;  %v2537_v40 = vld [vmem:[%s6598_s5 + $0x30] sm:$0xff] }
 0x4a4   : > { %1620 = vperm.xlu0 %3427, %v1594_v41   ;;  %v3266_v53 = vpack.c.bf16 %v2377_v1, %v2375_v31  ;;  %v2527_v28 = vmul.f32 %v2511_v46, %v6834_v6  ;;  %v2528_v14 = vmul.f32 %v2517_v37, %v6865_v19  ;;  %v2540_v13 = vld [vmem:[%s6598_s5 + $0x48] sm:$0xff]  ;;  %v2543_v31 = vld [vmem:[%s6598_s5 + $0x60] sm:$0xff]  ;;  %v2541_v37 = vld [vmem:[%s6598_s5 + $0x50] sm:$0xff] }
 0x4a5   : > { %1625 = vperm.xlu1 %3428, %v1595_v57   ;;  %3263 = vmatpush1.bf16.msra.mxu0 %v3262_v35  ;;  %v2560_v50 = vld [vmem:[%s6599_s6 + $0x28] sm:$0xff]  ;;  %v2539_v57 = vld [vmem:[%s6598_s5 + $0x40] sm:$0xff]  ;;  %v2542_v35 = vld [vmem:[%s6598_s5 + $0x58] sm:$0xff] }
 0x4a6   : > { %3303 = vmatpush1.bf16.msra.mxu1 %v3302_v63  ;;  %v2506_v51 = vpop.permute.xlu0 %2505  ;;  %v871_v34 = vpop.permute.xlu1 %870  ;;  %3265 = vmatprep.subr.bf16.mxu0 %v3264_v44  ;;  %v2544_v63 = vld [vmem:[%s6598_s5 + $0x68] sm:$0xff] }
 0x4a7   : > { %v2512_v48 = vsel %vm1482_vm1, %v2494_v59, %v2506_v51  ;;  %v2518_v36 = vsel %vm1482_vm1, %v2506_v51, %v2494_v59  ;;  %3305 = vmatprep.subr.bf16.mxu1 %v3304_v30  ;;  %v2548_v44 = vld [vmem:[%s6598_s5 + $0x88] sm:$0xff] }
 0x4a8   : > { %v2529_v15 = vmul.f32 %v2512_v48, %v6834_v6  ;;  %v2530_v61 = vmul.f32 %v2518_v36, %v6865_v19  ;;  %1630 = vperm.xlu0 %3427, %v1596_v54   ;;  %v6868_v54 = vld [vmem:[#allocation37_spill] sm:$0xff] }
 0x4a9   : > { %2563 = vperm.xlu1 %3428, %v2555_v24   ;;  %3267 = vmatpush1.bf16.msra.mxu0 %v3266_v53  ;;  %v6870_v53 = vld [vmem:[#allocation45_spill] sm:$0xff] }
 0x4aa   : > { %v3310_v10 = vpack.c.bf16 %v2529_v15, %v2527_v28  ;;  %3307 = vmatpush1.bf16.msra.mxu1 %v3306_v8  ;;  %v873_v38 = vpop.permute.xlu0 %872  ;;  %v3308_v26 = vpack.c.bf16 %v2530_v61, %v2528_v14  ;;  %v875_v18 = vpop.permute.xlu1 %874  ;;  %v6869_v8 = vld [vmem:[#allocation11_spill] sm:$0xff]  ;;  %v2546_v36 = vld [vmem:[%s6598_s5 + $0x78] sm:$0xff]  ;;  %v6872_v28 = vld [vmem:[#allocation12_spill] sm:$0xff] }
 0x4ab   : > { %v812_v51 = vsel %vm803_vm12, %v6869_v8, %v6868_v54  ;;  %v824_v24 = vsel %vm803_vm12, %v6868_v54, %v6869_v8  ;;  %v6873_v61 = vld [vmem:[#allocation13_spill] sm:$0xff]  ;;  %v2910_v54 = vld [vmem:[%s6600_s7 + $0x10] sm:$0xff] }
 0x4ac   : > { %2568 = vperm.xlu0 %3427, %v2556_v17   ;;  %3309 = vmatprep.subr.bf16.mxu1 %v3308_v26  ;;  %v6874_v17 = vld [vmem:[#allocation39_spill] sm:$0xff] }
 0x4ad   : > { %2573 = vperm.xlu1 %3428, %v2557_v27   ;;  %2675 = vmatmul.mubr.f32.vlgmr.msra.gmra.mrb[60].mxu0 %v2531_v49  ;;  %v814_v27 = vsel %vm803_vm12, %v6873_v61, %v6874_v17  ;;  %v6875_v49 = vld [vmem:[#allocation42_spill] sm:$0xff]  ;;  %v6876_v26 = vld [vmem:[#allocation35_spill] sm:$0xff] }
 0x4ae   : > { %3311 = vmatpush1.bf16.msra.mxu1 %v3310_v10  ;;  %v893_v20 = vpop.permute.xlu0 %892  ;;  %2680 = vmatprep.mubr.f32.mxu0 %v2536_v55  ;;  %v826_v10 = vsel %vm803_vm12, %v6874_v17, %v6873_v61  ;;  %v827_v55 = vsel %vm803_vm12, %v6875_v49, %v6876_v26 }
 0x4af   : > { %v895_v23 = vpop.permute.xlu1 %894  ;;  %v921_v48 = vsel %vm900_vm15, %v893_v20, %v6870_v53 }
 0x4b0   : > { %v6121_v41 = vsel %vm900_vm15, %v871_v34, %v895_v23  ;;  %v922_v2 = vsel %vm900_vm15, %v895_v23, %v871_v34  ;;  %2578 = vperm.xlu0 %3427, %v2558_v9   ;;  %v6871_v34 = vld [vmem:[#allocation44_spill] sm:$0xff] }
 0x4b1   : > { %2583 = vperm.xlu1 %3428, %v2559_v43   ;;  %2681 = vmatmul.mubr.f32.gmra.mrb[62].mxu0 %v2535_v7  ;;  %v813_v14 = vsel %vm803_vm12, %v6872_v28, %v6871_v34  ;;  %v825_v15 = vsel %vm803_vm12, %v6871_v34, %v6872_v28  ;;  %v2909_v43 = vld [vmem:[%s6600_s7 + $0x8] sm:$0xff]  ;;  %v2547_v7 = vld [vmem:[%s6598_s5 + $0x80] sm:$0xff]  ;;  %v6877_v23 = vld [vmem:[#allocation20_spill] sm:$0xff] }
 0x4b2   : > { %2776 = vmatmul.mubr.f32.vlgmr.msra.gmra.mrb[24].mxu1 %v2533_v25  ;;  %v897_v59 = vpop.permute.xlu0 %896  ;;  %2686 = vmatprep.mubr.f32.mxu0 %v2540_v13  ;;  %v844_v25 = vmul.f32 %v824_v24, %v6877_v23  ;;  %v909_v13 = vsel %vm900_vm15, %v6870_v53, %v893_v20  ;;  %v847_v20 = vmul.f32 %v813_v14, %v3936_v60 }
 0x4b3   : > { %v6136_v5 = vsel %vm900_vm15, %v873_v38, %v897_v59  ;;  %v923_v1 = vsel %vm900_vm15, %v897_v59, %v873_v38  ;;  %v899_v29 = vpop.permute.xlu1 %898  ;;  %3052 = vmatprep.mubr.msk.f32.mxu1 %vm2591_vm5, %v2538_v33  ;;  %v2908_v38 = vld [vmem:[%s6600_s7] sm:$0xff]  ;;  %v941_v33 = vmul.f32 %v921_v48, %v4422_v21  ;;  %v2911_v48 = vld [vmem:[%s6600_s7 + $0x18] sm:$0xff] }
 0x4b4   : > { %v6149_v62 = vsel %vm900_vm15, %v875_v18, %v899_v29  ;;  %v6153_v42 = vsel %vm900_vm15, %v899_v29, %v875_v18  ;;  %2588 = vperm.xlu0 %3427, %v2560_v50   ;;  %v815_v18 = vsel %vm803_vm12, %v6876_v26, %v6875_v49  ;;  %v943_v50 = vmul.f32 %v922_v2, %v4422_v21  ;;  %v2552_v29 = vld [vmem:[%s6598_s5 + $0xa8] sm:$0xff]  ;;  %v2550_v2 = vld [vmem:[%s6598_s5 + $0x98] sm:$0xff] }
 0x4b5   : > { %1476 = vrot.lane.b32.xlu1 %v5052_v0, %s3447_s10  ;;  %2687 = vmatmul.mubr.f32.gmra.mrb[64].mxu0 %v2539_v57  ;;  %v2545_v57 = vld [vmem:[%s6598_s5 + $0x70] sm:$0xff]  ;;  %v945_v24 = vmul.f32 %v923_v1, %v4422_v21  ;;  %v2836_v34 = vadd.f32 %v941_v33, %v844_v25 }
 0x4b6   : > { %2782 = vmatmul.mubr.f32.gmra.mrb[26].mxu1 %v2537_v40  ;;  %v966_v30 = vpop.permute.xlu0 %965  ;;  %2692 = vmatprep.mubr.f32.mxu0 %v2544_v63  ;;  %v845_v40 = vmul.f32 %v812_v51, %v3936_v60  ;;  %v846_v63 = vmul.f32 %v825_v15, %v6877_v23  ;;  %v2839_v51 = vadd.f32 %v6121_v41, %v847_v20  ;;  %v2549_v15 = vld [vmem:[%s6598_s5 + $0x90] sm:$0xff] }
 0x4b7   : > { %v968_v46 = vpop.permute.xlu1 %967  ;;  %3053 = vmatprep.mubr.msk.f32.mxu1 %vm2591_vm5, %v2542_v35  ;;  %v848_v35 = vmul.f32 %v826_v10, %v6877_v23  ;;  %v2553_v33 = vld [vmem:[%s6598_s5 + $0xb0] sm:$0xff] }
 0x4b8   : > { %1478 = vrot.lane.b32.xlu0 %v5055_v45, %s3447_s10  ;;  %v2837_v8 = vadd.f32 %v909_v13, %v845_v40  ;;  %v2838_v28 = vadd.f32 %v943_v50, %v846_v63 }
 0x4b9   : > { %1480 = vrot.lane.b32.xlu1 %v5067_v52, %s3447_s10  ;;  %2693 = vmatmul.mubr.f32.gmra.mrb[66].mxu0 %v2543_v31  ;;  %v849_v31 = vmul.f32 %v814_v27, %v3936_v60  ;;  %v947_v27 = vmul.f32 %v6153_v42, %v4422_v21 }
 0x4ba   : > { %2788 = vmatmul.mubr.f32.gmra.mrb[28].mxu1 %v2541_v37  ;;  %v970_v9 = vpop.permute.xlu0 %969  ;;  %2698 = vmatprep.mubr.f32.mxu0 %v2548_v44  ;;  %v850_v37 = vmul.f32 %v827_v55, %v6877_v23  ;;  %v851_v44 = vmul.f32 %v815_v18, %v3936_v60  ;;  %v2840_v18 = vadd.f32 %v945_v24, %v848_v35 }
 0x4bb   : > { %v972_v59 = vpop.permute.xlu1 %971  ;;  %3054 = vmatprep.mubr.msk.f32.mxu1 %vm2591_vm5, %v2546_v36  ;;  %v2551_v36 = vld [vmem:[%s6598_s5 + $0xa0] sm:$0xff]  ;;  %v2841_v55 = vadd.f32 %v6136_v5, %v849_v31 }
 0x4bc   : > { %2914 = vperm.xlu0 %3427, %v2908_v38   ;;  %v2842_v40 = vadd.f32 %v947_v27, %v850_v37 }
 0x4bd   : > { %2919 = vperm.xlu1 %3428, %v2909_v43   ;;  %2699 = vmatmul.mubr.f32.gmra.mrb[68].mxu0 %v2547_v7 }
 0x4be   : > { %2794 = vmatmul.mubr.f32.gmra.mrb[30].mxu1 %v2545_v57  ;;  %v990_v53 = vpop.permute.xlu0 %989  ;;  %2704 = vmatprep.mubr.f32.mxu0 %v2552_v29 }
 0x4bf   : > { %v1006_v14 = vsel %vm997_vm2, %v966_v30, %v990_v53  ;;  %v1018_v41 = vsel %vm997_vm2, %v990_v53, %v966_v30  ;;  %v992_v1 = vpop.permute.xlu1 %991  ;;  %3055 = vmatprep.mubr.msk.f32.mxu1 %vm2591_vm5, %v2550_v2  ;;  %v2554_v30 = vld [vmem:[%s6598_s5 + $0xb8] sm:$0xff] }
 0x4c0   : > { %v1038_v61 = vmul.f32 %v1018_v41, %v4639_v32  ;;  %v1039_v17 = vmul.f32 %v1006_v14, %v3895_v58  ;;  %v1007_v10 = vsel %vm997_vm2, %v968_v46, %v992_v1  ;;  %v1019_v38 = vsel %vm997_vm2, %v992_v1, %v968_v46  ;;  %2924 = vperm.xlu0 %3427, %v2910_v54  }
 0x4c1   : > { %v1040_v49 = vmul.f32 %v1019_v38, %v4639_v32  ;;  %v1041_v26 = vmul.f32 %v1007_v10, %v3895_v58  ;;  %2929 = vperm.xlu1 %3428, %v2911_v48   ;;  %2705 = vmatmul.mubr.f32.gmra.mrb[70].mxu0 %v2551_v36 }
 0x4c2   : > { %v2844_v43 = vadd.f32 %v2836_v34, %v1038_v61  ;;  %v2845_v7 = vadd.f32 %v2837_v8, %v1039_v17  ;;  %2800 = vmatmul.mubr.f32.gmra.mrb[32].mxu1 %v2549_v15  ;;  %v994_v46 = vpop.permute.xlu0 %993 }
 0x4c3   : > { %v2846_v23 = vadd.f32 %v2838_v28, %v1040_v49  ;;  %v2847_v25 = vadd.f32 %v2839_v51, %v1041_v26  ;;  %v1008_v13 = vsel %vm997_vm2, %v970_v9, %v994_v46  ;;  %v1020_v21 = vsel %vm997_vm2, %v994_v46, %v970_v9  ;;  %v996_v42 = vpop.permute.xlu1 %995  ;;  %3056 = vmatprep.mubr.msk.f32.mxu1 %vm2591_vm5, %v2554_v30 }
 0x4c4   : > { %v1042_v5 = vmul.f32 %v1020_v21, %v4639_v32  ;;  %v1043_v50 = vmul.f32 %v1008_v13, %v3895_v58  ;;  %v1009_v57 = vsel %vm997_vm2, %v972_v59, %v996_v42  ;;  %v1021_v29 = vsel %vm997_vm2, %v996_v42, %v972_v59 }
 0x4c5   : > { %v2843_v9 = vadd.f32 %v6149_v62, %v851_v44  ;;  %v1044_v63 = vmul.f32 %v1021_v29, %v4639_v32  ;;  %v1045_v20 = vmul.f32 %v1009_v57, %v3895_v58 }
 0x4c6   : > { %v2848_v35 = vadd.f32 %v2840_v18, %v1042_v5  ;;  %v2849_v2 = vadd.f32 %v2841_v55, %v1043_v50  ;;  %2806 = vmatmul.mubr.f32.gmra.mrb[34].mxu1 %v2553_v33  ;;  %v1063_v31 = vpop.permute.xlu0 %1062 }
 0x4c7   : > { %v2850_v54 = vadd.f32 %v2842_v40, %v1044_v63  ;;  %v2851_v8 = vadd.f32 %v2843_v9, %v1045_v20  ;;  %v1065_v51 = vpop.permute.xlu1 %1064 }
 0x4ca   : > { %v1067_v24 = vpop.permute.xlu0 %1066 }
 0x4cb   : > { %v1069_v53 = vpop.permute.xlu1 %1068 }
 0x4ce   : > { %v1087_v48 = vpop.permute.xlu0 %1086 }
 0x4cf   : > { %v1103_v59 = vsel %vm1094_vm3, %v1063_v31, %v1087_v48  ;;  %v1115_v62 = vsel %vm1094_vm3, %v1087_v48, %v1063_v31  ;;  %v1089_v37 = vpop.permute.xlu1 %1088 }
 0x4d0   : > { %v1135_v32 = vmul.f32 %v1115_v62, %v4304_v22  ;;  %v1136_v44 = vmul.f32 %v1103_v59, %v3936_v60  ;;  %v1104_v36 = vsel %vm1094_vm3, %v1065_v51, %v1089_v37  ;;  %v1116_v34 = vsel %vm1094_vm3, %v1089_v37, %v1065_v51 }
 0x4d1   : > { %v1137_v28 = vmul.f32 %v1116_v34, %v4304_v22  ;;  %v1138_v14 = vmul.f32 %v1104_v36, %v3936_v60 }
 0x4d2   : > { %v2852_v41 = vadd.f32 %v2844_v43, %v1135_v32  ;;  %v2853_v1 = vadd.f32 %v2845_v7, %v1136_v44  ;;  %v1091_v15 = vpop.permute.xlu0 %1090 }
 0x4d3   : > { %v2854_v61 = vadd.f32 %v2846_v23, %v1137_v28  ;;  %v2855_v17 = vadd.f32 %v2847_v25, %v1138_v14  ;;  %v1105_v10 = vsel %vm1094_vm3, %v1067_v24, %v1091_v15  ;;  %v1117_v38 = vsel %vm1094_vm3, %v1091_v15, %v1067_v24  ;;  %v1093_v30 = vpop.permute.xlu1 %1092 }
 0x4d4   : > { %v1139_v27 = vmul.f32 %v1117_v38, %v4304_v22  ;;  %v1140_v49 = vmul.f32 %v1105_v10, %v3936_v60  ;;  %v1106_v26 = vsel %vm1094_vm3, %v1069_v53, %v1093_v30  ;;  %v1118_v18 = vsel %vm1094_vm3, %v1093_v30, %v1069_v53 }
 0x4d5   : > { %v1141_v55 = vmul.f32 %v1118_v18, %v4304_v22  ;;  %v1142_v43 = vmul.f32 %v1106_v26, %v3936_v60  ;;  %v2860_v50 = vadd.f32 %v2852_v41, %v4995_v39  ;;  %v2861_v57 = vadd.f32 %v2853_v1, %v5037_v16 }
 0x4d6   : > { %v2856_v7 = vadd.f32 %v2848_v35, %v1139_v27  ;;  %v2857_v46 = vadd.f32 %v2849_v2, %v1140_v49  ;;  %v1160_v23 = vpop.permute.xlu0 %1159  ;;  %v2862_v39 = vadd.f32 %v2854_v61, %v5013_v3  ;;  %v2863_v16 = vadd.f32 %v2855_v17, %v5052_v0 }
 0x4d7   : > { %v2858_v25 = vadd.f32 %v2850_v54, %v1141_v55  ;;  %v2859_v13 = vadd.f32 %v2851_v8, %v1142_v43  ;;  %v1162_v21 = vpop.permute.xlu1 %1161 }
 0x4d8   : > { %v2864_v51 = vadd.f32 %v2856_v7, %v5016_v11  ;;  %v2865_v24 = vadd.f32 %v2857_v46, %v5055_v45 }
 0x4d9   : > { %v2866_v44 = vadd.f32 %v2858_v25, %v5034_v4  ;;  %v2867_v36 = vadd.f32 %v2859_v13, %v5067_v52 }
 0x4da   : > { %v1164_v42 = vpop.permute.xlu0 %1163 }
 0x4db   : > { %v1166_v33 = vpop.permute.xlu1 %1165 }
 0x4de   : > { %v1184_v5 = vpop.permute.xlu0 %1183 }
 0x4df   : > { %v1200_v29 = vsel %vm1191_vm9, %v1160_v23, %v1184_v5  ;;  %v1212_v40 = vsel %vm1191_vm9, %v1184_v5, %v1160_v23  ;;  %v1186_v60 = vpop.permute.xlu1 %1185  ;;  %v6878_v5 = vld [vmem:[#allocation31_spill] sm:$0xff] }
 0x4e0   : > { %v1232_v9 = vmul.f32 %v1200_v29, %v6834_v6  ;;  %v1233_v63 = vmul.f32 %v1212_v40, %v3895_v58  ;;  %v1201_v20 = vsel %vm1191_vm9, %v1162_v21, %v1186_v60  ;;  %v1213_v35 = vsel %vm1191_vm9, %v1186_v60, %v1162_v21  ;;  %v6880_v40 = vld [vmem:[#allocation22_spill] sm:$0xff] }
 0x4e1   : > { %v1234_v2 = vmul.f32 %v1201_v20, %v6834_v6  ;;  %v1235_v31 = vmul.f32 %v1213_v35, %v3895_v58  ;;  %v6882_v35 = vld [vmem:[#allocation30_spill] sm:$0xff] }
 0x4e2   : > { %v6334_v54 = vadd.f32 %v2860_v50, %v1232_v9  ;;  %v6336_v8 = vadd.f32 %v2861_v57, %v1233_v63  ;;  %v1188_v53 = vpop.permute.xlu0 %1187  ;;  %v6879_v57 = vld [vmem:[#allocation27_spill] sm:$0xff]  ;;  %v6881_v9 = vld [vmem:[#allocation21_spill] sm:$0xff] }
 0x4e3   : > { %v6340_v48 = vadd.f32 %v2862_v39, %v1234_v2  ;;  %v6342_v59 = vadd.f32 %v2863_v16, %v1235_v31  ;;  %v1202_v3 = vsel %vm1191_vm9, %v1164_v42, %v1188_v53  ;;  %v1214_v0 = vsel %vm1191_vm9, %v1188_v53, %v1164_v42  ;;  %v1190_v62 = vpop.permute.xlu1 %1189  ;;  %v6883_v16 = vld [vmem:[#allocation16_spill] sm:$0xff]  ;;  %v6884_v53 = vld [vmem:[#allocation15_spill] sm:$0xff] }
 0x4e4   : > { %v1236_v37 = vmul.f32 %v1202_v3, %v6834_v6  ;;  %v1237_v32 = vmul.f32 %v1214_v0, %v3895_v58  ;;  %v1203_v11 = vsel %vm1191_vm9, %v1166_v33, %v1190_v62  ;;  %v1215_v45 = vsel %vm1191_vm9, %v1190_v62, %v1166_v33  ;;  %v6885_v0 = vld [vmem:[#allocation26_spill] sm:$0xff] }
 0x4e5   : > { %v1238_v34 = vmul.f32 %v1203_v11, %v6834_v6  ;;  %v1239_v28 = vmul.f32 %v1215_v45, %v3895_v58  ;;  %v6887_v11 = vld [vmem:[#allocation24_spill] sm:$0xff] }
 0x4e6   : > { %v6358_v14 = vadd.f32 %v2864_v51, %v1236_v37  ;;  %v6360_v41 = vadd.f32 %v2865_v24, %v1237_v32  ;;  %v1257_v1 = vpop.permute.xlu0 %1256  ;;  %v6886_v37 = vld [vmem:[#allocation34_spill] sm:$0xff] }
 0x4e7   : > { %v6362_v15 = vadd.f32 %v2866_v44, %v1238_v34  ;;  %v6364_v61 = vadd.f32 %v2867_v36, %v1239_v28  ;;  %v1259_v17 = vpop.permute.xlu1 %1258  ;;  %v6888_v44 = vld [vmem:[#allocation14_spill] sm:$0xff]  ;;  %v6889_v34 = vld [vmem:[#allocation23_spill] sm:$0xff] }
 0x4ea   : > { %v6366_v10 = vpop.permute.xlu0 %1260 }
 0x4eb   : > { %v6368_v38 = vpop.permute.xlu1 %1262 }
 0x4ee   : > { %v1281_v4 = vpop.permute.xlu0 %1280 }
 0x4ef   : > { %v1283_v52 = vpop.permute.xlu1 %1282 }
 0x4f2   : > { %v6370_v30 = vpop.permute.xlu0 %1284 }
 0x4f3   : > { %v6372_v27 = vpop.permute.xlu1 %1286 }
 0x4f6   : > { %v6374_v58 = vpop.permute.xlu0 %1353 }
 0x4f7   : > { %v6376_v49 = vpop.permute.xlu1 %1355 }
 0x4fa   : > { %v6378_v26 = vpop.permute.xlu0 %1357 }
 0x4fb   : > { %v6380_v18 = vpop.permute.xlu1 %1359 }
 0x4fe   : > { %v6382_v55 = vpop.permute.xlu0 %1377 }
 0x4ff   : > { %v6384_v43 = vpop.permute.xlu1 %1379 }
 0x502   : > { %v6386_v7 = vpop.permute.xlu0 %1381 }
 0x503   : > { %v6388_v46 = vpop.permute.xlu1 %1383 }
 0x506   : > { %v6390_v23 = vpop.permute.xlu0 %1450 }
 0x507   : > { %v6392_v25 = vpop.permute.xlu1 %1452 }
 0x50a   : > { %v6394_v13 = vpop.permute.xlu0 %1454 }
 0x50b   : > { %v6396_v21 = vpop.permute.xlu1 %1456 }
 0x50e   : > { %v6398_v42 = vpop.permute.xlu0 %1474 }
 0x51c   : > { %v1606_v33 = vpop.permute.xlu1 %1605 }
 0x51d   : > { %v1767_v50 = vadd.f32 %v6878_v5, %v1606_v33  ;;  %v1769_v29 = vadd.f32 %v6879_v57, %v1606_v33  ;;  %v6890_v57 = vld [vmem:[#allocation38_spill] sm:$0xff] }
 0x51f   : > { %v3313_v60 = vadd.f32 %v6880_v40, %v1767_v50  ;;  %v3315_v63 = vadd.f32 %v6881_v9, %v1769_v29  ;;  %v1611_v20 = vpop.permute.xlu0 %1610  ;;  %v6891_v40 = vld [vmem:[#allocation25_spill] sm:$0xff] }
 0x520   : > { %v1773_v39 = vadd.f32 %v6882_v35, %v1611_v20  ;;  %v1775_v2 = vadd.f32 %v6883_v16, %v1611_v20  ;;  %v1616_v31 = vpop.permute.xlu1 %1615  ;;  %v6892_v35 = vld [vmem:[#allocation33_spill] sm:$0xff]  ;;  %v6893_v16 = vld [vmem:[#allocation32_spill] sm:$0xff] }
 0x521   : > { %v2111_v51 = vmax.f32 %v3313_v60, 0.0  ;;  %v2112_v24 = vmax.f32 %v3315_v63, 0.0  ;;  %v1779_v3 = vadd.f32 %v6884_v53, %v1616_v31  ;;  %v1781_v62 = vadd.f32 %v6885_v0, %v1616_v31 }
 0x522   : > { %v3317_v32 = vadd.f32 %v6886_v37, %v1773_v39  ;;  %v3319_v45 = vadd.f32 %v6887_v11, %v1775_v2  ;;  %v1297_v31 = vsel %vm1288_vm13, %v1257_v1, %v1281_v4  ;;  %v1310_v37 = vsel %vm1288_vm13, %v1283_v52, %v1259_v17 }
 0x523   : > { %2123 = vst [vmem:[%s4898_s24 + $0x60] sm:$0xff] %v2111_v51  ;;  %2124 = vst [vmem:[%s4898_s24 + $0x68] sm:$0xff] %v2112_v24  ;;  %v3321_v36 = vadd.f32 %v6888_v44, %v1779_v3  ;;  %v3323_v28 = vadd.f32 %v6889_v34, %v1781_v62  ;;  %v1621_v33 = vpop.permute.xlu0 %1620  ;;  %v1309_v51 = vsel %vm1288_vm13, %v1281_v4, %v1257_v1  ;;  %v6894_v24 = vld [vmem:[#allocation29_spill] sm:$0xff]  ;;  %v6895_v3 = vld [vmem:[#allocation28_spill] sm:$0xff] }
 0x524   : > { %v2113_v5 = vmax.f32 %v3317_v32, 0.0  ;;  %v2114_v50 = vmax.f32 %v3319_v45, 0.0  ;;  %v1785_v29 = vadd.f32 %v6890_v57, %v1621_v33  ;;  %v1787_v60 = vadd.f32 %v6891_v40, %v1621_v33  ;;  %v1626_v9 = vpop.permute.xlu1 %1625  ;;  %v6896_v32 = vld [vmem:[#allocation46_spill] sm:$0xff]  ;;  %v6897_v45 = vld [vmem:[#allocation40_spill] sm:$0xff]  ;;  %v6899_v33 = vld [vmem:[#allocation17_spill] sm:$0xff] }
 0x525   : > { %v2115_v63 = vmax.f32 %v3321_v36, 0.0  ;;  %v2116_v20 = vmax.f32 %v3323_v28, 0.0  ;;  %v1791_v39 = vadd.f32 %v6892_v35, %v1626_v9  ;;  %v1793_v2 = vadd.f32 %v6893_v16, %v1626_v9  ;;  %v6898_v34 = vld [vmem:[#allocation18_spill] sm:$0xff] }
 0x526   : > { %2125 = vst [vmem:[%s4898_s24 + $0x70] sm:$0xff] %v2113_v5  ;;  %2126 = vst [vmem:[%s4898_s24 + $0x78] sm:$0xff] %v2114_v50  ;;  %v3325_v53 = vadd.f32 %v6894_v24, %v1785_v29  ;;  %v3327_v0 = vadd.f32 %v6895_v3, %v1787_v60  ;;  %v1298_v62 = vsel %vm1288_vm13, %v1259_v17, %v1283_v52  ;;  %v6900_v60 = vld [vmem:[#allocation43_spill] sm:$0xff] }
 0x527   : > { %2127 = vst [vmem:[%s4898_s24 + $0x80] sm:$0xff] %v2115_v63  ;;  %2128 = vst [vmem:[%s4898_s24 + $0x88] sm:$0xff] %v2116_v20  ;;  %v3329_v11 = vadd.f32 %v6896_v32, %v1791_v39  ;;  %v3331_v1 = vadd.f32 %v6897_v45, %v1793_v2  ;;  %v1631_v4 = vpop.permute.xlu0 %1630  ;;  %v1329_v17 = vmul.f32 %v1297_v31, %v4304_v22  ;;  %v6901_v63 = vld [vmem:[#allocation2_spill] sm:$0xff] }
 0x528   : > { %v2117_v44 = vmax.f32 %v3325_v53, 0.0  ;;  %v2118_v36 = vmax.f32 %v3327_v0, 0.0  ;;  %v1797_v28 = vadd.f32 %v6898_v34, %v1631_v4  ;;  %v1799_v5 = vadd.f32 %v6899_v33, %v1631_v4  ;;  %v6436_v50 = vpop.permute.xlu1 %2563 }
 0x529   : > { %v2119_v52 = vmax.f32 %v3329_v11, 0.0  ;;  %v2120_v57 = vmax.f32 %v3331_v1, 0.0  ;;  %v1330_v29 = vmul.f32 %v1309_v51, %v4280_v12  ;;  %v1406_v40 = vsel %vm1385_vm14, %v6382_v55, %v6374_v58 }
 0x52a   : > { %2129 = vst [vmem:[%s4898_s24 + $0x90] sm:$0xff] %v2117_v44  ;;  %2130 = vst [vmem:[%s4898_s24 + $0x98] sm:$0xff] %v2118_v36  ;;  %v3333_v9 = vadd.f32 %v6900_v60, %v1797_v28  ;;  %v3335_v20 = vadd.f32 %v6901_v63, %v1799_v5  ;;  %v1331_v35 = vmul.f32 %v1298_v62, %v4304_v22 }
 0x52b   : > { %v1332_v39 = vmul.f32 %v1310_v37, %v4280_v12  ;;  %v1299_v16 = vsel %vm1288_vm13, %v6366_v10, %v6370_v30  ;;  %2131 = vst [vmem:[%s4898_s24 + $0xa0] sm:$0xff] %v2119_v52  ;;  %2132 = vst [vmem:[%s4898_s24 + $0xa8] sm:$0xff] %v2120_v57  ;;  %v6456_v2 = vpop.permute.xlu0 %2568  ;;  %v1491_v31 = vsel %vm1482_vm1, %v6390_v23, %v6398_v42 }
 0x52c   : > { %v1503_v51 = vsel %vm1482_vm1, %v6398_v42, %v6390_v23  ;;  %v2121_v24 = vmax.f32 %v3333_v9, 0.0  ;;  %v2122_v53 = vmax.f32 %v3335_v20, 0.0  ;;  %v6466_v3 = vpop.permute.xlu1 %2573  ;;  %v1311_v0 = vsel %vm1288_vm13, %v6370_v30, %v6366_v10 }
 0x52d   : > { %v1300_v62 = vsel %vm1288_vm13, %v6368_v38, %v6372_v27  ;;  %v1312_v37 = vsel %vm1288_vm13, %v6372_v27, %v6368_v38  ;;  %v1427_v23 = vmul.f32 %v1406_v40, %v6841_v56  ;;  %v2877_v42 = vadd.f32 %v6336_v8, %v1330_v29 }
 0x52e   : > { %v2876_v32 = vadd.f32 %v6334_v54, %v1329_v17  ;;  %v1394_v10 = vsel %vm1385_vm14, %v6374_v58, %v6382_v55  ;;  %v1407_v30 = vsel %vm1385_vm14, %v6384_v43, %v6376_v49  ;;  %2133 = vst [vmem:[%s4898_s24 + $0xb0] sm:$0xff] %v2121_v24  ;;  %2134 = vst [vmem:[%s4898_s24 + $0xb8] sm:$0xff] %v2122_v53 }
 0x52f   : > { %v1333_v38 = vmul.f32 %v1299_v16, %v4304_v22  ;;  %v1408_v8 = vsel %vm1385_vm14, %v6386_v7, %v6378_v26  ;;  %v1523_v54 = vmul.f32 %v1491_v31, %v6834_v6  ;;  %v1524_v27 = vmul.f32 %v1503_v51, %v6865_v19  ;;  %v6500_v11 = vpop.permute.xlu0 %2578 }
 0x530   : > { %v1334_v58 = vmul.f32 %v1311_v0, %v4280_v12  ;;  %v1335_v55 = vmul.f32 %v1300_v62, %v4304_v22  ;;  %v1336_v45 = vmul.f32 %v1312_v37, %v4280_v12  ;;  %v1409_v1 = vsel %vm1385_vm14, %v6388_v46, %v6380_v18  ;;  %v6509_v4 = vpop.permute.xlu1 %2583 }
 0x531   : > { %v2879_v44 = vadd.f32 %v6342_v59, %v1332_v39  ;;  %v2884_v36 = vadd.f32 %v2876_v32, %v1394_v10  ;;  %v2885_v34 = vadd.f32 %v2877_v42, %v1427_v23  ;;  %v1429_v28 = vmul.f32 %v1407_v30, %v6841_v56 }
 0x532   : > { %v2878_v33 = vadd.f32 %v6340_v48, %v1331_v35  ;;  %v1395_v12 = vsel %vm1385_vm14, %v6376_v49, %v6384_v43  ;;  %v1396_v22 = vsel %vm1385_vm14, %v6378_v26, %v6386_v7  ;;  %v1431_v5 = vmul.f32 %v1408_v8, %v6841_v56 }
 0x533   : > { %v1397_v59 = vsel %vm1385_vm14, %v6380_v18, %v6388_v46  ;;  %v1433_v17 = vmul.f32 %v1409_v1, %v6841_v56  ;;  %v6528_v48 = vpop.permute.xlu0 %2588  ;;  %v2892_v52 = vadd.f32 %v2884_v36, %v1523_v54  ;;  %v2893_v57 = vadd.f32 %v2885_v34, %v1524_v27 }
 0x534   : > { %v2881_v49 = vadd.f32 %v6360_v41, %v1334_v58  ;;  %v2883_v43 = vadd.f32 %v6364_v61, %v1336_v45  ;;  %v2880_v29 = vadd.f32 %v6358_v14, %v1333_v38  ;;  %v2882_v26 = vadd.f32 %v6362_v15, %v1335_v55  ;;  %v1477_v7 = vpop.permute.xlu1 %1476 }
 0x535   : > { %v2886_v40 = vadd.f32 %v2878_v33, %v1395_v12  ;;  %v2887_v60 = vadd.f32 %v2879_v44, %v1429_v28  ;;  %v1492_v18 = vsel %vm1482_vm1, %v6392_v25, %v1477_v7  ;;  %v1504_v56 = vsel %vm1482_vm1, %v1477_v7, %v6392_v25 }
 0x536   : > { %v2888_v46 = vadd.f32 %v2880_v29, %v1396_v22  ;;  %v2890_v9 = vadd.f32 %v2882_v26, %v1397_v59  ;;  %v1525_v41 = vmul.f32 %v1492_v18, %v6834_v6  ;;  %v1526_v61 = vmul.f32 %v1504_v56, %v6865_v19 }
 0x537   : > { %v2889_v14 = vadd.f32 %v2881_v49, %v1431_v5  ;;  %v2891_v63 = vadd.f32 %v2883_v43, %v1433_v17  ;;  %v1479_v15 = vpop.permute.xlu0 %1478  ;;  %v2900_v20 = vmul.f32 0.11111111, %v2892_v52  ;;  %v2901_v35 = vmul.f32 0.11111111, %v2893_v57 }
 0x538   : > { %v1493_v39 = vsel %vm1482_vm1, %v6394_v13, %v1479_v15  ;;  %v1505_v16 = vsel %vm1482_vm1, %v1479_v15, %v6394_v13  ;;  %v1481_v25 = vpop.permute.xlu1 %1480  ;;  %v2894_v31 = vadd.f32 %v2886_v40, %v1525_v41  ;;  %v2895_v51 = vadd.f32 %v2887_v60, %v1526_v61 }
 0x539   : > { %v1527_v24 = vmul.f32 %v1493_v39, %v6834_v6  ;;  %v1528_v53 = vmul.f32 %v1505_v16, %v6865_v19  ;;  %v1494_v0 = vsel %vm1482_vm1, %v6396_v21, %v1481_v25  ;;  %v1506_v62 = vsel %vm1482_vm1, %v1481_v25, %v6396_v21 }
 0x53a   : > { %v1529_v37 = vmul.f32 %v1494_v0, %v6834_v6  ;;  %v1530_v23 = vmul.f32 %v1506_v62, %v6865_v19  ;;  %v2902_v13 = vmul.f32 0.11111111, %v2894_v31  ;;  %v2903_v42 = vmul.f32 0.11111111, %v2895_v51 }
 0x53b   : > { %v2915_v32 = vpop.permute.xlu0 %2914  ;;  %v2896_v10 = vadd.f32 %v2888_v46, %v1527_v24  ;;  %v2897_v30 = vadd.f32 %v2889_v14, %v1528_v53 }
 0x53c   : > { %v2932_v38 = vadd.f32 %v2915_v32, %v2900_v20  ;;  %v2933_v8 = vadd.f32 %v2915_v32, %v2901_v35  ;;  %v2920_v54 = vpop.permute.xlu1 %2919  ;;  %v2898_v27 = vadd.f32 %v2890_v9, %v1529_v37  ;;  %v2899_v58 = vadd.f32 %v2891_v63, %v1530_v23 }
 0x53d   : > { %v2934_v55 = vadd.f32 %v2920_v54, %v2902_v13  ;;  %v2935_v47 = vadd.f32 %v2920_v54, %v2903_v42  ;;  %v2904_v21 = vmul.f32 0.11111111, %v2896_v10  ;;  %v2905_v6 = vmul.f32 0.11111111, %v2897_v30 }
 0x53e   : > { %v2940_v45 = vmax.f32 %v2932_v38, 0.0  ;;  %v2941_v19 = vmax.f32 %v2933_v8, 0.0  ;;  %v2906_v1 = vmul.f32 0.11111111, %v2898_v27  ;;  %v2907_v44 = vmul.f32 0.11111111, %v2899_v58 }
 0x53f   : > { %v2942_v36 = vmax.f32 %v2934_v55, 0.0  ;;  %v2943_v34 = vmax.f32 %v2935_v47, 0.0  ;;  %v2925_v28 = vpop.permute.xlu0 %2924 }
 0x540   : > { %2948 = vst [vmem:[%s4898_s24 + $0x120] sm:$0xff] %v2940_v45  ;;  %2949 = vst [vmem:[%s4898_s24 + $0x128] sm:$0xff] %v2941_v19  ;;  %v2936_v33 = vadd.f32 %v2925_v28, %v2904_v21  ;;  %v2937_v12 = vadd.f32 %v2925_v28, %v2905_v6  ;;  %v2930_v22 = vpop.permute.xlu1 %2929 }
 0x541   : > { %2950 = vst [vmem:[%s4898_s24 + $0x130] sm:$0xff] %v2942_v36  ;;  %2951 = vst [vmem:[%s4898_s24 + $0x138] sm:$0xff] %v2943_v34  ;;  %v2938_v5 = vadd.f32 %v2930_v22, %v2906_v1  ;;  %v2939_v59 = vadd.f32 %v2930_v22, %v2907_v44 }
 0x542   : > { %v2944_v17 = vmax.f32 %v2936_v33, 0.0  ;;  %v2945_v52 = vmax.f32 %v2937_v12, 0.0 }
 0x543   : > { %v2946_v57 = vmax.f32 %v2938_v5, 0.0  ;;  %v2947_v49 = vmax.f32 %v2939_v59, 0.0 }
 0x544   : > { %2952 = vst [vmem:[%s4898_s24 + $0x140] sm:$0xff] %v2944_v17  ;;  %2953 = vst [vmem:[%s4898_s24 + $0x148] sm:$0xff] %v2945_v52 }
 0x545   : > { %2954 = vst [vmem:[%s4898_s24 + $0x150] sm:$0xff] %v2946_v57  ;;  %2955 = vst [vmem:[%s4898_s24 + $0x158] sm:$0xff] %v2947_v49 }
 0x580   : > { %v2676_v43 = vpop.f32.mrb[60].mxu0 }
 0x581   : > { %v2678_v29 = vpop.f32.mrb[61].mxu0  ;;  %v2677_v26 = vadd.f32 %v2676_v43, %v6436_v50 }
 0x582   : > { %v2679_v40 = vadd.f32 %v2678_v29, %v6436_v50 }
 0x584   : > { %v2682_v7 = vpop.f32.mrb[62].mxu0 }
 0x585   : > { %v2777_v60 = vpop.f32.mrb[24].mxu1  ;;  %v2684_v18 = vpop.f32.mrb[63].mxu0  ;;  %v2683_v41 = vadd.f32 %v2682_v7, %v6456_v2 }
 0x586   : > { %v2778_v56 = vadd.f32 %v2777_v60, %v2677_v26  ;;  %v2779_v46 = vpop.f32.mrb[25].mxu1  ;;  %v2685_v63 = vadd.f32 %v2684_v18, %v6456_v2 }
 0x587   : > { %v2780_v9 = vadd.f32 %v2779_v46, %v2679_v40 }
 0x588   : > { %v2812_v61 = vmax.f32 %v2778_v56, 0.0  ;;  %v2688_v14 = vpop.f32.mrb[64].mxu0 }
 0x589   : > { %v2813_v15 = vmax.f32 %v2780_v9, 0.0  ;;  %v2783_v20 = vpop.f32.mrb[26].mxu1  ;;  %v2690_v35 = vpop.f32.mrb[65].mxu0  ;;  %v2689_v25 = vadd.f32 %v2688_v14, %v6466_v3 }
 0x58a   : > { %2824 = vst [vmem:[%s4898_s24 + $0xc0] sm:$0xff] %v2812_v61  ;;  %v2784_v39 = vadd.f32 %v2783_v20, %v2683_v41  ;;  %v2785_v50 = vpop.f32.mrb[27].mxu1  ;;  %v2691_v24 = vadd.f32 %v2690_v35, %v6466_v3 }
 0x58b   : > { %2825 = vst [vmem:[%s4898_s24 + $0xc8] sm:$0xff] %v2813_v15  ;;  %v2786_v16 = vadd.f32 %v2785_v50, %v2685_v63 }
 0x58c   : > { %v2814_v31 = vmax.f32 %v2784_v39, 0.0  ;;  %v2694_v51 = vpop.f32.mrb[66].mxu0 }
 0x58d   : > { %v2815_v53 = vmax.f32 %v2786_v16, 0.0  ;;  %v2789_v0 = vpop.f32.mrb[28].mxu1  ;;  %v2696_v2 = vpop.f32.mrb[67].mxu0  ;;  %v2695_v13 = vadd.f32 %v2694_v51, %v6500_v11 }
 0x58e   : > { %2826 = vst [vmem:[%s4898_s24 + $0xd0] sm:$0xff] %v2814_v31  ;;  %v2790_v62 = vadd.f32 %v2789_v0, %v2689_v25  ;;  %v2791_v37 = vpop.f32.mrb[29].mxu1  ;;  %v2697_v10 = vadd.f32 %v2696_v2, %v6500_v11 }
 0x58f   : > { %2827 = vst [vmem:[%s4898_s24 + $0xd8] sm:$0xff] %v2815_v53  ;;  %v2792_v23 = vadd.f32 %v2791_v37, %v2691_v24 }
 0x590   : > { %v2816_v42 = vmax.f32 %v2790_v62, 0.0  ;;  %v2700_v32 = vpop.f32.mrb[68].mxu0 }
 0x591   : > { %v2817_v30 = vmax.f32 %v2792_v23, 0.0  ;;  %v2795_v38 = vpop.f32.mrb[30].mxu1  ;;  %v2702_v3 = vpop.f32.mrb[69].mxu0  ;;  %v2701_v58 = vadd.f32 %v2700_v32, %v6509_v4 }
 0x592   : > { %2828 = vst [vmem:[%s4898_s24 + $0xe0] sm:$0xff] %v2816_v42  ;;  %v2796_v8 = vadd.f32 %v2795_v38, %v2695_v13  ;;  %v2797_v54 = vpop.f32.mrb[31].mxu1  ;;  %v2703_v21 = vadd.f32 %v2702_v3, %v6509_v4 }
 0x593   : > { %2829 = vst [vmem:[%s4898_s24 + $0xe8] sm:$0xff] %v2817_v30  ;;  %v2798_v27 = vadd.f32 %v2797_v54, %v2697_v10 }
 0x594   : > { %v2818_v55 = vmax.f32 %v2796_v8, 0.0  ;;  %v2706_v47 = vpop.f32.mrb[70].mxu0 }
 0x595   : > { %v2819_v6 = vmax.f32 %v2798_v27, 0.0  ;;  %v2801_v11 = vpop.f32.mrb[32].mxu1  ;;  %v2708_v45 = vpop.f32.mrb[71].mxu0  ;;  %v2707_v36 = vadd.f32 %v2706_v47, %v6528_v48 }
 0x596   : > { %2830 = vst [vmem:[%s4898_s24 + $0xf0] sm:$0xff] %v2818_v55  ;;  %v2802_v19 = vadd.f32 %v2801_v11, %v2701_v58  ;;  %v2803_v1 = vpop.f32.mrb[33].mxu1  ;;  %v2709_v28 = vadd.f32 %v2708_v45, %v6528_v48 }
 0x597   : > { %2831 = vst [vmem:[%s4898_s24 + $0xf8] sm:$0xff] %v2819_v6  ;;  %v2804_v44 = vadd.f32 %v2803_v1, %v2703_v21 }
 0x598   : > { %v2820_v34 = vmax.f32 %v2802_v19, 0.0 }
 0x599   : > { %v2821_v33 = vmax.f32 %v2804_v44, 0.0  ;;  %v2807_v12 = vpop.f32.mrb[34].mxu1 }
 0x59a   : > { %2832 = vst [vmem:[%s4898_s24 + $0x100] sm:$0xff] %v2820_v34  ;;  %v2808_v4 = vadd.f32 %v2807_v12, %v2707_v36  ;;  %v2809_v22 = vpop.f32.mrb[35].mxu1 }
 0x59b   : > { %2833 = vst [vmem:[%s4898_s24 + $0x108] sm:$0xff] %v2821_v33  ;;  %v2810_v5 = vadd.f32 %v2809_v22, %v2709_v28 }
 0x59c   : > { %v2822_v59 = vmax.f32 %v2808_v4, 0.0 }
 0x59d   : > { %v2823_v17 = vmax.f32 %v2810_v5, 0.0 }
 0x59e   : > { %2834 = vst [vmem:[%s4898_s24 + $0x110] sm:$0xff] %v2822_v59 }
 0x59f   : > { %2835 = vst [vmem:[%s4898_s24 + $0x118] sm:$0xff] %v2823_v17 }
 0x5a0 PF: > { %s18_s27 = sadd.s32 1, %s3436_s27  }
 0x5a1   : > { %p15_p4 = scmp.ge.s32.totalorder %s18_s27, 4  }
 0x5a3   :  { %17 = sbr.rel (!%p15_p4) target bundleno = 1 (0x1), region = 82 }

</bundles_post_ra>
